<compile_context>
chip_gen: v6e
topology: v6e:2x2x1
jax: 0.10.0
libtpu: 0.0.40
codegen_flags: <defaults>
</compile_context>

<pallas_src>
import jax
import jax.numpy as jnp
from jax.experimental import pallas as pl
from jax.experimental.pallas import tpu as pltpu

LN_EPS = 1e-5


def _ln_no_affine(z):
    """LayerNorm without affine (gamma/beta folded into the Linear), f32.

    Single-pass statistics (mean / mean-of-squares) to keep only one f32
    temporary tile live alongside the bf16 input.
    """
    mu = jnp.mean(z, axis=-1, keepdims=True)
    ms = jnp.mean(z * z, axis=-1, keepdims=True)
    var = ms - mu * mu
    return (z - mu) * jax.lax.rsqrt(var + LN_EPS)


def fold_kernel(anc_ref, w_ref, b_ref, aw_ref, weff_ref, beff_ref):
    """Anchor path + fold the centroid projection into the head weights.

    anc_ref : (C*A, D) bf16   anchor encoder embeddings
    w_ref   : (D, E)   bf16   W' = gamma[:,None] * W   (LN affine folded)
    b_ref   : (1, E)   f32    b' = beta @ W + b
    aw_ref  : (C, A)   f32    raw anchor-weight logits
    weff_ref: (D, C)   f32    out: W' @ wanc^T
    beff_ref: (1, C)   f32    out: b' @ wanc^T
    """
    E = w_ref.shape[-1]
    C, A = aw_ref.shape

    zn = _ln_no_affine(anc_ref[...].astype(jnp.float32))
    anc_feat = jnp.dot(zn.astype(jnp.bfloat16), w_ref[...],
                       preferred_element_type=jnp.float32) + b_ref[...]  # (CA,E)

    # Per-class softmax over the A anchors (O(C*A)); E**-0.5 folded in.
    aw = aw_ref[...]
    m = jnp.max(aw, axis=-1, keepdims=True)
    ex = jnp.exp(aw - m)
    wmat = ex / jnp.sum(ex, axis=-1, keepdims=True) * (E ** -0.5)        # (C,A)

    # Weighted anchor centroids (C, E): broadcast-multiply + sum over A.
    wanc = jnp.sum(anc_feat.reshape(C, A, E) * wmat[:, :, None], axis=1)

    # Fold the classification matmul into the head weights (tiny, one-time).
    w32 = w_ref[...].astype(jnp.float32)
    weff_ref[...] = jax.lax.dot_general(
        w32, wanc, dimension_numbers=(((1,), (1,)), ((), ())),
        preferred_element_type=jnp.float32)                              # (D,C)
    beff_ref[...] = jax.lax.dot_general(
        b_ref[...], wanc, dimension_numbers=(((1,), (1,)), ((), ())),
        preferred_element_type=jnp.float32)                              # (1,C)


def batch_kernel(x_ref, weff_ref, beff_ref, out_ref):
    """One row tile of the batch path: logits = LN(x) @ W_eff + b_eff.

    x_ref   : (TM, D)    bf16   streamed tile of the batch
    weff_ref: (D, Cpad)  f32    resident across grid steps
    beff_ref: (1, Cpad)  f32    resident across grid steps
    out_ref : (TM, Cpad) f32    lane-dense output tile
    """
    zn = _ln_no_affine(x_ref[...].astype(jnp.float32))
    out_ref[...] = jnp.dot(zn, weff_ref[...],
                           preferred_element_type=jnp.float32) + beff_ref[...]


def base_forward(x_enc, anchors_enc, ln_gamma, ln_beta, lin_w, lin_b,
                 anchor_weights, *, row_tile=256):
    """x_enc (B,1280), anchors_enc (C,A,1280), lin_w (1280,E),
    anchor_weights (C,A) -> logits (B,C) float32.

    row_tile: 256 for v6e/v7x; use 128 on v5e (4x128 MXU pass height).
    """
    B, D = x_enc.shape
    C, A, _ = anchors_enc.shape
    E = lin_w.shape[1]
    CA = C * A
    Cpad = ((C + 127) // 128) * 128            # lane-dense output columns

    # ---- fold the LayerNorm affine into the Linear (parameter-only work) ----
    w_prime = ln_gamma[:, None].astype(jnp.float32) * lin_w.astype(jnp.float32)
    b_prime = (ln_beta.astype(jnp.float32) @ lin_w.astype(jnp.float32)
               + lin_b.astype(jnp.float32)).reshape(1, E)
    w_prime_bf16 = w_prime.astype(jnp.bfloat16)

    vmem = pl.BlockSpec(memory_space=pltpu.MemorySpace.VMEM)

    # ---- Kernel 1: anchors -> effective classification weights --------------
    fold_cost = pl.CostEstimate(
        flops=2 * CA * D * E + 2 * C * A * E + 2 * D * E * C,
        transcendentals=CA + C * A,
        bytes_accessed=(CA * D * 2 + D * E * 2 + E * 4 + C * A * 4
                        + D * C * 4 + C * 4))
    weff, beff = pl.pallas_call(
        fold_kernel,
        out_shape=(jax.ShapeDtypeStruct((D, C), jnp.float32),
                   jax.ShapeDtypeStruct((1, C), jnp.float32)),
        in_specs=[vmem] * 4,
        out_specs=(vmem, vmem),
        cost_estimate=fold_cost,
    )(anchors_enc.reshape(CA, D).astype(jnp.bfloat16),
      w_prime_bf16,
      b_prime,
      anchor_weights.astype(jnp.float32))

    # Pad effective weights to 128 output lanes (padded columns -> zero logits).
    weff_p = jnp.pad(weff, ((0, 0), (0, Cpad - C)))
    beff_p = jnp.pad(beff, ((0, 0), (0, Cpad - C)))

    # ---- Kernel 2: row-tiled batch path --------------------------------------
    tm = min(row_tile, ((B + 7) // 8) * 8)      # sublane-aligned row tile
    bp = ((B + tm - 1) // tm) * tm
    x_pad = jnp.pad(x_enc.astype(jnp.bfloat16), ((0, bp - B), (0, 0)))

    batch_cost = pl.CostEstimate(
        flops=2 * bp * D * Cpad + 6 * bp * D,
        transcendentals=bp,
        bytes_accessed=bp * D * 2 + D * Cpad * 4 + Cpad * 4 + bp * Cpad * 4)
    out = pl.pallas_call(
        batch_kernel,
        out_shape=jax.ShapeDtypeStruct((bp, Cpad), jnp.float32),
        grid=(bp // tm,),
        in_specs=[pl.BlockSpec((tm, D), lambda i: (i, 0)),
                  pl.BlockSpec((D, Cpad), lambda i: (0, 0)),
                  pl.BlockSpec((1, Cpad), lambda i: (0, 0))],
        out_specs=pl.BlockSpec((tm, Cpad), lambda i: (i, 0)),
        compiler_params=pltpu.CompilerParams(
            dimension_semantics=("parallel",),
            vmem_limit_bytes=32 * 1024 * 1024),
        cost_estimate=batch_cost,
    )(x_pad, weff_p, beff_p)

    return out[:B, :C]


def reference_forward(x_enc, anchors_enc, ln_gamma, ln_beta, lin_w, lin_b,
                      anchor_weights):
    """Pure-JAX f32 reference mirroring the PyTorch forward()."""
    def head(z):
        mu = jnp.mean(z, axis=-1, keepdims=True)
        var = jnp.mean((z - mu) ** 2, axis=-1, keepdims=True)
        zn = (z - mu) / jnp.sqrt(var + LN_EPS) * ln_gamma + ln_beta
        return zn @ lin_w + lin_b

    E = lin_w.shape[1]
    feat = head(x_enc)
    logits = []
    for c in range(anchors_enc.shape[0]):
        af = head(anchors_enc[c])                       # (A, E)
        sim = E ** (-0.5) * (feat @ af.T)               # (B, A)
        logits.append(sim @ jax.nn.softmax(anchor_weights[c]))
    return jnp.stack(logits, axis=1)                    # (B, C)


if __name__ == "__main__":
    key = jax.random.PRNGKey(0)
    B = 4            # batch
    D = 1280         # encoder feature dim (fixed by LayerNorm(1280))
    E = 256          # embed_dim (kept small for the example)
    C = 4            # num_classes
    A = 8            # anchors per class

    k1, k2, k3, k4, k5, k6 = jax.random.split(key, 6)
    x_enc = jax.random.normal(k1, (B, D), dtype=jnp.float32)
    anchors_enc = jax.random.normal(k2, (C, A, D), dtype=jnp.float32)

    ln_gamma = 1.0 + 0.1 * jax.random.normal(k5, (D,), dtype=jnp.float32)
    ln_beta = 0.05 * jax.random.normal(k6, (D,), dtype=jnp.float32)
    lin_w = 0.02 * jax.random.normal(k3, (D, E), dtype=jnp.float32)
    lin_b = jnp.zeros((E,), jnp.float32)
    anchor_weights = jax.random.normal(k4, (C, A), dtype=jnp.float32)

    logits = base_forward(x_enc, anchors_enc, ln_gamma, ln_beta, lin_w, lin_b,
                          anchor_weights)
    jax.block_until_ready(logits)

    ref = reference_forward(x_enc, anchors_enc, ln_gamma, ln_beta, lin_w,
                            lin_b, anchor_weights)
    assert logits.shape == (B, C)
    # bf16 activations/weights in the anchor head (f32 accumulation) and bf16
    # encoder-output quantization -> relaxed tolerance.
    assert jnp.allclose(logits, ref, atol=2.5e-2, rtol=2.5e-2)

    print("KERNEL_OK")
</pallas_src>

<mosaic_0001>
module attributes {stable_mosaic.version = 11 : i64} {
  func.func @fold_kernel(%arg0: memref<32x1280xbf16, #tpu.memory_space<vmem>>, %arg1: memref<1280x256xbf16, #tpu.memory_space<vmem>>, %arg2: memref<1x256xf32, #tpu.memory_space<vmem>>, %arg3: memref<4x8xf32, #tpu.memory_space<vmem>>, %arg4: memref<1280x4xf32, #tpu.memory_space<vmem>>, %arg5: memref<1x4xf32, #tpu.memory_space<vmem>>) attributes {dimension_semantics = [], scalar_prefetch = 0 : i64, scratch_operands = 0 : i64, tpu.core_type = #tpu.core_type<tc>} {
    %c0 = arith.constant 0 : index
    %c0_0 = arith.constant 0 : index
    %0 = vector.load %arg0[%c0, %c0_0] : memref<32x1280xbf16, #tpu.memory_space<vmem>>, vector<32x1280xbf16>
    %1 = arith.extf %0 : vector<32x1280xbf16> to vector<32x1280xf32>
    %cst = arith.constant dense<0.000000e+00> : vector<32xf32>
    %2 = vector.multi_reduction <add>, %1, %cst [1] : vector<32x1280xf32> to vector<32xf32>
    %3 = vector.shape_cast %2 : vector<32xf32> to vector<32x1xf32>
    %cst_1 = arith.constant 1.280000e+03 : f32
    %4 = vector.broadcast %cst_1 : f32 to vector<32x1xf32>
    %5 = arith.divf %3, %4 : vector<32x1xf32>
    %6 = arith.mulf %1, %1 : vector<32x1280xf32>
    %cst_2 = arith.constant dense<0.000000e+00> : vector<32xf32>
    %7 = vector.multi_reduction <add>, %6, %cst_2 [1] : vector<32x1280xf32> to vector<32xf32>
    %8 = vector.shape_cast %7 : vector<32xf32> to vector<32x1xf32>
    %cst_3 = arith.constant 1.280000e+03 : f32
    %9 = vector.broadcast %cst_3 : f32 to vector<32x1xf32>
    %10 = arith.divf %8, %9 : vector<32x1xf32>
    %11 = arith.mulf %5, %5 : vector<32x1xf32>
    %12 = arith.subf %10, %11 : vector<32x1xf32>
    %13 = vector.broadcast %5 : vector<32x1xf32> to vector<32x1280xf32>
    %14 = arith.subf %1, %13 : vector<32x1280xf32>
    %cst_4 = arith.constant 9.99999974E-6 : f32
    %15 = vector.broadcast %cst_4 : f32 to vector<32x1xf32>
    %16 = arith.addf %12, %15 : vector<32x1xf32>
    %17 = math.rsqrt %16 : vector<32x1xf32>
    %18 = vector.broadcast %17 : vector<32x1xf32> to vector<32x1280xf32>
    %19 = arith.mulf %14, %18 : vector<32x1280xf32>
    %20 = arith.truncf %19 : vector<32x1280xf32> to vector<32x1280xbf16>
    %c0_5 = arith.constant 0 : index
    %c0_6 = arith.constant 0 : index
    %21 = vector.load %arg1[%c0_5, %c0_6] : memref<1280x256xbf16, #tpu.memory_space<vmem>>, vector<1280x256xbf16>
    %cst_7 = arith.constant dense<0.000000e+00> : vector<32x256xf32>
    %22 = tpu.matmul %20, %21, %cst_7 {dimension_numbers = #tpu.dot_dimension_numbers<[1], [0], [0], [1], [0, 0, 1, 1], [], []>} : vector<32x1280xbf16>, vector<1280x256xbf16>, vector<32x256xf32> -> vector<32x256xf32>
    %c0_8 = arith.constant 0 : index
    %c0_9 = arith.constant 0 : index
    %23 = vector.load %arg2[%c0_8, %c0_9] : memref<1x256xf32, #tpu.memory_space<vmem>>, vector<1x256xf32>
    %24 = vector.broadcast %23 : vector<1x256xf32> to vector<32x256xf32>
    %25 = arith.addf %22, %24 : vector<32x256xf32>
    %c0_10 = arith.constant 0 : index
    %c0_11 = arith.constant 0 : index
    %26 = vector.load %arg3[%c0_10, %c0_11] : memref<4x8xf32, #tpu.memory_space<vmem>>, vector<4x8xf32>
    %cst_12 = arith.constant dense<0xFF800000> : vector<4xf32>
    %27 = vector.multi_reduction <maximumf>, %26, %cst_12 [1] : vector<4x8xf32> to vector<4xf32>
    %28 = vector.shape_cast %27 : vector<4xf32> to vector<4x1xf32>
    %29 = vector.broadcast %28 : vector<4x1xf32> to vector<4x8xf32>
    %30 = arith.subf %26, %29 : vector<4x8xf32>
    %31 = math.exp %30 : vector<4x8xf32>
    %cst_13 = arith.constant dense<0.000000e+00> : vector<4xf32>
    %32 = vector.multi_reduction <add>, %31, %cst_13 [1] : vector<4x8xf32> to vector<4xf32>
    %33 = vector.shape_cast %32 : vector<4xf32> to vector<4x1xf32>
    %34 = vector.broadcast %33 : vector<4x1xf32> to vector<4x8xf32>
    %35 = arith.divf %31, %34 : vector<4x8xf32>
    %cst_14 = arith.constant 6.250000e-02 : f32
    %36 = vector.broadcast %cst_14 : f32 to vector<4x8xf32>
    %37 = arith.mulf %35, %36 : vector<4x8xf32>
    %38 = vector.shape_cast %25 : vector<32x256xf32> to vector<4x8x256xf32>
    %39 = vector.shape_cast %37 : vector<4x8xf32> to vector<4x8x1xf32>
    %40 = vector.broadcast %39 : vector<4x8x1xf32> to vector<4x8x256xf32>
    %41 = arith.mulf %38, %40 : vector<4x8x256xf32>
    %cst_15 = arith.constant dense<0.000000e+00> : vector<4x256xf32>
    %42 = vector.multi_reduction <add>, %41, %cst_15 [1] : vector<4x8x256xf32> to vector<4x256xf32>
    %c0_16 = arith.constant 0 : index
    %c0_17 = arith.constant 0 : index
    %43 = vector.load %arg1[%c0_16, %c0_17] : memref<1280x256xbf16, #tpu.memory_space<vmem>>, vector<1280x256xbf16>
    %44 = arith.extf %43 : vector<1280x256xbf16> to vector<1280x256xf32>
    %cst_18 = arith.constant dense<0.000000e+00> : vector<1280x4xf32>
    %45 = tpu.matmul %44, %42, %cst_18 {dimension_numbers = #tpu.dot_dimension_numbers<[1], [1], [0], [0], [0, 0, 1, 0], [], []>} : vector<1280x256xf32>, vector<4x256xf32>, vector<1280x4xf32> -> vector<1280x4xf32>
    %c0_19 = arith.constant 0 : index
    %c0_20 = arith.constant 0 : index
    %46 = vector.load %arg4[%c0_19, %c0_20] : memref<1280x4xf32, #tpu.memory_space<vmem>>, vector<1280x4xf32>
    tpu.vector_store %arg4[%c0_19, %c0_20], %45 {strides = array<i32>} : memref<1280x4xf32, #tpu.memory_space<vmem>>, vector<1280x4xf32>,
    %c0_21 = arith.constant 0 : index
    %c0_22 = arith.constant 0 : index
    %47 = vector.load %arg2[%c0_21, %c0_22] : memref<1x256xf32, #tpu.memory_space<vmem>>, vector<1x256xf32>
    %cst_23 = arith.constant dense<0.000000e+00> : vector<1x4xf32>
    %48 = tpu.matmul %47, %42, %cst_23 {dimension_numbers = #tpu.dot_dimension_numbers<[1], [1], [0], [0], [0, 0, 1, 0], [], []>} : vector<1x256xf32>, vector<4x256xf32>, vector<1x4xf32> -> vector<1x4xf32>
    %c0_24 = arith.constant 0 : index
    %c0_25 = arith.constant 0 : index
    %49 = vector.load %arg5[%c0_24, %c0_25] : memref<1x4xf32, #tpu.memory_space<vmem>>, vector<1x4xf32>
    tpu.vector_store %arg5[%c0_24, %c0_25], %48 {strides = array<i32>} : memref<1x4xf32, #tpu.memory_space<vmem>>, vector<1x4xf32>,
    return
  }
}

</mosaic_0001>

<bundles_post_ra>
// kernel: tpu_custom_call.1
= control target key start
LH: loop header
LB: loop body
LE: loop exit
PB: predicated region body
PF: predicated region fallthrough
CT: control target
= control target key end

     0   :  { %11 = vsyncpa [#allocation3], 0  ;;  %s5121_s0 = inlined_call_operand.hbm [shape: bf16[32,1280], index: 0, kind: input, shape index: {}]   ;;  %s5122_s1 = inlined_call_operand.hbm [shape: bf16[1280,256], index: 1, kind: input, shape index: {}]   ;;  %s5123_s2 = inlined_call_operand.hbm [shape: f32[1,256], index: 2, kind: input, shape index: {}]   ;;  %s5124_s3 = inlined_call_operand.vmem [shape: f32[4,8], index: 3, kind: input, shape index: {}]   ;;  %s5125_s4 = inlined_call_operand.vmem [shape: f32[1280,4], index: 4, kind: output, shape index: {0}]   ;;  %s5126_s5 = inlined_call_operand.hbm [shape: f32[1,4], index: 5, kind: output, shape index: {1}]  }
   0x1   :  { %12 = vsyncpa [#allocation6], 0 }
   0x2   :  { %13 = vsyncpa [#allocation4], 0  ;;  %s3754_s18 = smov [#allocation5]  }
   0x3   :  { %s31_s19 = sshll.u32 %s3754_s18, 4  ;;  %s32_s19 = int_to_ptr.vmem [resolvable:$true] %s31_s19 }
   0x4   :  { %s3676_s20 = scalar_lea.vmem %s32_s19, 20480  ;;  %p3681_p1 = scmp.lt.s32.totalorder %s32_s19, %s32_s19 }
   0x5   :  { %p3677_p0 = scmp.ne.s32.totalorder %s32_s19, %s3676_s20  ;;  %p3682_p2 = scmp.lt.s32.totalorder %s3676_s20, %s3676_s20 }
   0x7   :  { %p3683_p3 = por %p3682_p2, %p3681_p1 }
   0x9   :  { %p3684_p4 = pnand %p3683_p3, %p3677_p0 }
   0xb   :  { %3687 = shalt.err (!%p3684_p4)
}
   0xc   :  { %s3755_s21 = smov 128   ;;  %s3756_s22 = smov 8  }
   0xd   :  { %37 = dma.hbm_to_vmem [thread:$0]  %s5122_s1, 20480, %s32_s19, [#allocation6], %s3755_s21, %s3755_s21, %s3756_s22  }
   0xe   :  { %s3757_s25 = smov [#allocation2]  }
   0xf   :  { %s19_s26 = sshll.u32 %s3757_s25, 4  ;;  %s20_s26 = int_to_ptr.vmem [resolvable:$true] %s19_s26 }
  0x10   :  { %s3696_s27 = scalar_lea.vmem %s20_s26, 2560  ;;  %p3701_p6 = scmp.lt.s32.totalorder %s20_s26, %s20_s26 }
  0x11   :  { %p3697_p5 = scmp.ne.s32.totalorder %s20_s26, %s3696_s27  ;;  %p3702_p7 = scmp.lt.s32.totalorder %s3696_s27, %s3696_s27 }
  0x13   :  { %p3703_p8 = por %p3702_p7, %p3701_p6 }
  0x15   :  { %p3704_p9 = pnand %p3703_p8, %p3697_p5 }
  0x17   :  { %3707 = shalt.err (!%p3704_p9)
}
  0x18   :  { %s3758_s28 = smov 640   ;;  %s3759_s29 = smov 40  }
  0x19   :  { %25 = dma.hbm_to_vmem [thread:$0]  %s5121_s0, 2560, %s20_s26, [#allocation3], %s3758_s28, %s3758_s28, %s3759_s29  }
  0x1a   :  { %s3760_s7 = smov [#allocation7]  }
  0x1b   :  { %s44_s8 = sshll.u32 %s3760_s7, 4  ;;  %s45_s8 = int_to_ptr.vmem [resolvable:$true] %s44_s8 }
  0x1c   :  { %s3716_s1 = scalar_lea.vmem %s45_s8, 32  ;;  %p3721_p11 = scmp.lt.s32.totalorder %s45_s8, %s45_s8 }
  0x1d   :  { %p3717_p10 = scmp.ne.s32.totalorder %s45_s8, %s3716_s1  ;;  %p3722_p12 = scmp.lt.s32.totalorder %s3716_s1, %s3716_s1 }
  0x1f   :  { %p3723_p13 = por %p3722_p12, %p3721_p11 }
  0x21   :  { %p3724_p0 = pnand %p3723_p13, %p3717_p10 }
  0x23   :  { %3727 = shalt.err (!%p3724_p0)
}
  0x24   :  { %47 = dma.hbm_to_vmem [thread:$0]  %s5123_s2, 32, %s45_s8, [#allocation6]  }
  0x25   :  { %3748 = dma.done.wait [#allocation3], 2560  }
  0x26   :  { %3749 = vsyncadd [#allocation3], 4294964736 }
  0x27   :  { %3750 = dma.done.wait [#allocation6], 20512  }
  0x28   :  { %3751 = vsyncadd [#allocation6], 4294946784  ;;  %v59_v0 = vld [vmem:[#allocation2] sm:$0xff]  ;;  %v60_v1 = vld [vmem:[#allocation2 + $0x8] sm:$0xff]  ;;  %vm1610_vm0 = vcmask 60416   ;;  %vm2035_vm1 = vcmask 1041409  }
  0x29   :  { %v61_v2 = vld [vmem:[#allocation2 + $0x10] sm:$0xff]  ;;  %v62_v3 = vld [vmem:[#allocation2 + $0x18] sm:$0xff]  ;;  %v3801_v4 = vunpack.c.l.bf16 %v59_v0  ;;  %v3803_v5 = vunpack.c.h.bf16 %v59_v0  ;;  %v3805_v6 = vunpack.c.l.bf16 %v60_v1  ;;  %v63_v7 = vld [vmem:[#allocation2 + $0x20] sm:$0xff]  ;;  %v3807_v8 = vunpack.c.h.bf16 %v60_v1  ;;  %s3761_s29 = smov [#allocation8]  }
  0x2a   :  { %v3809_v9 = vunpack.c.l.bf16 %v61_v2  ;;  %v64_v12 = vld [vmem:[#allocation2 + $0x28] sm:$0xff]  ;;  %v3815_v13 = vunpack.c.h.bf16 %v61_v2  ;;  %v3817_v14 = vunpack.c.l.bf16 %v62_v3  ;;  %v3823_v17 = vunpack.c.h.bf16 %v62_v3  ;;  %v65_v20 = vld [vmem:[#allocation2 + $0x30] sm:$0xff]  ;;  %v66_v31 = vld [vmem:[#allocation2 + $0x38] sm:$0xff]  ;;  %s3164_s30 = sshll.u32 %s3761_s29, 4  ;;  %s3165_s30 = int_to_ptr.vmem [resolvable:$true] %s3164_s30 }
  0x2b   :  { %v119_v10 = vadd.f32 %v3803_v5, %v3801_v4  ;;  %v168_v11 = vmul.f32 %v3801_v4, %v3801_v4  ;;  %v169_v15 = vmul.f32 %v3803_v5, %v3803_v5  ;;  %v170_v16 = vmul.f32 %v3805_v6, %v3805_v6  ;;  %v67_v36 = vld [vmem:[#allocation2 + $0x40] sm:$0xff]  ;;  %v68_v39 = vld [vmem:[#allocation2 + $0x48] sm:$0xff]  ;;  %v69_v51 = vld [vmem:[#allocation2 + $0x50] sm:$0xff]  ;;  %s3728_s0 = scalar_lea.vmem %s3165_s30, 16  ;;  %s3732_s2 = scalar_lea.vmem %s3165_s30, 32 }
  0x2c   :  { %v3825_v18 = vunpack.c.l.bf16 %v63_v7  ;;  %v171_v21 = vmul.f32 %v3807_v8, %v3807_v8  ;;  %v3830_v23 = vunpack.c.l.bf16 %v64_v12  ;;  %v3832_v24 = vunpack.c.h.bf16 %v63_v7  ;;  %v70_v60 = vld [vmem:[#allocation2 + $0x58] sm:$0xff]  ;;  %p3729_p1 = scmp.ne.s32.totalorder %s3165_s30, %s3728_s0  ;;  %p3733_p2 = scmp.lt.s32.totalorder %s3165_s30, %s3165_s30 }
  0x2d   :  { %v120_v19 = vadd.f32 %v119_v10, %v3805_v6  ;;  %v208_v22 = vadd.f32 %v169_v15, %v168_v11  ;;  %v172_v26 = vmul.f32 %v3809_v9, %v3809_v9  ;;  %v3837_v27 = vunpack.c.h.bf16 %v64_v12  ;;  %v74_v10 = vld [vmem:[#allocation2 + $0x78] sm:$0xff]  ;;  %p3734_p3 = scmp.lt.s32.totalorder %s3732_s2, %s3728_s0 }
  0x2e   :  { %v173_v28 = vmul.f32 %v3815_v13, %v3815_v13  ;;  %v174_v29 = vmul.f32 %v3817_v14, %v3817_v14  ;;  %v3843_v32 = vunpack.c.l.bf16 %v65_v20  ;;  %v175_v34 = vmul.f32 %v3823_v17, %v3823_v17 }
  0x2f   :  { %v121_v25 = vadd.f32 %v120_v19, %v3807_v8  ;;  %v209_v30 = vadd.f32 %v208_v22, %v170_v16  ;;  %v176_v35 = vmul.f32 %v3825_v18, %v3825_v18  ;;  %v3850_v37 = vunpack.c.h.bf16 %v65_v20  ;;  %p3735_p4 = por %p3734_p3, %p3733_p2 }
  0x30   :  { %v130_v40 = vadd.f32 %v3837_v27, %v3830_v23  ;;  %v178_v41 = vmul.f32 %v3830_v23, %v3830_v23  ;;  %v179_v42 = vmul.f32 %v3837_v27, %v3837_v27  ;;  %v177_v44 = vmul.f32 %v3832_v24, %v3832_v24 }
  0x31   :  { %v122_v33 = vadd.f32 %v121_v25, %v3809_v9  ;;  %v210_v38 = vadd.f32 %v209_v30, %v171_v21  ;;  %v3861_v45 = vunpack.c.l.bf16 %v66_v31  ;;  %v3863_v46 = vunpack.c.h.bf16 %v66_v31  ;;  %v71_v25 = vld [vmem:[#allocation2 + $0x60] sm:$0xff]  ;;  %p3736_p5 = pnand %p3735_p4, %p3729_p1 }
  0x32   :  { %v3865_v48 = vunpack.c.l.bf16 %v67_v36  ;;  %v131_v49 = vadd.f32 %v130_v40, %v3843_v32  ;;  %v180_v50 = vmul.f32 %v3843_v32, %v3843_v32  ;;  %v3871_v53 = vunpack.c.h.bf16 %v67_v36  ;;  %v75_v30 = vld [vmem:[#allocation2 + $0x80] sm:$0xff] }
  0x33   :  { %v123_v43 = vadd.f32 %v122_v33, %v3815_v13  ;;  %v211_v47 = vadd.f32 %v210_v38, %v172_v26  ;;  %v3873_v54 = vunpack.c.l.bf16 %v68_v39  ;;  %v3875_v55 = vunpack.c.h.bf16 %v68_v39  ;;  %v72_v38 = vld [vmem:[#allocation2 + $0x68] sm:$0xff]  ;;  %v73_v39 = vld [vmem:[#allocation2 + $0x70] sm:$0xff] }
  0x34   :  { %v132_v57 = vadd.f32 %v131_v49, %v3850_v37  ;;  %v181_v58 = vmul.f32 %v3850_v37, %v3850_v37  ;;  %v219_v59 = vadd.f32 %v179_v42, %v178_v41  ;;  %v182_v62 = vmul.f32 %v3861_v45, %v3861_v45 }
  0x35   :  { %v124_v52 = vadd.f32 %v123_v43, %v3817_v14  ;;  %v212_v56 = vadd.f32 %v211_v47, %v173_v28  ;;  %v3883_v63 = vunpack.c.l.bf16 %v69_v51  ;;  %v3885_v0 = vunpack.c.h.bf16 %v69_v51 }
  0x36   :  { %v133_v2 = vadd.f32 %v132_v57, %v3861_v45  ;;  %v183_v3 = vmul.f32 %v3863_v46, %v3863_v46  ;;  %v220_v7 = vadd.f32 %v219_v59, %v180_v50  ;;  %v184_v12 = vmul.f32 %v3865_v48, %v3865_v48  ;;  %v76_v59 = vld [vmem:[#allocation2 + $0x88] sm:$0xff] }
  0x37   :  { %v125_v61 = vadd.f32 %v124_v52, %v3823_v17  ;;  %v213_v1 = vadd.f32 %v212_v56, %v174_v29  ;;  %v185_v15 = vmul.f32 %v3871_v53, %v3871_v53  ;;  %v3895_v16 = vunpack.c.l.bf16 %v70_v60 }
  0x38   :  { %v134_v20 = vadd.f32 %v133_v2, %v3863_v46  ;;  %v186_v21 = vmul.f32 %v3873_v54, %v3873_v54  ;;  %v221_v22 = vadd.f32 %v220_v7, %v181_v58  ;;  %v3901_v28 = vunpack.c.h.bf16 %v70_v60  ;;  %v78_v7 = vld [vmem:[#allocation2 + $0x98] sm:$0xff] }
  0x39   :  { %v126_v11 = vadd.f32 %v125_v61, %v3825_v18  ;;  %5149 = vst [vmem:[#allocation12_spill] sm:$0xff] %v3895_v16  ;;  %v214_v19 = vadd.f32 %v213_v1, %v175_v34  ;;  %v141_v29 = vadd.f32 %v3885_v0, %v3883_v63  ;;  %v3905_v31 = vunpack.c.l.bf16 %v74_v10 }
  0x3a   :  { %v135_v34 = vadd.f32 %v134_v20, %v3865_v48  ;;  %v222_v36 = vadd.f32 %v221_v22, %v182_v62  ;;  %v3908_v40 = vunpack.c.h.bf16 %v74_v10  ;;  %v187_v41 = vmul.f32 %v3875_v55, %v3875_v55  ;;  %v77_v62 = vld [vmem:[#allocation2 + $0x90] sm:$0xff] }
  0x3b   :  { %v127_v26 = vadd.f32 %v126_v11, %v3832_v24  ;;  %5150 = vst [vmem:[#allocation13_spill] sm:$0xff] %v3905_v31  ;;  %v215_v33 = vadd.f32 %v214_v19, %v176_v35  ;;  %v3912_v42 = vunpack.c.l.bf16 %v71_v25  ;;  %v3914_v43 = vunpack.c.h.bf16 %v71_v25 }
  0x3c   :  { %5151 = vst [vmem:[#allocation14_spill] sm:$0xff] %v3908_v40  ;;  %v142_v47 = vadd.f32 %v141_v29, %v3895_v16  ;;  %v136_v35 = vadd.f32 %v135_v34, %v3871_v53  ;;  %v223_v50 = vadd.f32 %v222_v36, %v183_v3  ;;  %v3918_v51 = vunpack.c.l.bf16 %v75_v30 }
  0x3d   :  { %128 = vadd.xlane.f32.xlu0 %v127_v26  ;;  %5152 = vst [vmem:[#allocation15_spill] sm:$0xff] %v3912_v42  ;;  %5153 = vst [vmem:[#allocation16_spill] sm:$0xff] %v3914_v43  ;;  %v216_v49 = vadd.f32 %v215_v33, %v177_v44  ;;  %v3920_v52 = vunpack.c.l.bf16 %v72_v38  ;;  %v3922_v56 = vunpack.c.h.bf16 %v72_v38  ;;  %v3924_v57 = vunpack.c.l.bf16 %v73_v39 }
  0x3e   :  { %5154 = vst [vmem:[#allocation17_spill] sm:$0xff] %v3918_v51  ;;  %v143_v58 = vadd.f32 %v142_v47, %v3901_v28  ;;  %v137_v60 = vadd.f32 %v136_v35, %v3873_v54  ;;  %v224_v61 = vadd.f32 %v223_v50, %v184_v12  ;;  %v3928_v44 = vunpack.c.h.bf16 %v75_v30 }
  0x3f   :  { %5155 = vst [vmem:[#allocation18_spill] sm:$0xff] %v3920_v52  ;;  %5156 = vst [vmem:[#allocation19_spill] sm:$0xff] %v3922_v56  ;;  %217 = vadd.xlane.f32.xlu1 %v216_v49  ;;  %v152_v1 = vadd.f32 %v3908_v40, %v3905_v31  ;;  %v3932_v2 = vunpack.c.h.bf16 %v73_v39  ;;  %v188_v10 = vmul.f32 %v3883_v63, %v3883_v63  ;;  %v3940_v20 = vunpack.c.l.bf16 %v76_v59 }
  0x40   :  { %5157 = vst [vmem:[#allocation20_spill] sm:$0xff] %v3924_v57  ;;  %5158 = vst [vmem:[#allocation21_spill] sm:$0xff] %v3928_v44  ;;  %v144_v3 = vadd.f32 %v143_v58, %v3912_v42  ;;  %v189_v11 = vmul.f32 %v3885_v0, %v3885_v0  ;;  %v138_v19 = vadd.f32 %v137_v60, %v3875_v55  ;;  %v3944_v26 = vunpack.c.h.bf16 %v76_v59 }
  0x41   :  { %v225_v12 = vadd.f32 %v224_v61, %v185_v15  ;;  %5159 = vst [vmem:[#allocation22_spill] sm:$0xff] %v3940_v20  ;;  %v153_v22 = vadd.f32 %v152_v1, %v3918_v51  ;;  %v3946_v29 = vunpack.c.l.bf16 %v77_v62  ;;  %v190_v30 = vmul.f32 %v3895_v16, %v3895_v16  ;;  %v386_v1 = vld [vmem:[#allocation5 + $0x70] sm:$0xff] }
  0x42   :  { %v145_v25 = vadd.f32 %v144_v3, %v3914_v43  ;;  %139 = vadd.xlane.f32.xlu0 %v138_v19  ;;  %v3950_v34 = vunpack.c.h.bf16 %v77_v62  ;;  %v3952_v36 = vunpack.c.l.bf16 %v78_v7  ;;  %v3956_v39 = vunpack.c.h.bf16 %v78_v7  ;;  %v387_v3 = vld [vmem:[#allocation5 + $0x78] sm:$0xff]  ;;  %v418_v19 = vld [vmem:[#allocation5 + $0x170] sm:$0xff] }
  0x43   :  { %5160 = vst [vmem:[#allocation23_spill] sm:$0xff] %v3946_v29  ;;  %v226_v33 = vadd.f32 %v225_v12, %v186_v21  ;;  %v154_v15 = vadd.f32 %v153_v22, %v3928_v44  ;;  %v191_v47 = vmul.f32 %v3901_v28, %v3901_v28  ;;  %v230_v49 = vadd.f32 %v189_v11, %v188_v10  ;;  %v419_v12 = vld [vmem:[#allocation5 + $0x178] sm:$0xff] }
  0x44   :  { %5161 = vst [vmem:[#allocation24_spill] sm:$0xff] %v3952_v36  ;;  %v146_v38 = vadd.f32 %v145_v25, %v3920_v52  ;;  %5162 = vst [vmem:[#allocation25_spill] sm:$0xff] %v3956_v39  ;;  %v198_v21 = vmul.f32 %v3905_v31, %v3905_v31  ;;  %v199_v58 = vmul.f32 %v3908_v40, %v3908_v40  ;;  %v416_v31 = vld [vmem:[#allocation5 + $0x160] sm:$0xff]  ;;  %v417_v40 = vld [vmem:[#allocation5 + $0x168] sm:$0xff]  ;;  %vm2037_vm2 = vcmask 1042434  }
  0x45   :  { %v227_v35 = vadd.f32 %v226_v33, %v187_v41  ;;  %v155_v50 = vadd.f32 %v154_v15, %v3940_v20  ;;  %v192_v60 = vmul.f32 %v3912_v42, %v3912_v42  ;;  %v193_v61 = vmul.f32 %v3914_v43, %v3914_v43  ;;  %v384_v15 = vld [vmem:[#allocation5 + $0x60] sm:$0xff]  ;;  %v382_v43 = vld [vmem:[#allocation5 + $0x50] sm:$0xff] }
  0x46   :  { %v147_v59 = vadd.f32 %v146_v38, %v3922_v56  ;;  %v231_v62 = vadd.f32 %v230_v49, %v190_v30  ;;  %v194_v7 = vmul.f32 %v3920_v52, %v3920_v52  ;;  %v195_v10 = vmul.f32 %v3922_v56, %v3922_v56  ;;  %v385_v38 = vld [vmem:[#allocation5 + $0x68] sm:$0xff] }
  0x47   :  { %228 = vadd.xlane.f32.xlu1 %v227_v35  ;;  %v156_v41 = vadd.f32 %v155_v50, %v3944_v26  ;;  %v200_v11 = vmul.f32 %v3918_v51, %v3918_v51  ;;  %v196_v25 = vmul.f32 %v3924_v57, %v3924_v57  ;;  %v201_v33 = vmul.f32 %v3928_v44, %v3928_v44 }
  0x48   :  { %v148_v22 = vadd.f32 %v147_v59, %v3924_v57  ;;  %v232_v30 = vadd.f32 %v231_v62, %v191_v47  ;;  %v202_v35 = vmul.f32 %v3940_v20, %v3940_v20  ;;  %v241_v50 = vadd.f32 %v199_v58, %v198_v21  ;;  %v414_v20 = vld [vmem:[#allocation5 + $0x150] sm:$0xff] }
  0x49   :  { %v157_v49 = vadd.f32 %v156_v41, %v3946_v29  ;;  %v3191_v51 = vcombine.high %v386_v1, %v387_v3  ;;  %v3223_v42 = vcombine.high %v418_v19, %v419_v12  ;;  %v3190_v57 = vcombine.low %v386_v1, %v387_v3  ;;  %v383_v41 = vld [vmem:[#allocation5 + $0x58] sm:$0xff] }
  0x4a   :  { %v149_v59 = vadd.f32 %v148_v22, %v3932_v2  ;;  %v233_v52 = vadd.f32 %v232_v30, %v192_v60  ;;  %v242_v62 = vadd.f32 %v241_v50, %v200_v11  ;;  %v3222_v44 = vcombine.low %v418_v19, %v419_v12  ;;  %v415_v22 = vld [vmem:[#allocation5 + $0x158] sm:$0xff]  ;;  %v380_v30 = vld [vmem:[#allocation5 + $0x40] sm:$0xff] }
  0x4b   :  { %v158_v47 = vadd.f32 %v157_v49, %v3950_v34  ;;  %1344 = vmatprep.subr.bf16.mxu0 %v3191_v51  ;;  %v3189_v56 = vcombine.high %v384_v15, %v385_v38  ;;  %v203_v21 = vmul.f32 %v3944_v26, %v3944_v26  ;;  %1397 = vmatprep.subr.bf16.mxu1 %v3223_v42  ;;  %vm2039_vm3 = vcmask 1043459  }
  0x4c   :  { %150 = vadd.xlane.f32.xlu0 %v149_v59  ;;  %v234_v16 = vadd.f32 %v233_v52, %v193_v61  ;;  %v3221_v58 = vcombine.high %v416_v31, %v417_v40  ;;  %v243_v1 = vadd.f32 %v242_v62, %v201_v33  ;;  %1345 = vmatpush1.bf16.msra.mxu0 %v3190_v57  ;;  %v381_v57 = vld [vmem:[#allocation5 + $0x48] sm:$0xff]  ;;  %v378_v62 = vld [vmem:[#allocation5 + $0x30] sm:$0xff]  ;;  %vm2911_vm4 = vcmask 31744  }
  0x4d   :  { %v159_v60 = vadd.f32 %v158_v47, %v3952_v36  ;;  %1398 = vmatpush1.bf16.msra.mxu1 %v3222_v44  ;;  %v3188_v3 = vcombine.low %v384_v15, %v385_v38  ;;  %1346 = vmatprep.subr.bf16.mxu0 %v3189_v56  ;;  %v3220_v11 = vcombine.low %v416_v31, %v417_v40  ;;  %v412_v44 = vld [vmem:[#allocation5 + $0x140] sm:$0xff]  ;;  %v413_v15 = vld [vmem:[#allocation5 + $0x148] sm:$0xff]  ;;  %vm3154_vm5 = vcmask 24576  }
  0x4e   :  { %v235_v51 = vadd.f32 %v234_v16, %v194_v7  ;;  %1399 = vmatprep.subr.bf16.mxu1 %v3221_v58  ;;  %v3187_v19 = vcombine.high %v382_v43, %v383_v41  ;;  %v204_v61 = vmul.f32 %v3946_v29, %v3946_v29  ;;  %v244_v42 = vadd.f32 %v243_v1, %v202_v35  ;;  %v4002_v47 = vld [vmem:[%s5124_s3] sm:$0xf]  ;;  %v411_v58 = vld [vmem:[#allocation5 + $0x138] sm:$0xff] }
  0x4f   :  { %v160_v52 = vadd.f32 %v159_v60, %v3956_v39  ;;  %v3219_v12 = vcombine.high %v414_v20, %v415_v22  ;;  %v197_v49 = vmul.f32 %v3932_v2, %v3932_v2  ;;  %v205_v16 = vmul.f32 %v3950_v34, %v3950_v34 }
  0x50   :  { %v236_v33 = vadd.f32 %v235_v51, %v195_v10  ;;  %v245_v31 = vadd.f32 %v244_v42, %v203_v21  ;;  %1347 = vmatpush1.bf16.msra.mxu0 %v3188_v3  ;;  %v3186_v40 = vcombine.low %v382_v43, %v383_v41  ;;  %v3218_v7 = vcombine.low %v414_v20, %v415_v22  ;;  %v379_v43 = vld [vmem:[#allocation5 + $0x38] sm:$0xff]  ;;  %v410_v21 = vld [vmem:[#allocation5 + $0x130] sm:$0xff]  ;;  %v376_v51 = vld [vmem:[#allocation5 + $0x20] sm:$0xff] }
  0x51   :  { %161 = vadd.xlane.f32.xlu1 %v160_v52  ;;  %1400 = vmatpush1.bf16.msra.mxu1 %v3220_v11  ;;  %v206_v38 = vmul.f32 %v3952_v36, %v3952_v36  ;;  %v3185_v10 = vcombine.high %v380_v30, %v381_v57  ;;  %v3217_v50 = vcombine.high %v412_v44, %v413_v15  ;;  %v1611_v1 = vsel %vm1610_vm0, %v4002_v47, -inf  ;;  %v377_v11 = vld [vmem:[#allocation5 + $0x28] sm:$0xff]  ;;  %v408_v52 = vld [vmem:[#allocation5 + $0x120] sm:$0xff] }
  0x52   :  { %v237_v56 = vadd.f32 %v236_v33, %v196_v25  ;;  %1348 = vmatprep.subr.bf16.mxu0 %v3187_v19  ;;  %v246_v35 = vadd.f32 %v245_v31, %v204_v61  ;;  %1401 = vmatprep.subr.bf16.mxu1 %v3219_v12  ;;  %v207_v25 = vmul.f32 %v3956_v39, %v3956_v39  ;;  %v409_v61 = vld [vmem:[#allocation5 + $0x128] sm:$0xff] }
  0x53   :  { %v3184_v41 = vcombine.low %v380_v30, %v381_v57  ;;  %v3216_v22 = vcombine.low %v412_v44, %v413_v15  ;;  %v3183_v3 = vcombine.high %v378_v62, %v379_v43  ;;  %v3215_v19 = vcombine.high %v410_v21, %v411_v58  ;;  %v374_v57 = vld [vmem:[#allocation5 + $0x10] sm:$0xff]  ;;  %v375_v44 = vld [vmem:[#allocation5 + $0x18] sm:$0xff]  ;;  %v4157_v39 = vld [vmem:[#allocation5 + $0x228] sm:$0xff] }
  0x54   :  { %v238_v59 = vadd.f32 %v237_v56, %v197_v49  ;;  %v247_v20 = vadd.f32 %v246_v35, %v205_v16  ;;  %1349 = vmatpush1.bf16.msra.mxu0 %v3186_v40  ;;  %v3182_v12 = vcombine.low %v378_v62, %v379_v43  ;;  %v3214_v30 = vcombine.low %v410_v21, %v411_v58  ;;  %v406_v15 = vld [vmem:[#allocation5 + $0x110] sm:$0xff]  ;;  %v407_v16 = vld [vmem:[#allocation5 + $0x118] sm:$0xff]  ;;  %v373_v35 = vld [vmem:[#allocation5 + $0x8] sm:$0xff] }
  0x55   :  { %1402 = vmatpush1.bf16.msra.mxu1 %v3218_v7  ;;  %1350 = vmatprep.subr.bf16.mxu0 %v3185_v10  ;;  %v3181_v49 = vcombine.high %v376_v51, %v377_v11  ;;  %v3213_v33 = vcombine.high %v408_v52, %v409_v61  ;;  %v3180_v31 = vcombine.low %v376_v51, %v377_v11  ;;  %v404_v10 = vld [vmem:[#allocation5 + $0x100] sm:$0xff]  ;;  %v434_v21 = vld [vmem:[#allocation5 + $0x1f0] sm:$0xff]  ;;  %v435_v58 = vld [vmem:[#allocation5 + $0x1f8] sm:$0xff] }
  0x56   :  { %239 = vadd.xlane.f32.xlu0 %v238_v59  ;;  %v248_v60 = vadd.f32 %v247_v20, %v206_v38  ;;  %1403 = vmatprep.subr.bf16.mxu1 %v3217_v50  ;;  %v3212_v40 = vcombine.low %v408_v52, %v409_v61  ;;  %v3179_v56 = vcombine.high %v374_v57, %v375_v44  ;;  %v372_v38 = vld [vmem:[#allocation5] sm:$0xff]  ;;  %v405_v50 = vld [vmem:[#allocation5 + $0x108] sm:$0xff]  ;;  %v402_v20 = vld [vmem:[#allocation5 + $0xf0] sm:$0xff] }
  0x57   :  { %v3211_v7 = vcombine.high %v406_v15, %v407_v16  ;;  %v3178_v59 = vcombine.low %v374_v57, %v375_v44  ;;  %v3210_v62 = vcombine.low %v406_v15, %v407_v16  ;;  %v3177_v43 = vcombine.high %v372_v38, %v373_v35  ;;  %v400_v51 = vld [vmem:[#allocation5 + $0xe0] sm:$0xff]  ;;  %v401_v11 = vld [vmem:[#allocation5 + $0xe8] sm:$0xff]  ;;  %v430_v57 = vld [vmem:[#allocation5 + $0x1d0] sm:$0xff] }
  0x58   :  { %v249_v42 = vadd.f32 %v248_v60, %v207_v25  ;;  %1351 = vmatpush1.bf16.msra.mxu0 %v3184_v41  ;;  %v3209_v25 = vcombine.high %v404_v10, %v405_v50  ;;  %v403_v41 = vld [vmem:[#allocation5 + $0xf8] sm:$0xff]  ;;  %v3208_v60 = vcombine.low %v404_v10, %v405_v50  ;;  %v433_v52 = vld [vmem:[#allocation5 + $0x1e8] sm:$0xff]  ;;  %v3204_v15 = vcombine.low %v400_v51, %v401_v11 }
  0x59   :  { %1404 = vmatpush1.bf16.msra.mxu1 %v3216_v22  ;;  %1352 = vmatprep.subr.bf16.mxu0 %v3183_v3  ;;  %v3176_v22 = vcombine.low %v372_v38, %v373_v35  ;;  %v3239_v3 = vcombine.high %v434_v21, %v435_v58  ;;  %v3206_v61 = vcombine.low %v402_v20, %v403_v41  ;;  %v431_v44 = vld [vmem:[#allocation5 + $0x1d8] sm:$0xff]  ;;  %v428_v38 = vld [vmem:[#allocation5 + $0x1c0] sm:$0xff]  ;;  %v429_v35 = vld [vmem:[#allocation5 + $0x1c8] sm:$0xff] }
  0x5a   :  { %1612 = vmax.xlane.f32.xlu0 %v1611_v1  ;;  %250 = vadd.xlane.f32.xlu1 %v249_v42  ;;  %v3207_v1 = vcombine.high %v402_v20, %v403_v41  ;;  %v3238_v42 = vcombine.low %v434_v21, %v435_v58  ;;  %v3234_v50 = vcombine.low %v430_v57, %v431_v44  ;;  %v426_v20 = vld [vmem:[#allocation5 + $0x1b0] sm:$0xff]  ;;  %v427_v41 = vld [vmem:[#allocation5 + $0x1b8] sm:$0xff] }
  0x5b   :  { %1405 = vmatprep.subr.bf16.mxu1 %v3215_v19  ;;  %v432_v19 = vld [vmem:[#allocation5 + $0x1e0] sm:$0xff]  ;;  %v3232_v58 = vcombine.low %v428_v38, %v429_v35 }
  0x5c   :  { %1353 = vmatpush1.bf16.msra.mxu0 %v3182_v12  ;;  %v3205_v12 = vcombine.high %v400_v51, %v401_v11  ;;  %v3236_v16 = vcombine.low %v432_v19, %v433_v52  ;;  %v424_v51 = vld [vmem:[#allocation5 + $0x1a0] sm:$0xff]  ;;  %v425_v11 = vld [vmem:[#allocation5 + $0x1a8] sm:$0xff] }
  0x5d   :  { %1406 = vmatpush1.bf16.msra.mxu1 %v3214_v30  ;;  %1354 = vmatprep.subr.bf16.mxu0 %v3181_v49  ;;  %v3237_v30 = vcombine.high %v432_v19, %v433_v52  ;;  %v398_v49 = vld [vmem:[#allocation5 + $0xd0] sm:$0xff]  ;;  %v3230_v52 = vcombine.low %v426_v20, %v427_v41 }
  0x5e   :  { %1407 = vmatprep.subr.bf16.mxu1 %v3213_v33  ;;  %v399_v33 = vld [vmem:[#allocation5 + $0xd8] sm:$0xff] }
  0x5f   :  { %v3202_v10 = vcombine.low %v398_v49, %v399_v33 }
  0x60   :  { %1355 = vmatpush1.bf16.msra.mxu0 %v3180_v31  ;;  %v3203_v31 = vcombine.high %v398_v49, %v399_v33  ;;  %v422_v49 = vld [vmem:[#allocation5 + $0x190] sm:$0xff]  ;;  %v423_v33 = vld [vmem:[#allocation5 + $0x198] sm:$0xff] }
  0x61   :  { %1408 = vmatpush1.bf16.msra.mxu1 %v3212_v40  ;;  %1356 = vmatprep.subr.bf16.mxu0 %v3179_v56  ;;  %v3235_v40 = vcombine.high %v430_v57, %v431_v44  ;;  %v396_v56 = vld [vmem:[#allocation5 + $0xc0] sm:$0xff]  ;;  %v3228_v44 = vcombine.low %v424_v51, %v425_v11 }
  0x62   :  { %1409 = vmatprep.subr.bf16.mxu1 %v3211_v7  ;;  %v397_v7 = vld [vmem:[#allocation5 + $0xc8] sm:$0xff] }
  0x63   :  { %v3200_v21 = vcombine.low %v396_v56, %v397_v7 }
  0x64   :  { %1357 = vmatpush1.bf16.msra.mxu0 %v3178_v59  ;;  %v3201_v59 = vcombine.high %v396_v56, %v397_v7  ;;  %v420_v56 = vld [vmem:[#allocation5 + $0x180] sm:$0xff]  ;;  %v421_v7 = vld [vmem:[#allocation5 + $0x188] sm:$0xff] }
  0x65   :  { %1410 = vmatpush1.bf16.msra.mxu1 %v3210_v62  ;;  %1358 = vmatprep.subr.bf16.mxu0 %v3177_v43  ;;  %v3233_v62 = vcombine.high %v428_v38, %v429_v35  ;;  %v394_v43 = vld [vmem:[#allocation5 + $0xb0] sm:$0xff]  ;;  %v3226_v35 = vcombine.low %v422_v49, %v423_v33 }
  0x66   :  { %1411 = vmatprep.subr.bf16.mxu1 %v3209_v25  ;;  %v395_v25 = vld [vmem:[#allocation5 + $0xb8] sm:$0xff] }
  0x67   :  { %v3198_v19 = vcombine.low %v394_v43, %v395_v25 }
  0x68   :  { %1359 = vmatpush1.bf16.msra.mxu0 %v3176_v22  ;;  %v3199_v22 = vcombine.high %v394_v43, %v395_v25  ;;  %v4012_v43 = vld [vmem:[#allocation5 + $0x370] sm:$0xff]  ;;  %v4014_v25 = vld [vmem:[#allocation5 + $0x378] sm:$0xff] }
  0x69   :  { %1412 = vmatpush1.bf16.msra.mxu1 %v3208_v60  ;;  %1360 = vmatprep.subr.bf16.mxu0 %v3207_v1  ;;  %v3231_v60 = vcombine.high %v426_v20, %v427_v41  ;;  %v392_v1 = vld [vmem:[#allocation5 + $0xa0] sm:$0xff]  ;;  %v3224_v41 = vcombine.low %v420_v56, %v421_v7 }
  0x6a   :  { %1413 = vmatprep.subr.bf16.mxu1 %v3239_v3  ;;  %v393_v3 = vld [vmem:[#allocation5 + $0xa8] sm:$0xff] }
  0x6b   :  { %v3196_v57 = vcombine.low %v392_v1, %v393_v3 }
  0x6c   :  { %1361 = vmatpush2.bf16.msra.mxu0 %v3206_v61  ;;  %v3197_v61 = vcombine.high %v392_v1, %v393_v3 }
  0x6d   :  { %1414 = vmatpush2.bf16.msra.mxu1 %v3238_v42  ;;  %1362 = vmatprep.subr.bf16.mxu0 %v3205_v12  ;;  %v3229_v42 = vcombine.high %v424_v51, %v425_v11  ;;  %v390_v12 = vld [vmem:[#allocation5 + $0x90] sm:$0xff] }
  0x6e   :  { %1415 = vmatprep.subr.bf16.mxu1 %v3237_v30  ;;  %v391_v30 = vld [vmem:[#allocation5 + $0x98] sm:$0xff] }
  0x6f   :  { %v3194_v38 = vcombine.low %v390_v12, %v391_v30 }
  0x70   :  { %1363 = vmatpush2.bf16.msra.mxu0 %v3204_v15  ;;  %v3195_v15 = vcombine.high %v390_v12, %v391_v30 }
  0x71   :  { %1416 = vmatpush2.bf16.msra.mxu1 %v3236_v16  ;;  %1364 = vmatprep.subr.bf16.mxu0 %v3203_v31  ;;  %v3227_v16 = vcombine.high %v422_v49, %v423_v33  ;;  %v388_v31 = vld [vmem:[#allocation5 + $0x80] sm:$0xff] }
  0x72   :  { %1417 = vmatprep.subr.bf16.mxu1 %v3235_v40  ;;  %v389_v40 = vld [vmem:[#allocation5 + $0x88] sm:$0xff] }
  0x73   :  { %v3192_v20 = vcombine.low %v388_v31, %v389_v40 }
  0x74   :  { %1365 = vmatpush2.bf16.msra.mxu0 %v3202_v10  ;;  %v3193_v10 = vcombine.high %v388_v31, %v389_v40  ;;  %v4036_v31 = vld [vmem:[#allocation5 + $0x250] sm:$0xff]  ;;  %v4038_v40 = vld [vmem:[#allocation5 + $0x258] sm:$0xff] }
  0x75   :  { %1418 = vmatpush2.bf16.msra.mxu1 %v3234_v50  ;;  %1366 = vmatprep.subr.bf16.mxu0 %v3201_v59  ;;  %v3225_v50 = vcombine.high %v420_v56, %v421_v7  ;;  %v4008_v59 = vld [vmem:[#allocation5 + $0x270] sm:$0xff]  ;;  %v4042_v7 = vld [vmem:[#allocation5 + $0x358] sm:$0xff] }
  0x76   :  { %1419 = vmatprep.subr.bf16.mxu1 %v3233_v62  ;;  %v4010_v62 = vld [vmem:[#allocation5 + $0x278] sm:$0xff]  ;;  %v4040_v56 = vld [vmem:[#allocation5 + $0x350] sm:$0xff] }
  0x78   :  { %1367 = vmatpush2.bf16.msra.mxu0 %v3200_v21  ;;  %v3255_v21 = vcombine.high %v4008_v59, %v4010_v62 }
  0x79   :  { %1420 = vmatpush2.bf16.msra.mxu1 %v3232_v58  ;;  %1368 = vmatprep.subr.bf16.mxu0 %v3199_v22  ;;  %v3287_v58 = vcombine.high %v4012_v43, %v4014_v25 }
  0x7a   :  { %1421 = vmatprep.subr.bf16.mxu1 %v3231_v60 }
  0x7c   :  { %1369 = vmatpush2.bf16.msra.mxu0 %v3198_v19 }
  0x7d   :  { %1422 = vmatpush2.bf16.msra.mxu1 %v3230_v52  ;;  %1370 = vmatprep.subr.bf16.mxu0 %v3197_v61 }
  0x7e   :  { %1423 = vmatprep.subr.bf16.mxu1 %v3229_v42 }
  0x80   :  { %1371 = vmatpush2.bf16.msra.mxu0 %v3196_v57  ;;  %v4028_v57 = vld [vmem:[#allocation5 + $0x260] sm:$0xff] }
  0x81   :  { %1424 = vmatpush2.bf16.msra.mxu1 %v3228_v44  ;;  %1372 = vmatprep.subr.bf16.mxu0 %v3195_v15  ;;  %v4030_v44 = vld [vmem:[#allocation5 + $0x268] sm:$0xff]  ;;  %v4032_v15 = vld [vmem:[#allocation5 + $0x360] sm:$0xff] }
  0x82   :  { %1425 = vmatprep.subr.bf16.mxu1 %v3227_v16  ;;  %v4034_v16 = vld [vmem:[#allocation5 + $0x368] sm:$0xff] }
  0x84   :  { %1373 = vmatpush2.bf16.msra.mxu0 %v3194_v38  ;;  %v4044_v38 = vld [vmem:[#allocation5 + $0x240] sm:$0xff] }
  0x85   :  { %1426 = vmatpush2.bf16.msra.mxu1 %v3226_v35  ;;  %1374 = vmatprep.subr.bf16.mxu0 %v3193_v10 }
  0x86   :  { %1427 = vmatprep.subr.bf16.mxu1 %v3225_v50 }
  0x88   :  { %1375 = vmatpush2.bf16.msra.mxu0 %v3192_v20  ;;  %v4050_v20 = vld [vmem:[#allocation5 + $0x248] sm:$0xff] }
  0x89   :  { %1428 = vmatpush2.bf16.msra.mxu1 %v3224_v41  ;;  %1450 = vmatprep.subr.bf16.mxu0 %v3255_v21  ;;  %v4052_v41 = vld [vmem:[#allocation5 + $0x340] sm:$0xff]  ;;  %v4054_v21 = vld [vmem:[#allocation5 + $0x348] sm:$0xff] }
  0x8a   :  { %1503 = vmatprep.subr.bf16.mxu1 %v3287_v58  ;;  %5163 = vst [vmem:[#allocation26_spill] sm:$0xff] %v4052_v41  ;;  %5164 = vst [vmem:[#allocation27_spill] sm:$0xff] %v4054_v21  ;;  %v4149_v21 = vld [vmem:[#allocation5 + $0x330] sm:$0xff] }
  0xc6   :  { %v129_v22 = vpop.xlane.xlu0 %128 }
  0xc7   :  { %v4020_v60 = vmul.f32 0.00078125, %v129_v22 }
  0xc8   :  { %v218_v1 = vpop.xlane.xlu1 %217 }
  0xc9   :  { %v256_v3 = vmul.f32 %v4020_v60, %v4020_v60  ;;  %v252_v51 = vmul.f32 0.00078125, %v218_v1  ;;  %v273_v22 = vsub.f32 %v3832_v24, %v4020_v60 }
  0xcb   :  { %v260_v11 = vsub.f32 %v252_v51, %v256_v3  ;;  %v140_v19 = vpop.xlane.xlu0 %139  ;;  %v4064_v51 = vld [vmem:[#allocation5 + $0x230] sm:$0xff] }
  0xcc   :  { %v4024_v61 = vmul.f32 0.00078125, %v140_v19  ;;  %5165 = vst [vmem:[#allocation28_spill] sm:$0xff] %v4064_v51  ;;  %v264_v19 = vsub.f32 %v3801_v4, %v4020_v60 }
  0xcd   :  { %v304_v52 = vadd.f32 1e-05, %v260_v11  ;;  %v4066_v11 = vld [vmem:[#allocation5 + $0x238] sm:$0xff] }
  0xce   :  { %v257_v42 = vmul.f32 %v4024_v61, %v4024_v61  ;;  %5166 = vst [vmem:[#allocation29_spill] sm:$0xff] %v4066_v11  ;;  %v277_v4 = vsub.f32 %v3850_v37, %v4024_v61 }
  0xcf   :  { %3506 = vrsqrt.f32 %v304_v52  ;;  %v267_v52 = vsub.f32 %v3807_v8, %v4020_v60 }
  0xd0   :  { %v229_v12 = vpop.xlane.xlu1 %228 }
  0xd1   :  { %v253_v30 = vmul.f32 0.00078125, %v229_v12 }
  0xd3   :  { %v261_v49 = vsub.f32 %v253_v30, %v257_v42  ;;  %v270_v42 = vsub.f32 %v3817_v14, %v4020_v60  ;;  %v272_v14 = vsub.f32 %v3825_v18, %v4020_v60  ;;  %v280_v18 = vsub.f32 %v3865_v48, %v4024_v61 }
  0xd5   :  { %v305_v33 = vadd.f32 1e-05, %v261_v49  ;;  %v151_v35 = vpop.xlane.xlu0 %150  ;;  %v268_v49 = vsub.f32 %v3809_v9, %v4020_v60 }
  0xd6   :  { %v4056_v58 = vmul.f32 0.00078125, %v151_v35  ;;  %v265_v35 = vsub.f32 %v3803_v5, %v4020_v60  ;;  %v266_v5 = vsub.f32 %v3805_v6, %v4020_v60  ;;  %v276_v6 = vsub.f32 %v3843_v32, %v4024_v61 }
  0xd7   :  { %3508 = vrsqrt.f32 %v305_v33 }
  0xd8   :  { %v258_v33 = vmul.f32 %v4056_v58, %v4056_v58 }
  0xda   :  { %v162_v3 = vpop.xlane.xlu1 %161 }
  0xdb   :  { %v4102_v12 = vmul.f32 0.00078125, %v162_v3  ;;  %v275_v3 = vsub.f32 %v3837_v27, %v4024_v61 }
  0xdc   :  { %v4076_v30 = vpop.eup %3506 }
  0xdd   :  { %v4107_v9 = vmul.f32 %v4076_v30, %v268_v49  ;;  %v4114_v8 = vmul.f32 %v4076_v30, %v270_v42  ;;  %v274_v49 = vsub.f32 %v3830_v23, %v4024_v61  ;;  %v4125_v24 = vmul.f32 %v4076_v30, %v273_v22 }
  0xde   :  { %v278_v42 = vsub.f32 %v3861_v45, %v4024_v61  ;;  %v259_v27 = vmul.f32 %v4102_v12, %v4102_v12  ;;  %v313_v10 = vmul.f32 %v4076_v30, %v265_v35  ;;  %v283_v23 = vsub.f32 %v3875_v55, %v4024_v61 }
  0xdf   :  { %v240_v1 = vpop.xlane.xlu0 %239  ;;  %v315_v48 = vmul.f32 %v4076_v30, %v267_v52  ;;  %v312_v11 = vmul.f32 %v4076_v30, %v264_v19  ;;  %v314_v41 = vmul.f32 %v4076_v30, %v266_v5  ;;  %v4155_v52 = vld [vmem:[#allocation5 + $0x220] sm:$0xff] }
  0xe0   :  { %v254_v50 = vmul.f32 0.00078125, %v240_v1 }
  0xe2   :  { %v262_v1 = vsub.f32 %v254_v50, %v258_v33  ;;  %v4139_v50 = vmul.f32 %v4076_v30, %v272_v14  ;;  %v4151_v14 = vld [vmem:[#allocation5 + $0x338] sm:$0xff] }
  0xe3   :  { %v1613_v37 = vpop.xlane.xlu0 %1612  ;;  %v251_v33 = vpop.xlane.xlu1 %250  ;;  %v3278_v5 = vcombine.low %v4149_v21, %v4151_v14 }
  0xe4   :  { %v4141_v22 = vpop.eup %3508  ;;  %v306_v32 = vadd.f32 1e-05, %v262_v1  ;;  %v1614_v45 = vsub.f32 %v4002_v47, %v1613_v37  ;;  %v255_v51 = vmul.f32 0.00078125, %v251_v33 }
  0xe5   :  { %v323_v36 = vmul.f32 %v4141_v22, %v275_v3  ;;  %v325_v35 = vmul.f32 %v4141_v22, %v277_v4  ;;  %v322_v55 = vmul.f32 %v4141_v22, %v274_v49  ;;  %v324_v47 = vmul.f32 %v4141_v22, %v276_v6  ;;  %v4159_v4 = vld [vmem:[#allocation5 + $0x320] sm:$0xff]  ;;  %v4161_v49 = vld [vmem:[#allocation5 + $0x328] sm:$0xff] }
  0xe6   :  { %3510 = vrsqrt.f32 %v306_v32  ;;  %v1615_v1 = vmul.f32 1.442695, %v1614_v45  ;;  %v263_v19 = vsub.f32 %v255_v51, %v259_v27  ;;  %v3279_v32 = vcombine.high %v4149_v21, %v4151_v14  ;;  %v4180_v27 = vld [vmem:[#allocation5 + $0x210] sm:$0xff]  ;;  %v4182_v45 = vld [vmem:[#allocation5 + $0x218] sm:$0xff] }
  0xe7   :  { %v353_v37 = vpack.c.bf16 %v323_v36, %v313_v10  ;;  %v355_v33 = vpack.c.bf16 %v325_v35, %v315_v48  ;;  %v352_v3 = vpack.c.bf16 %v322_v55, %v312_v11  ;;  %v354_v29 = vpack.c.bf16 %v324_v47, %v314_v41 }
  0xe8   :  { %3512 = vpow2.f32 %v1615_v1  ;;  %v307_v6 = vadd.f32 1e-05, %v263_v19  ;;  %v4168_v36 = vmul.f32 %v4141_v22, %v278_v42  ;;  %v4171_v10 = vmul.f32 %v4141_v22, %v280_v18 }
  0xe9   :  { %1376 = vmatprep.mubr.bf16.mxu0 %v353_v37  ;;  %1429 = vmatprep.mubr.bf16.mxu1 %v355_v33  ;;  %v4174_v51 = vmul.f32 %v4141_v22, %v283_v23  ;;  %v3245_v41 = vcombine.high %v4155_v52, %v4157_v39  ;;  %v3277_v11 = vcombine.high %v4159_v4, %v4161_v49 }
  0xea   :  { %1377 = vmatmul.mubr.bf16.vlgmr.msra.gmra.mxu0 %v352_v3  ;;  %1430 = vmatmul.mubr.bf16.vlgmr.msra.gmra.mxu1 %v354_v29  ;;  %v282_v42 = vsub.f32 %v3873_v54, %v4024_v61  ;;  %3514 = vrsqrt.f32 %v307_v6  ;;  %v5167_v18 = vcombine.low %v4008_v59, %v4010_v62  ;;  %v5168_v29 = vcombine.low %v4012_v43, %v4014_v25  ;;  %v5174_v6 = vld [vmem:[#allocation16_spill] sm:$0xff] }
  0xeb   :  { %v5169_v54 = vcombine.high %v4028_v57, %v4030_v44  ;;  %v5170_v59 = vcombine.high %v4032_v15, %v4034_v16  ;;  %v3244_v62 = vcombine.low %v4155_v52, %v4157_v39  ;;  %v3276_v43 = vcombine.low %v4159_v4, %v4161_v49  ;;  %v499_v39 = vld [vmem:[#allocation5 + $0x3f8] sm:$0xff]  ;;  %v464_v49 = vld [vmem:[#allocation5 + $0x2e0] sm:$0xff] }
  0xec   :  { %1451 = vmatpush1.bf16.msra.mxu0 %v5167_v18  ;;  %1504 = vmatpush1.bf16.msra.mxu1 %v5168_v29  ;;  %v4209_v25 = vmul.f32 %v4141_v22, %v282_v42  ;;  %v269_v55 = vsub.f32 %v3815_v13, %v4020_v60  ;;  %v279_v1 = vsub.f32 %v3863_v46, %v4024_v61  ;;  %v5179_v42 = vld [vmem:[#allocation18_spill] sm:$0xff] }
  0xed   :  { %1452 = vmatprep.subr.bf16.mxu0 %v5169_v54  ;;  %1505 = vmatprep.subr.bf16.mxu1 %v5170_v59  ;;  %v271_v47 = vsub.f32 %v3823_v17, %v4020_v60  ;;  %v285_v37 = vsub.f32 %v3885_v0, %v4056_v58  ;;  %v287_v33 = vsub.f32 %v3901_v28, %v4056_v58  ;;  %v5173_v60 = vld [vmem:[#allocation12_spill] sm:$0xff]  ;;  %v5180_v29 = vld [vmem:[#allocation14_spill] sm:$0xff] }
  0xee   :  { %v281_v3 = vsub.f32 %v3871_v53, %v4024_v61  ;;  %v5171_v46 = vcombine.low %v4028_v57, %v4030_v44  ;;  %v5172_v17 = vcombine.low %v4032_v15, %v4034_v16  ;;  %v284_v0 = vsub.f32 %v3883_v63, %v4056_v58  ;;  %v5177_v44 = vld [vmem:[#allocation19_spill] sm:$0xff] }
  0xef   :  { %v286_v28 = vsub.f32 %v5173_v60, %v4056_v58  ;;  %v289_v53 = vsub.f32 %v5174_v6, %v4056_v58  ;;  %v5175_v61 = vcombine.high %v4036_v31, %v4038_v40  ;;  %v5176_v57 = vcombine.high %v4040_v56, %v4042_v7  ;;  %v5178_v16 = vld [vmem:[#allocation15_spill] sm:$0xff]  ;;  %v5182_v6 = vld [vmem:[#allocation21_spill] sm:$0xff] }
  0xf0   :  { %1453 = vmatpush1.bf16.msra.mxu0 %v5171_v46  ;;  %1506 = vmatpush1.bf16.msra.mxu1 %v5172_v17  ;;  %v291_v15 = vsub.f32 %v5177_v44, %v4056_v58  ;;  %v288_v63 = vsub.f32 %v5178_v16, %v4056_v58  ;;  %v290_v18 = vsub.f32 %v5179_v42, %v4056_v58  ;;  %v5181_v17 = vld [vmem:[#allocation20_spill] sm:$0xff]  ;;  %v5184_v16 = vld [vmem:[#allocation17_spill] sm:$0xff] }
  0xf1   :  { %1454 = vmatprep.subr.bf16.mxu0 %v5175_v61  ;;  %1507 = vmatprep.subr.bf16.mxu1 %v5176_v57  ;;  %v295_v54 = vsub.f32 %v5180_v29, %v4102_v12  ;;  %v4254_v59 = vmul.f32 %v4141_v22, %v279_v1  ;;  %v293_v46 = vsub.f32 %v3932_v2, %v4056_v58  ;;  %v5183_v57 = vld [vmem:[#allocation13_spill] sm:$0xff] }
  0xf2   :  { %v292_v60 = vsub.f32 %v5181_v17, %v4056_v58  ;;  %v297_v61 = vsub.f32 %v5182_v6, %v4102_v12  ;;  %v294_v44 = vsub.f32 %v5183_v57, %v4102_v12  ;;  %v296_v42 = vsub.f32 %v5184_v16, %v4102_v12 }
  0xf3   :  { %v4267_v29 = vmul.f32 %v4076_v30, %v269_v55  ;;  %v3511_v1 = vpop.eup %3510  ;;  %v5185_v13 = vcombine.low %v4036_v31, %v4038_v40  ;;  %v5186_v2 = vcombine.low %v4040_v56, %v4042_v7  ;;  %v319_v58 = vmul.f32 %v4076_v30, %v271_v47  ;;  %v5188_v31 = vld [vmem:[#allocation22_spill] sm:$0xff]  ;;  %v5189_v56 = vld [vmem:[#allocation23_spill] sm:$0xff]  ;;  %v5190_v30 = vld [vmem:[#allocation25_spill] sm:$0xff] }
  0xf4   :  { %v299_v17 = vsub.f32 %v3944_v26, %v4102_v12  ;;  %v301_v6 = vsub.f32 %v3950_v34, %v4102_v12  ;;  %v329_v55 = vmul.f32 %v4141_v22, %v281_v3  ;;  %v5187_v57 = vcombine.high %v4044_v38, %v4050_v20  ;;  %v5191_v34 = vld [vmem:[#allocation26_spill] sm:$0xff]  ;;  %v5192_v22 = vld [vmem:[#allocation27_spill] sm:$0xff] }
  0xf5   :  { %1455 = vmatpush1.bf16.msra.mxu0 %v5185_v13  ;;  %1508 = vmatpush1.bf16.msra.mxu1 %v5186_v2  ;;  %v298_v40 = vsub.f32 %v5188_v31, %v4102_v12  ;;  %v300_v7 = vsub.f32 %v5189_v56, %v4102_v12  ;;  %v303_v47 = vsub.f32 %v5190_v30, %v4102_v12  ;;  %v4290_v13 = vpop.eup %3512 }
  0xf6   :  { %1456 = vmatprep.subr.bf16.mxu0 %v5187_v57  ;;  %v357_v26 = vpack.c.bf16 %v4254_v59, %v4267_v29  ;;  %v5193_v3 = vcombine.high %v5191_v34, %v5192_v22  ;;  %v4297_v16 = vmul.f32 %v3511_v1, %v288_v63  ;;  %v4299_v2 = vmul.f32 %v3511_v1, %v290_v18  ;;  %v5194_v57 = vld [vmem:[#allocation24_spill] sm:$0xff] }
  0xf7   :  { %v302_v31 = vsub.f32 %v5194_v57, %v4102_v12  ;;  %v1617_v56 = vsel %vm1610_vm0, %v4290_v13, 0.0  ;;  %v333_v30 = vmul.f32 %v3511_v1, %v285_v37  ;;  %v4305_v35 = vmul.f32 %v3511_v1, %v293_v46  ;;  %v3515_v18 = vpop.eup %3514  ;;  %v5197_v57 = vld [vmem:[#allocation28_spill] sm:$0xff]  ;;  %v5198_v37 = vld [vmem:[#allocation29_spill] sm:$0xff] }
  0xf8   :  { %1509 = vmatprep.subr.bf16.mxu1 %v5193_v3  ;;  %v4307_v48 = vmul.f32 %v3511_v1, %v292_v60  ;;  %1618 = vadd.xlane.f32.xlu1 %v1617_v56  ;;  %v335_v59 = vmul.f32 %v3511_v1, %v287_v33  ;;  %v332_v29 = vmul.f32 %v3511_v1, %v284_v0 }
  0xf9   :  { %v334_v23 = vmul.f32 %v3511_v1, %v286_v28  ;;  %v5195_v63 = vcombine.low %v4044_v38, %v4050_v20  ;;  %v359_v3 = vpack.c.bf16 %v329_v55, %v319_v58  ;;  %v5196_v12 = vcombine.low %v5191_v34, %v5192_v22 }
  0xfa   :  { %v5199_v46 = vcombine.high %v5197_v57, %v5198_v37  ;;  %v4318_v60 = vmul.f32 %v3511_v1, %v289_v53  ;;  %v4320_v56 = vmul.f32 %v3511_v1, %v291_v15  ;;  %v343_v33 = vmul.f32 %v3515_v18, %v295_v54 }
  0xfb   :  { %1457 = vmatpush1.bf16.msra.mxu0 %v5195_v63  ;;  %1510 = vmatpush1.bf16.msra.mxu1 %v5196_v12  ;;  %v345_v0 = vmul.f32 %v3515_v18, %v297_v61  ;;  %v342_v28 = vmul.f32 %v3515_v18, %v294_v44  ;;  %v344_v19 = vmul.f32 %v3515_v18, %v296_v42  ;;  %v470_v61 = vld [vmem:[#allocation5 + $0x310] sm:$0xff]  ;;  %v471_v44 = vld [vmem:[#allocation5 + $0x318] sm:$0xff] }
  0xfc   :  { %1458 = vmatprep.subr.bf16.mxu0 %v5199_v46  ;;  %1511 = vmatprep.subr.bf16.mxu1 %v3279_v32  ;;  %v4325_v38 = vmul.f32 %v3515_v18, %v299_v17  ;;  %v4327_v20 = vmul.f32 %v3515_v18, %v301_v6  ;;  %v4329_v58 = vmul.f32 %v3515_v18, %v298_v40  ;;  %v437_v17 = vld [vmem:[#allocation5 + $0x208] sm:$0xff]  ;;  %v468_v6 = vld [vmem:[#allocation5 + $0x300] sm:$0xff]  ;;  %v498_v63 = vld [vmem:[#allocation5 + $0x3f0] sm:$0xff] }
  0xfd   :  { %v4331_v55 = vmul.f32 %v3515_v18, %v300_v7  ;;  %v363_v53 = vpack.c.bf16 %v343_v33, %v333_v30  ;;  %v365_v34 = vpack.c.bf16 %v345_v0, %v335_v59  ;;  %v362_v15 = vpack.c.bf16 %v342_v28, %v332_v29  ;;  %v469_v40 = vld [vmem:[#allocation5 + $0x308] sm:$0xff]  ;;  %v467_v29 = vld [vmem:[#allocation5 + $0x2f8] sm:$0xff]  ;;  %v462_v33 = vld [vmem:[#allocation5 + $0x2d0] sm:$0xff] }
  0xfe   :  { %v364_v1 = vpack.c.bf16 %v344_v19, %v334_v23  ;;  %v5200_v54 = vcombine.low %v5197_v57, %v5198_v37  ;;  %v367_v32 = vpack.c.bf16 %v4325_v38, %v4318_v60  ;;  %v369_v23 = vpack.c.bf16 %v4327_v20, %v4320_v56  ;;  %v463_v0 = vld [vmem:[#allocation5 + $0x2d8] sm:$0xff]  ;;  %v494_v28 = vld [vmem:[#allocation5 + $0x3d0] sm:$0xff]  ;;  %v504_v20 = vld [vmem:[#allocation5 + $0x420] sm:$0xff] }
  0xff   :  { %1512 = vmatpush1.bf16.msra.mxu1 %v3278_v5  ;;  %v366_v19 = vpack.c.bf16 %v4329_v58, %v4297_v16  ;;  %1386 = vmatprep.mubr.bf16.mxu0 %v363_v53  ;;  %v368_v42 = vpack.c.bf16 %v4331_v55, %v4299_v2  ;;  %v4350_v21 = vmul.f32 %v3515_v18, %v303_v47  ;;  %v495_v53 = vld [vmem:[#allocation5 + $0x3d8] sm:$0xff]  ;;  %v502_v58 = vld [vmem:[#allocation5 + $0x410] sm:$0xff]  ;;  %v500_v55 = vld [vmem:[#allocation5 + $0x400] sm:$0xff] }
 0x100   :  { %1459 = vmatpush1.bf16.msra.mxu0 %v5200_v54  ;;  %1439 = vmatprep.mubr.bf16.mxu1 %v365_v34  ;;  %v4352_v14 = vmul.f32 %v3515_v18, %v302_v31  ;;  %v3275_v5 = vcombine.high %v470_v61, %v471_v44  ;;  %v3242_v47 = vcombine.low %v4180_v27, %v4182_v45 }
 0x101   :  { %1460 = vmatprep.subr.bf16.mxu0 %v3245_v41  ;;  %1387 = vmatmul.mubr.bf16.gmra.mxu0 %v362_v15  ;;  %v436_v41 = vld [vmem:[#allocation5 + $0x200] sm:$0xff]  ;;  %v371_v7 = vpack.c.bf16 %v4350_v21, %v4305_v35  ;;  %v3274_v31 = vcombine.low %v470_v61, %v471_v44  ;;  %v3273_v59 = vcombine.high %v468_v6, %v469_v40  ;;  %v4374_v44 = vld [vmem:[#allocation5 + $0x2c8] sm:$0xff] }
 0x102   :  { %1440 = vmatmul.mubr.bf16.gmra.mxu1 %v364_v1  ;;  %1482 = vmatprep.mubr.bf16.mxu0 %v357_v26  ;;  %v370_v22 = vpack.c.bf16 %v4352_v14, %v4307_v48  ;;  %v5201_v26 = vcombine.high %v4180_v27, %v4182_v45  ;;  %v3241_v30 = vcombine.high %v436_v41, %v437_v17  ;;  %v496_v27 = vld [vmem:[#allocation5 + $0x3e0] sm:$0xff]  ;;  %v497_v45 = vld [vmem:[#allocation5 + $0x3e8] sm:$0xff] }
 0x103   :  { %1535 = vmatprep.mubr.bf16.mxu1 %v359_v3  ;;  %1513 = vmatprep.subr.bf16.mxu1 %v3277_v11  ;;  %v466_v11 = vld [vmem:[#allocation5 + $0x2f0] sm:$0xff]  ;;  %v3240_v52 = vcombine.low %v436_v41, %v437_v17  ;;  %v3303_v4 = vcombine.high %v498_v63, %v499_v39  ;;  %v3302_v12 = vcombine.low %v498_v63, %v499_v39  ;;  %v4372_v61 = vld [vmem:[#allocation5 + $0x2c0] sm:$0xff]  ;;  %v493_v41 = vld [vmem:[#allocation5 + $0x3c8] sm:$0xff] }
 0x104   :  { %1461 = vmatpush1.bf16.msra.mxu0 %v3244_v62  ;;  %1514 = vmatpush1.bf16.msra.mxu1 %v3276_v43  ;;  %v3272_v62 = vcombine.low %v468_v6, %v469_v40  ;;  %v3271_v18 = vcombine.high %v466_v11, %v467_v29  ;;  %v465_v43 = vld [vmem:[#allocation5 + $0x2e8] sm:$0xff]  ;;  %v3270_v3 = vcombine.low %v466_v11, %v467_v29 }
 0x105   :  { %1462 = vmatprep.subr.bf16.mxu0 %v5201_v26  ;;  %1515 = vmatprep.subr.bf16.mxu1 %v3275_v5  ;;  %v3269_v57 = vcombine.high %v464_v49, %v465_v43  ;;  %v3301_v46 = vcombine.high %v496_v27, %v497_v45  ;;  %v3268_v34 = vcombine.low %v464_v49, %v465_v43  ;;  %v492_v5 = vld [vmem:[#allocation5 + $0x3c0] sm:$0xff]  ;;  %v4378_v26 = vld [vmem:[#allocation5 + $0x2b0] sm:$0xff] }
 0x106   :  { %v3300_v15 = vcombine.low %v496_v27, %v497_v45  ;;  %v3267_v1 = vcombine.high %v462_v33, %v463_v0  ;;  %v3299_v54 = vcombine.high %v494_v28, %v495_v53  ;;  %v3266_v17 = vcombine.low %v462_v33, %v463_v0 }
 0x107   :  { %v3298_v6 = vcombine.low %v494_v28, %v495_v53  ;;  %v3265_v40 = vcombine.high %v4372_v61, %v4374_v44  ;;  %v3264_v11 = vcombine.low %v4372_v61, %v4374_v44  ;;  %v3296_v29 = vcombine.low %v492_v5, %v493_v41 }
 0x108   :  { %1463 = vmatpush1.bf16.msra.mxu0 %v3242_v47  ;;  %1516 = vmatpush1.bf16.msra.mxu1 %v3274_v31  ;;  %v3297_v47 = vcombine.high %v492_v5, %v493_v41  ;;  %v4380_v31 = vld [vmem:[#allocation5 + $0x2b8] sm:$0xff]  ;;  %v5204_v60 = vpack.c.bf16 %v4174_v51, %v4125_v24 }
 0x109   :  { %1464 = vmatprep.subr.bf16.mxu0 %v3241_v30  ;;  %1517 = vmatprep.subr.bf16.mxu1 %v3273_v59  ;;  %v490_v30 = vld [vmem:[#allocation5 + $0x3b0] sm:$0xff]  ;;  %v491_v59 = vld [vmem:[#allocation5 + $0x3b8] sm:$0xff]  ;;  %v3263_v63 = vcombine.high %v4378_v26, %v4380_v31  ;;  %v3262_v49 = vcombine.low %v4378_v26, %v4380_v31 }
 0x10a   :  { %v3295_v39 = vcombine.high %v490_v30, %v491_v59  ;;  %v3294_v43 = vcombine.low %v490_v30, %v491_v59 }
 0x10c   :  { %1465 = vmatpush1.bf16.msra.mxu0 %v3240_v52  ;;  %1518 = vmatpush1.bf16.msra.mxu1 %v3272_v62  ;;  %v4386_v52 = vld [vmem:[#allocation5 + $0x2a0] sm:$0xff]  ;;  %v4388_v62 = vld [vmem:[#allocation5 + $0x2a8] sm:$0xff] }
 0x10d   :  { %1466 = vmatprep.subr.bf16.mxu0 %v3271_v18  ;;  %1519 = vmatprep.subr.bf16.mxu1 %v3303_v4  ;;  %v488_v18 = vld [vmem:[#allocation5 + $0x3a0] sm:$0xff]  ;;  %v489_v4 = vld [vmem:[#allocation5 + $0x3a8] sm:$0xff]  ;;  %v3261_v27 = vcombine.high %v4386_v52, %v4388_v62  ;;  %v3260_v33 = vcombine.low %v4386_v52, %v4388_v62 }
 0x10e   :  { %v3293_v45 = vcombine.high %v488_v18, %v489_v4  ;;  %v3292_v0 = vcombine.low %v488_v18, %v489_v4  ;;  %v5202_v4 = vpack.c.bf16 %v4168_v36, %v4107_v9  ;;  %v508_v9 = vld [vmem:[#allocation5 + $0x440] sm:$0xff]  ;;  %v509_v36 = vld [vmem:[#allocation5 + $0x448] sm:$0xff] }
 0x10f   :  { %v3312_v56 = vcombine.low %v508_v9, %v509_v36 }
 0x110   :  { %1467 = vmatpush2.bf16.msra.mxu0 %v3270_v3  ;;  %1520 = vmatpush2.bf16.msra.mxu1 %v3302_v12  ;;  %v4394_v3 = vld [vmem:[#allocation5 + $0x290] sm:$0xff]  ;;  %v4396_v12 = vld [vmem:[#allocation5 + $0x298] sm:$0xff] }
 0x111   :  { %1468 = vmatprep.subr.bf16.mxu0 %v3269_v57  ;;  %1521 = vmatprep.subr.bf16.mxu1 %v3301_v46  ;;  %v486_v57 = vld [vmem:[#allocation5 + $0x390] sm:$0xff]  ;;  %v487_v46 = vld [vmem:[#allocation5 + $0x398] sm:$0xff]  ;;  %v3259_v28 = vcombine.high %v4394_v3, %v4396_v12  ;;  %v3258_v5 = vcombine.low %v4394_v3, %v4396_v12 }
 0x112   :  { %v3291_v53 = vcombine.high %v486_v57, %v487_v46  ;;  %v3290_v41 = vcombine.low %v486_v57, %v487_v46 }
 0x114   :  { %1469 = vmatpush2.bf16.msra.mxu0 %v3268_v34  ;;  %1522 = vmatpush2.bf16.msra.mxu1 %v3300_v15  ;;  %v4402_v34 = vld [vmem:[#allocation5 + $0x280] sm:$0xff]  ;;  %v4404_v15 = vld [vmem:[#allocation5 + $0x288] sm:$0xff] }
 0x115   :  { %1470 = vmatprep.subr.bf16.mxu0 %v3267_v1  ;;  %1523 = vmatprep.subr.bf16.mxu1 %v3299_v54  ;;  %v484_v1 = vld [vmem:[#allocation5 + $0x380] sm:$0xff]  ;;  %v485_v54 = vld [vmem:[#allocation5 + $0x388] sm:$0xff]  ;;  %v3256_v30 = vcombine.low %v4402_v34, %v4404_v15 }
 0x116   :  { %v3288_v59 = vcombine.low %v484_v1, %v485_v54 }
 0x118   :  { %1471 = vmatpush2.bf16.msra.mxu0 %v3266_v17  ;;  %1524 = vmatpush2.bf16.msra.mxu1 %v3298_v6  ;;  %v3257_v17 = vcombine.high %v4402_v34, %v4404_v15  ;;  %v3289_v6 = vcombine.high %v484_v1, %v485_v54 }
 0x119   :  { %1472 = vmatprep.subr.bf16.mxu0 %v3265_v40  ;;  %1525 = vmatprep.subr.bf16.mxu1 %v3297_v47  ;;  %v514_v40 = vld [vmem:[#allocation5 + $0x470] sm:$0xff]  ;;  %v515_v47 = vld [vmem:[#allocation5 + $0x478] sm:$0xff] }
 0x11c   :  { %1473 = vmatpush2.bf16.msra.mxu0 %v3264_v11  ;;  %1526 = vmatpush2.bf16.msra.mxu1 %v3296_v29  ;;  %v3319_v11 = vcombine.high %v514_v40, %v515_v47  ;;  %v512_v29 = vld [vmem:[#allocation5 + $0x460] sm:$0xff] }
 0x11d   :  { %1474 = vmatprep.subr.bf16.mxu0 %v3263_v63  ;;  %1527 = vmatprep.subr.bf16.mxu1 %v3295_v39  ;;  %v513_v63 = vld [vmem:[#allocation5 + $0x468] sm:$0xff]  ;;  %v3318_v39 = vcombine.low %v514_v40, %v515_v47  ;;  %v526_v40 = vld [vmem:[#allocation5 + $0x4d0] sm:$0xff]  ;;  %v527_v47 = vld [vmem:[#allocation5 + $0x4d8] sm:$0xff] }
 0x11e   :  { %v3317_v18 = vcombine.high %v512_v29, %v513_v63 }
 0x120   :  { %1475 = vmatpush2.bf16.msra.mxu0 %v3262_v49  ;;  %1528 = vmatpush2.bf16.msra.mxu1 %v3294_v43  ;;  %v510_v49 = vld [vmem:[#allocation5 + $0x450] sm:$0xff]  ;;  %v511_v43 = vld [vmem:[#allocation5 + $0x458] sm:$0xff] }
 0x121   :  { %1476 = vmatprep.subr.bf16.mxu0 %v3261_v27  ;;  %1529 = vmatprep.subr.bf16.mxu1 %v3293_v45  ;;  %v5203_v27 = vpack.c.bf16 %v4171_v10, %v4114_v8  ;;  %v3316_v45 = vcombine.low %v512_v29, %v513_v63  ;;  %v3315_v57 = vcombine.high %v510_v49, %v511_v43  ;;  %v506_v8 = vld [vmem:[#allocation5 + $0x430] sm:$0xff]  ;;  %v507_v10 = vld [vmem:[#allocation5 + $0x438] sm:$0xff]  ;;  %v525_v29 = vld [vmem:[#allocation5 + $0x4c8] sm:$0xff] }
 0x122   :  { %v3314_v46 = vcombine.low %v510_v49, %v511_v43  ;;  %v3311_v38 = vcombine.high %v506_v8, %v507_v10  ;;  %v3330_v63 = vcombine.low %v526_v40, %v527_v47 }
 0x124   :  { %1477 = vmatpush2.bf16.msra.mxu0 %v3260_v33  ;;  %1530 = vmatpush2.bf16.msra.mxu1 %v3292_v0  ;;  %v3313_v33 = vcombine.high %v508_v9, %v509_v36  ;;  %v518_v36 = vld [vmem:[#allocation5 + $0x490] sm:$0xff] }
 0x125   :  { %1478 = vmatprep.subr.bf16.mxu0 %v3259_v28  ;;  %1531 = vmatprep.subr.bf16.mxu1 %v3291_v53  ;;  %v530_v28 = vld [vmem:[#allocation5 + $0x4f0] sm:$0xff]  ;;  %v531_v53 = vld [vmem:[#allocation5 + $0x4f8] sm:$0xff] }
 0x126   :  { %v3335_v54 = vcombine.high %v530_v28, %v531_v53 }
 0x128   :  { %1479 = vmatpush2.bf16.msra.mxu0 %v3258_v5  ;;  %1532 = vmatpush2.bf16.msra.mxu1 %v3290_v41  ;;  %v528_v5 = vld [vmem:[#allocation5 + $0x4e0] sm:$0xff]  ;;  %v529_v41 = vld [vmem:[#allocation5 + $0x4e8] sm:$0xff] }
 0x129   :  { %1480 = vmatprep.subr.bf16.mxu0 %v3257_v17  ;;  %1533 = vmatprep.subr.bf16.mxu1 %v3289_v6  ;;  %v3334_v17 = vcombine.low %v530_v28, %v531_v53  ;;  %v3333_v6 = vcombine.high %v528_v5, %v529_v41 }
 0x12c   :  { %1481 = vmatpush2.bf16.msra.mxu0 %v3256_v30  ;;  %1534 = vmatpush2.bf16.msra.mxu1 %v3288_v59  ;;  %v3332_v30 = vcombine.low %v528_v5, %v529_v41  ;;  %v3331_v59 = vcombine.high %v526_v40, %v527_v47 }
 0x12d   :  { %1556 = vmatprep.subr.bf16.mxu0 %v3319_v11  ;;  %v524_v11 = vld [vmem:[#allocation5 + $0x4c0] sm:$0xff] }
 0x12e   :  { %v3328_v49 = vcombine.low %v524_v11, %v525_v29 }
 0x12f   :  { %1483 = vmatmul.mubr.bf16.vlgmr.msra.gmra.mxu0 %v5202_v4  ;;  %1536 = vmatmul.mubr.bf16.vlgmr.msra.gmra.mxu1 %v5203_v27  ;;  %v523_v4 = vld [vmem:[#allocation5 + $0x4b8] sm:$0xff]  ;;  %v520_v27 = vld [vmem:[#allocation5 + $0x4a0] sm:$0xff] }
 0x130   :  { %1492 = vmatprep.mubr.bf16.mxu0 %v367_v32  ;;  %1545 = vmatprep.mubr.bf16.mxu1 %v369_v23  ;;  %v505_v32 = vld [vmem:[#allocation5 + $0x428] sm:$0xff]  ;;  %v3310_v23 = vcombine.low %v506_v8, %v507_v10  ;;  %v516_v10 = vld [vmem:[#allocation5 + $0x480] sm:$0xff] }
 0x131   :  { %1557 = vmatpush1.bf16.msra.mxu0 %v3318_v39  ;;  %v3309_v16 = vcombine.high %v504_v20, %v505_v32  ;;  %v3308_v0 = vcombine.low %v504_v20, %v505_v32  ;;  %v3329_v39 = vcombine.high %v524_v11, %v525_v29  ;;  %v5205_v32 = vpack.c.bf16 %v4209_v25, %v4139_v50 }
 0x132   :  { %1558 = vmatprep.subr.bf16.mxu0 %v3317_v18  ;;  %v522_v18 = vld [vmem:[#allocation5 + $0x4b0] sm:$0xff] }
 0x133   :  { %v3327_v43 = vcombine.high %v522_v18, %v523_v4 }
 0x135   :  { %1559 = vmatpush1.bf16.msra.mxu0 %v3316_v45  ;;  %v521_v45 = vld [vmem:[#allocation5 + $0x4a8] sm:$0xff] }
 0x136   :  { %1560 = vmatprep.subr.bf16.mxu0 %v3315_v57  ;;  %v3326_v57 = vcombine.low %v522_v18, %v523_v4  ;;  %v3325_v9 = vcombine.high %v520_v27, %v521_v45 }
 0x137   :  { %1493 = vmatmul.mubr.bf16.gmra.mxu0 %v366_v19  ;;  %1546 = vmatmul.mubr.bf16.gmra.mxu1 %v368_v42  ;;  %v503_v19 = vld [vmem:[#allocation5 + $0x418] sm:$0xff]  ;;  %v501_v42 = vld [vmem:[#allocation5 + $0x408] sm:$0xff] }
 0x138   :  { %1588 = vmatprep.mubr.bf16.mxu0 %v5204_v60  ;;  %v3307_v2 = vcombine.high %v502_v58, %v503_v19  ;;  %v3306_v24 = vcombine.low %v502_v58, %v503_v19  ;;  %v3305_v51 = vcombine.high %v500_v55, %v501_v42  ;;  %v3304_v1 = vcombine.low %v500_v55, %v501_v42  ;;  %v517_v60 = vld [vmem:[#allocation5 + $0x488] sm:$0xff] }
 0x139   :  { %1561 = vmatpush1.bf16.msra.mxu0 %v3314_v46  ;;  %v519_v46 = vld [vmem:[#allocation5 + $0x498] sm:$0xff]  ;;  %v3320_v20 = vcombine.low %v516_v10, %v517_v60 }
 0x13a   :  { %1562 = vmatprep.subr.bf16.mxu0 %v3313_v33  ;;  %v3324_v33 = vcombine.low %v520_v27, %v521_v45  ;;  %v3323_v8 = vcombine.high %v518_v36, %v519_v46 }
 0x13d   :  { %1563 = vmatpush1.bf16.msra.mxu0 %v3312_v56  ;;  %v3322_v56 = vcombine.low %v518_v36, %v519_v46 }
 0x13e   :  { %1564 = vmatprep.subr.bf16.mxu0 %v3311_v38  ;;  %v3321_v38 = vcombine.high %v516_v10, %v517_v60 }
 0x141   :  { %1565 = vmatpush1.bf16.msra.mxu0 %v3310_v23 }
 0x142   :  { %1566 = vmatprep.subr.bf16.mxu0 %v3309_v16  ;;  %v534_v16 = vlaneseq }
 0x144   :  { %v535_v58 = vshrl.u32 %v534_v16, 7 }
 0x145   :  { %1567 = vmatpush1.bf16.msra.mxu0 %v3308_v0 }
 0x146   :  { %1568 = vmatprep.subr.bf16.mxu0 %v3307_v2  ;;  %v4442_v0 = vsub.s32 1, %v535_v58  ;;  %v4445_v55 = vsub.s32 0, %v535_v58  ;;  %v1639_v21 = vsub.s32 2, %v535_v58  ;;  %v1646_v14 = vsub.s32 3, %v535_v58 }
 0x149   :  { %1569 = vmatpush1.bf16.msra.mxu0 %v3306_v24 }
 0x14a   :  { %1570 = vmatprep.subr.bf16.mxu0 %v3305_v51 }
 0x14d   :  { %1571 = vmatpush1.bf16.msra.mxu0 %v3304_v1 }
 0x14e   :  { %1572 = vmatprep.subr.bf16.mxu0 %v3335_v54 }
 0x151   :  { %1573 = vmatpush2.bf16.msra.mxu0 %v3334_v17 }
 0x152   :  { %1574 = vmatprep.subr.bf16.mxu0 %v3333_v6 }
 0x155   :  { %1575 = vmatpush2.bf16.msra.mxu0 %v3332_v30 }
 0x156   :  { %1576 = vmatprep.subr.bf16.mxu0 %v3331_v59 }
 0x159   :  { %1577 = vmatpush2.bf16.msra.mxu0 %v3330_v63 }
 0x15a   :  { %1578 = vmatprep.subr.bf16.mxu0 %v3329_v39 }
 0x15d   :  { %1579 = vmatpush2.bf16.msra.mxu0 %v3328_v49 }
 0x15e   :  { %1580 = vmatprep.subr.bf16.mxu0 %v3327_v43 }
 0x161   :  { %1581 = vmatpush2.bf16.msra.mxu0 %v3326_v57 }
 0x162   :  { %1582 = vmatprep.subr.bf16.mxu0 %v3325_v9 }
 0x165   :  { %1583 = vmatpush2.bf16.msra.mxu0 %v3324_v33 }
 0x166   :  { %1584 = vmatprep.subr.bf16.mxu0 %v3323_v8 }
 0x169   :  { %1585 = vmatpush2.bf16.msra.mxu0 %v3322_v56 }
 0x16a   :  { %1586 = vmatprep.subr.bf16.mxu0 %v3321_v38 }
 0x16d   :  { %1587 = vmatpush2.bf16.msra.mxu0 %v3320_v20 }
 0x170   :  { %1589 = vmatmul.mubr.bf16.vlgmr.msra.gmra.mxu0 %v5205_v32 }
 0x171   :  { %1598 = vmatprep.mubr.bf16.mxu0 %v371_v7 }
 0x178   :  { %1599 = vmatmul.mubr.bf16.gmra.mxu0 %v370_v22  ;;  %v4449_v22 = vld [vmem:[#allocation5] sm:$0xff] }
 0x179   :  { %v1708_v42 = vunpack.c.h.bf16 %v4449_v22 }
 0x17b   :  { %2110 = vmatprep.mubr.f32.mxu0 %v1708_v42 }
 0x181   :  { %v1619_v23 = vpop.xlane.xlu1 %1618 }
 0x182   :  { %3516 = vrcp.f32 %v1619_v23 }
 0x18f   :  { %v3517_v19 = vpop.eup %3516 }
 0x190   :  { %v1621_v2 = vmul.f32 %v3517_v19, %v4290_v13  ;;  %v1850_v13 = vunpack.c.h.bf16 %v5198_v37  ;;  %v532_v37 = vld [vmem:[#allocation7] sm:$0x3] }
 0x191   :  { %v537_v49 = vrot.slane %v532_v37, %v4445_v55  ;;  %v541_v45 = vrot.slane %v532_v37, %v4442_v0 }
 0x192   :  { %v1622_v50 = vmul.f32 0.0625, %v1621_v2  ;;  %2465 = vmatprep.mubr.f32.mxu1 %v1850_v13 }
 0x194   :  { %v1633_v25 = vrot.slane %v1622_v50, %v4442_v0  ;;  %v1626_v35 = vrot.slane %v1622_v50, %v4445_v55  ;;  %v1640_v48 = vrot.slane %v1622_v50, %v1639_v21  ;;  %v1647_v7 = vrot.slane %v1622_v50, %v1646_v14 }
 0x196   :  { %1635 = vbcast.lane.b32.xlu1 %v1633_v25, 256  ;;  %1628 = vbcast.lane.b32.xlu0 %v1626_v35, 256 }
 0x19a   :  { %1642 = vbcast.lane.b32.xlu1 %v1640_v48, 256 }
 0x19e   :  { %1649 = vbcast.lane.b32.xlu1 %v1647_v7, 256 }
 0x1aa   :  { %v1378_v24 = vpop.f32.mrf.mxu0  ;;  %v1431_v54 = vpop.f32.mrf.mxu1 }
 0x1ab   :  { %v1379_v57 = vadd.f32 %v1378_v24, %v537_v49 }
 0x1ac   :  { %v1380_v51 = vpop.f32.mrf.mxu0  ;;  %v1433_v41 = vpop.f32.mrf.mxu1 }
 0x1ad   :  { %v1381_v46 = vadd.f32 %v1380_v51, %v541_v45  ;;  %v1432_v33 = vadd.f32 %v1431_v54, %v1379_v57 }
 0x1ae   :  { %v1382_v28 = vpop.f32.mrf.mxu0  ;;  %v1435_v6 = vpop.f32.mrf.mxu1 }
 0x1af   :  { %v1383_v8 = vadd.f32 %v1382_v28, %v537_v49  ;;  %v1434_v56 = vadd.f32 %v1433_v41, %v1381_v46 }
 0x1b0   :  { %v1384_v53 = vpop.f32.mrf.mxu0  ;;  %v1437_v47 = vpop.f32.mrf.mxu1 }
 0x1b1   :  { %v1385_v38 = vadd.f32 %v1384_v53, %v541_v45  ;;  %v1436_v32 = vadd.f32 %v1435_v6, %v1383_v8 }
 0x1b3   :  { %v1438_v2 = vadd.f32 %v1437_v47, %v1385_v38 }
 0x1c1   :  { %v1388_v1 = vpop.f32.mrf.mxu0 }
 0x1c2   :  { %v1441_v59 = vpop.f32.mrf.mxu1  ;;  %v1389_v58 = vadd.f32 %v1388_v1, %v537_v49 }
 0x1c3   :  { %v1390_v5 = vpop.f32.mrf.mxu0 }
 0x1c4   :  { %v1443_v29 = vpop.f32.mrf.mxu1  ;;  %v1391_v35 = vadd.f32 %v1390_v5, %v541_v45  ;;  %v1442_v13 = vadd.f32 %v1441_v59, %v1389_v58 }
 0x1c5   :  { %v1392_v17 = vpop.f32.mrf.mxu0 }
 0x1c6   :  { %v1445_v39 = vpop.f32.mrf.mxu1  ;;  %v1393_v24 = vadd.f32 %v1392_v17, %v537_v49  ;;  %v1444_v41 = vadd.f32 %v1443_v29, %v1391_v35 }
 0x1c7   :  { %v1394_v40 = vpop.f32.mrf.mxu0 }
 0x1c8   :  { %v1447_v4 = vpop.f32.mrf.mxu1  ;;  %v1395_v6 = vadd.f32 %v1394_v40, %v541_v45  ;;  %v1446_v57 = vadd.f32 %v1445_v39, %v1393_v24 }
 0x1ca   :  { %v1448_v49 = vadd.f32 %v1447_v4, %v1395_v6 }
 0x1ef   :  { %v1484_v30 = vpop.f32.mrf.mxu0  ;;  %v1537_v43 = vpop.f32.mrf.mxu1 }
 0x1f0   :  { %v1485_v20 = vadd.f32 %v1484_v30, %v1432_v33 }
 0x1f1   :  { %v1486_v11 = vpop.f32.mrf.mxu0  ;;  %v1539_v9 = vpop.f32.mrf.mxu1 }
 0x1f2   :  { %v1487_v23 = vadd.f32 %v1486_v11, %v1434_v56  ;;  %v1538_v50 = vadd.f32 %v1537_v43, %v1485_v20 }
 0x1f3   :  { %v1488_v63 = vpop.f32.mrf.mxu0  ;;  %v1541_v10 = vpop.f32.mrf.mxu1 }
 0x1f4   :  { %v1489_v25 = vadd.f32 %v1488_v63, %v1436_v32  ;;  %v1540_v48 = vadd.f32 %v1539_v9, %v1487_v23 }
 0x1f5   :  { %v1490_v18 = vpop.f32.mrf.mxu0  ;;  %v1543_v16 = vpop.f32.mrf.mxu1 }
 0x1f6   :  { %v1491_v14 = vadd.f32 %v1490_v18, %v1438_v2  ;;  %v1542_v28 = vadd.f32 %v1541_v10, %v1489_v25 }
 0x1f7   :  { %v1494_v27 = vpop.f32.mrf.mxu0  ;;  %v1547_v7 = vpop.f32.mrf.mxu1 }
 0x1f8   :  { %v1495_v30 = vadd.f32 %v1494_v27, %v1442_v13  ;;  %v1544_v47 = vadd.f32 %v1543_v16, %v1491_v14 }
 0x1f9   :  { %v1496_v36 = vpop.f32.mrf.mxu0  ;;  %v1549_v37 = vpop.f32.mrf.mxu1 }
 0x1fa   :  { %v1497_v18 = vadd.f32 %v1496_v36, %v1444_v41  ;;  %v1548_v33 = vadd.f32 %v1547_v7, %v1495_v30 }
 0x1fb   :  { %v1498_v60 = vpop.f32.mrf.mxu0  ;;  %v1551_v29 = vpop.f32.mrf.mxu1 }
 0x1fc   :  { %v1499_v8 = vadd.f32 %v1498_v60, %v1446_v57  ;;  %v1550_v38 = vadd.f32 %v1549_v37, %v1497_v18 }
 0x1fd   :  { %v1500_v19 = vpop.f32.mrf.mxu0  ;;  %v1553_v4 = vpop.f32.mrf.mxu1 }
 0x1fe   :  { %v1501_v20 = vadd.f32 %v1500_v19, %v1448_v49  ;;  %v1552_v58 = vadd.f32 %v1551_v29, %v1499_v8 }
 0x208   :  { %v1636_v53 = vpop.permute.xlu1 %1635  ;;  %v1629_v1 = vpop.permute.xlu0 %1628 }
 0x20c   :  { %v1643_v40 = vpop.permute.xlu1 %1642 }
 0x210   :  { %v1650_v13 = vpop.permute.xlu1 %1649 }
 0x230   :  { %v1590_v21 = vpop.f32.mrf.mxu0 }
 0x231   :  { %v1591_v42 = vadd.f32 %v1590_v21, %v1538_v50  ;;  %v1554_v21 = vadd.f32 %v1553_v4, %v1501_v20 }
 0x232   :  { %v1592_v51 = vpop.f32.mrf.mxu0 }
 0x233   :  { %v1593_v54 = vadd.f32 %v1592_v51, %v1540_v48  ;;  %v1651_v63 = vmul.f32 %v1629_v1, %v1591_v42 }
 0x234   :  { %v1594_v11 = vpop.f32.mrf.mxu0 }
 0x235   :  { %v1652_v5 = vmul.f32 %v1629_v1, %v1593_v54  ;;  %v1595_v43 = vadd.f32 %v1594_v11, %v1542_v28  ;;  %v1659_v27 = vrot.slane %v1651_v63, 4 }
 0x236   :  { %v1596_v9 = vpop.f32.mrf.mxu0 }
 0x237   :  { %v1665_v46 = vrot.slane %v1652_v5, 4  ;;  %v1653_v59 = vmul.f32 %v1636_v53, %v1595_v43  ;;  %v1597_v17 = vadd.f32 %v1596_v9, %v1544_v47  ;;  %v1660_v35 = vadd.f32 %v1659_v27, %v1651_v63 }
 0x238   :  { %v1600_v10 = vpop.f32.mrf.mxu0 }
 0x239   :  { %v1671_v45 = vrot.slane %v1653_v59, 4  ;;  %v1654_v56 = vmul.f32 %v1636_v53, %v1597_v17  ;;  %v1601_v32 = vadd.f32 %v1600_v10, %v1548_v33  ;;  %v1666_v16 = vadd.f32 %v1665_v46, %v1652_v5 }
 0x23a   :  { %v1602_v23 = vpop.f32.mrf.mxu0  ;;  %v1661_v6 = vrot.slane %v1660_v35, 2 }
 0x23b   :  { %v1672_v39 = vadd.f32 %v1671_v45, %v1653_v59  ;;  %v1677_v36 = vrot.slane %v1654_v56, 4  ;;  %v1655_v2 = vmul.f32 %v1643_v40, %v1601_v32  ;;  %v1603_v50 = vadd.f32 %v1602_v23, %v1550_v38 }
 0x23c   :  { %v1604_v25 = vpop.f32.mrf.mxu0  ;;  %v1667_v24 = vrot.slane %v1666_v16, 2  ;;  %v1662_v46 = vadd.f32 %v1661_v6, %v1660_v35 }
 0x23d   :  { %v1678_v60 = vadd.f32 %v1677_v36, %v1654_v56  ;;  %v1683_v48 = vrot.slane %v1655_v2, 4  ;;  %v1656_v14 = vmul.f32 %v1643_v40, %v1603_v50  ;;  %v1605_v7 = vadd.f32 %v1604_v25, %v1552_v58 }
 0x23e   :  { %v1606_v42 = vpop.f32.mrf.mxu0  ;;  %v1673_v19 = vrot.slane %v1672_v39, 2  ;;  %v1668_v63 = vadd.f32 %v1667_v24, %v1666_v16  ;;  %v1663_v56 = vrot.slane %v1662_v46, 1  ;;  %v3520_v24 = vld [vmem:[#allocation5 + $0x240] sm:$0xff] }
 0x23f   :  { %v1679_v51 = vrot.slane %v1678_v60, 2  ;;  %v1684_v28 = vadd.f32 %v1683_v48, %v1655_v2  ;;  %v1689_v53 = vrot.slane %v1656_v14, 4  ;;  %v1657_v54 = vmul.f32 %v1650_v13, %v1605_v7 }
 0x240   :  { %v1607_v41 = vadd.f32 %v1606_v42, %v1554_v21  ;;  %v1674_v5 = vadd.f32 %v1673_v19, %v1672_v39  ;;  %v1669_v8 = vrot.slane %v1668_v63, 1  ;;  %v1664_v2 = vadd.f32 %v1663_v56, %v1662_v46  ;;  %v3519_v42 = vld [vmem:[#allocation5 + $0x238] sm:$0xff]  ;;  %v3527_v46 = vld [vmem:[#allocation5 + $0x20] sm:$0xff] }
 0x241   :  { %v1680_v30 = vadd.f32 %v1679_v51, %v1678_v60  ;;  %v1685_v1 = vrot.slane %v1684_v28, 2  ;;  %v1690_v11 = vadd.f32 %v1689_v53, %v1656_v14  ;;  %v1695_v47 = vrot.slane %v1657_v54, 4  ;;  %v3521_v51 = vld [vmem:[#allocation5 + $0x8] sm:$0xff] }
 0x242   :  { %v1658_v37 = vmul.f32 %v1650_v13, %v1607_v41  ;;  %v1675_v10 = vrot.slane %v1674_v5, 1  ;;  %v1670_v39 = vadd.f32 %v1669_v8, %v1668_v63  ;;  %v1707_v7 = vunpack.c.l.bf16 %v4449_v22  ;;  %v3522_v41 = vld [vmem:[#allocation5 + $0x248] sm:$0xff]  ;;  %v3525_v63 = vld [vmem:[#allocation5 + $0x18] sm:$0xff] }
 0x243   :  { %v1686_v43 = vadd.f32 %v1685_v1, %v1684_v28  ;;  %v1691_v57 = vrot.slane %v1690_v11, 2  ;;  %v1696_v18 = vadd.f32 %v1695_v47, %v1657_v54  ;;  %v1681_v59 = vrot.slane %v1680_v30, 1  ;;  %v3524_v47 = vld [vmem:[#allocation5 + $0x250] sm:$0xff] }
 0x244   :  { %v1701_v9 = vrot.slane %v1658_v37, 4  ;;  %v1676_v23 = vadd.f32 %v1675_v10, %v1674_v5  ;;  %v1849_v13 = vunpack.c.l.bf16 %v3519_v42  ;;  %v1852_v19 = vunpack.c.h.bf16 %v3520_v24  ;;  %v3529_v10 = vld [vmem:[#allocation5 + $0x28] sm:$0xff] }
 0x245   :  { %v1692_v17 = vadd.f32 %v1691_v57, %v1690_v11  ;;  %v1697_v49 = vrot.slane %v1696_v18, 2  ;;  %v1687_v29 = vrot.slane %v1686_v43, 1  ;;  %v1682_v38 = vadd.f32 %v1681_v59, %v1680_v30  ;;  %v3523_v30 = vld [vmem:[#allocation5 + $0x10] sm:$0xff] }
 0x246   :  { %v1702_v33 = vadd.f32 %v1701_v9, %v1658_v37  ;;  %v2036_v60 = vsel %vm2035_vm1, %v1676_v23, %v1664_v2  ;;  %v1710_v28 = vunpack.c.h.bf16 %v3521_v51  ;;  %v1851_v53 = vunpack.c.l.bf16 %v3520_v24 }
 0x247   :  { %v1693_v40 = vrot.slane %v1692_v17, 1  ;;  %v1698_v27 = vadd.f32 %v1697_v49, %v1696_v18  ;;  %v1688_v36 = vadd.f32 %v1687_v29, %v1686_v43  ;;  %v2041_v4 = vsel %vm2035_vm1, %v1682_v38, %v1670_v39  ;;  %v3526_v18 = vld [vmem:[#allocation5 + $0x258] sm:$0xff]  ;;  %v3531_v38 = vld [vmem:[#allocation5 + $0x30] sm:$0xff] }
 0x248   :  { %v1703_v45 = vrot.slane %v1702_v33, 2  ;;  %v1709_v54 = vunpack.c.l.bf16 %v3521_v51  ;;  %v1854_v6 = vunpack.c.h.bf16 %v3522_v41  ;;  %v1712_v1 = vunpack.c.h.bf16 %v3523_v30  ;;  %v3537_v51 = vld [vmem:[#allocation5 + $0x50] sm:$0xff] }
 0x249   :  { %v1699_v20 = vrot.slane %v1698_v27, 1  ;;  %v1694_v16 = vadd.f32 %v1693_v40, %v1692_v17  ;;  %v2038_v48 = vsel %vm2037_vm2, %v1688_v36, %v2036_v60  ;;  %v1853_v22 = vunpack.c.l.bf16 %v3522_v41  ;;  %v3533_v36 = vld [vmem:[#allocation5 + $0x38] sm:$0xff] }
 0x24a   :  { %v1704_v32 = vadd.f32 %v1703_v45, %v1702_v33  ;;  %v1711_v11 = vunpack.c.l.bf16 %v3523_v30  ;;  %v1856_v37 = vunpack.c.h.bf16 %v3524_v47  ;;  %v1714_v5 = vunpack.c.h.bf16 %v3525_v63  ;;  %v3528_v33 = vld [vmem:[#allocation5 + $0x260] sm:$0xff]  ;;  %v3530_v45 = vld [vmem:[#allocation5 + $0x268] sm:$0xff] }
 0x24b   :  { %v1700_v50 = vadd.f32 %v1699_v20, %v1698_v27  ;;  %v2042_v35 = vsel %vm2037_vm2, %v1694_v16, %v2041_v4  ;;  %v1855_v43 = vunpack.c.l.bf16 %v3524_v47  ;;  %v1713_v57 = vunpack.c.l.bf16 %v3525_v63  ;;  %v3532_v16 = vld [vmem:[#allocation5 + $0x270] sm:$0xff] }
 0x24c   :  { %v1705_v58 = vrot.slane %v1704_v32, 1  ;;  %v1858_v9 = vunpack.c.h.bf16 %v3526_v18  ;;  %v1716_v59 = vunpack.c.h.bf16 %v3527_v46  ;;  %v1857_v17 = vunpack.c.l.bf16 %v3526_v18 }
 0x24d   :  { %v2040_v14 = vsel %vm2039_vm3, %v1700_v50, %v2038_v48  ;;  %v1715_v49 = vunpack.c.l.bf16 %v3527_v46  ;;  %v1860_v8 = vunpack.c.h.bf16 %v3528_v33  ;;  %v1718_v29 = vunpack.c.h.bf16 %v3529_v10 }
 0x24e   :  { %v1706_v25 = vadd.f32 %v1705_v58, %v1704_v32  ;;  %v1859_v40 = vunpack.c.l.bf16 %v3528_v33  ;;  %v1717_v27 = vunpack.c.l.bf16 %v3529_v10  ;;  %v1862_v56 = vunpack.c.h.bf16 %v3530_v45 }
 0x24f   :  { %v1720_v20 = vunpack.c.h.bf16 %v3531_v38  ;;  %v1861_v32 = vunpack.c.l.bf16 %v3530_v45  ;;  %v1719_v23 = vunpack.c.l.bf16 %v3531_v38  ;;  %v1864_v39 = vunpack.c.h.bf16 %v3532_v16 }
 0x250   :  { %v2043_v21 = vsel %vm2039_vm3, %v1706_v25, %v2042_v35  ;;  %v1722_v58 = vunpack.c.h.bf16 %v3533_v36  ;;  %v1863_v2 = vunpack.c.l.bf16 %v3532_v16  ;;  %v1721_v50 = vunpack.c.l.bf16 %v3533_v36  ;;  %v3534_v25 = vld [vmem:[#allocation5 + $0x278] sm:$0xff]  ;;  %v3535_v35 = vld [vmem:[#allocation5 + $0x40] sm:$0xff]  ;;  %v3546_v36 = vld [vmem:[#allocation5 + $0x2d0] sm:$0xff] }
 0x251   :  { %2076 = vmatprep.subr.mxu0 %v2043_v21  ;;  %3336 = vmatprep.subr.mxu1 %v2043_v21  ;;  %v1866_v4 = vunpack.c.h.bf16 %v3534_v25  ;;  %v1724_v60 = vunpack.c.h.bf16 %v3535_v35  ;;  %v1723_v48 = vunpack.c.l.bf16 %v3535_v35  ;;  %v1872_v41 = vunpack.c.h.bf16 %v4394_v3 }
 0x252   :  { %2077 = vmatpush1.xpose.msra.mxu0 %v2040_v14  ;;  %3337 = vmatpush1.xpose.msra.mxu1 %v2040_v14  ;;  %v1876_v63 = vunpack.c.h.bf16 %v4386_v52  ;;  %v1878_v18 = vunpack.c.h.bf16 %v4388_v62  ;;  %v1882_v10 = vunpack.c.h.bf16 %v4380_v31  ;;  %v1884_v45 = vunpack.c.h.bf16 %v4372_v61 }
 0x253   :  { %3114 = vmatprep.subr.mxu0 %v2043_v21  ;;  %v1865_v21 = vunpack.c.l.bf16 %v3534_v25 }
 0x255   :  { %2111 = vmatmul.mubr.f32.vlgmr.msra.gmra.mxu0 %v1707_v7  ;;  %2466 = vmatmul.mubr.f32.vlgmr.msra.gmra.mxu1 %v1849_v13  ;;  %v3536_v7 = vld [vmem:[#allocation5 + $0x48] sm:$0xff]  ;;  %v1867_v13 = vunpack.c.l.bf16 %v4402_v34 }
 0x256   :  { %3115 = vmatpush1.xpose.msra.mxu0 %v2040_v14  ;;  %2470 = vmatprep.mubr.f32.mxu1 %v1852_v19  ;;  %v1868_v14 = vunpack.c.h.bf16 %v4402_v34  ;;  %v1726_v42 = vunpack.c.h.bf16 %v3536_v7  ;;  %v1725_v24 = vunpack.c.l.bf16 %v3536_v7  ;;  %v1870_v19 = vunpack.c.h.bf16 %v4404_v15 }
 0x257   :  { %2115 = vmatprep.mubr.f32.mxu0 %v1710_v28  ;;  %v1728_v28 = vunpack.c.h.bf16 %v3537_v51  ;;  %v1871_v34 = vunpack.c.l.bf16 %v4394_v3  ;;  %v1875_v3 = vunpack.c.l.bf16 %v4386_v52  ;;  %v1879_v52 = vunpack.c.l.bf16 %v4378_v26 }
 0x259   :  { %2471 = vmatmul.mubr.f32.gmra.mxu1 %v1851_v53  ;;  %2116 = vmatmul.mubr.f32.gmra.mxu0 %v1709_v54  ;;  %v1869_v53 = vunpack.c.l.bf16 %v4404_v15  ;;  %v1727_v54 = vunpack.c.l.bf16 %v3537_v51  ;;  %v1873_v15 = vunpack.c.l.bf16 %v4396_v12  ;;  %v3552_v51 = vld [vmem:[#allocation5 + $0x2e8] sm:$0xff] }
 0x25a   :  { %2475 = vmatprep.mubr.f32.mxu1 %v1854_v6  ;;  %2120 = vmatprep.mubr.f32.mxu0 %v1712_v1  ;;  %v3538_v6 = vld [vmem:[#allocation5 + $0x58] sm:$0xff] }
 0x25b   :  { %v1730_v30 = vunpack.c.h.bf16 %v3538_v6  ;;  %v1729_v1 = vunpack.c.l.bf16 %v3538_v6 }
 0x25d   :  { %2476 = vmatmul.mubr.f32.gmra.mxu1 %v1853_v22  ;;  %2121 = vmatmul.mubr.f32.gmra.mxu0 %v1711_v11  ;;  %v1874_v22 = vunpack.c.h.bf16 %v4396_v12  ;;  %v3539_v11 = vld [vmem:[#allocation5 + $0x60] sm:$0xff]  ;;  %v1877_v12 = vunpack.c.l.bf16 %v4388_v62  ;;  %v1881_v62 = vunpack.c.l.bf16 %v4380_v31  ;;  %v1885_v31 = vunpack.c.l.bf16 %v4374_v44 }
 0x25e   :  { %2480 = vmatprep.mubr.f32.mxu1 %v1856_v37  ;;  %2125 = vmatprep.mubr.f32.mxu0 %v1714_v5  ;;  %v1732_v47 = vunpack.c.h.bf16 %v3539_v11  ;;  %v1731_v37 = vunpack.c.l.bf16 %v3539_v11  ;;  %v3540_v5 = vld [vmem:[#allocation5 + $0x68] sm:$0xff] }
 0x261   :  { %2481 = vmatmul.mubr.f32.gmra.mxu1 %v1855_v43  ;;  %2126 = vmatmul.mubr.f32.gmra.mxu0 %v1713_v57  ;;  %v1734_v43 = vunpack.c.h.bf16 %v3540_v5  ;;  %v1733_v57 = vunpack.c.l.bf16 %v3540_v5 }
 0x262   :  { %2485 = vmatprep.mubr.f32.mxu1 %v1858_v9  ;;  %2130 = vmatprep.mubr.f32.mxu0 %v1716_v59  ;;  %v3541_v9 = vld [vmem:[#allocation5 + $0x70] sm:$0xff] }
 0x263   :  { %v1736_v46 = vunpack.c.h.bf16 %v3541_v9  ;;  %v1735_v59 = vunpack.c.l.bf16 %v3541_v9  ;;  %v3559_v9 = vld [vmem:[#allocation5 + $0xc8] sm:$0xff] }
 0x265   :  { %2486 = vmatmul.mubr.f32.gmra.mxu1 %v1857_v17  ;;  %2131 = vmatmul.mubr.f32.gmra.mxu0 %v1715_v49  ;;  %v1880_v17 = vunpack.c.h.bf16 %v4378_v26  ;;  %v3542_v49 = vld [vmem:[#allocation5 + $0x78] sm:$0xff]  ;;  %v1883_v26 = vunpack.c.l.bf16 %v4372_v61  ;;  %v1887_v61 = vunpack.c.l.bf16 %v3546_v36 }
 0x266   :  { %2490 = vmatprep.mubr.f32.mxu1 %v1860_v8  ;;  %2135 = vmatprep.mubr.f32.mxu0 %v1718_v29  ;;  %v1738_v33 = vunpack.c.h.bf16 %v3542_v49  ;;  %v1737_v8 = vunpack.c.l.bf16 %v3542_v49  ;;  %v3543_v29 = vld [vmem:[#allocation5 + $0x80] sm:$0xff] }
 0x269   :  { %2491 = vmatmul.mubr.f32.gmra.mxu1 %v1859_v40  ;;  %2136 = vmatmul.mubr.f32.gmra.mxu0 %v1717_v27  ;;  %v1740_v40 = vunpack.c.h.bf16 %v3543_v29  ;;  %v1739_v27 = vunpack.c.l.bf16 %v3543_v29  ;;  %v3562_v29 = vld [vmem:[#allocation5 + $0x310] sm:$0xff] }
 0x26a   :  { %2495 = vmatprep.mubr.f32.mxu1 %v1862_v56  ;;  %2140 = vmatprep.mubr.f32.mxu0 %v1720_v20  ;;  %v3544_v56 = vld [vmem:[#allocation5 + $0x88] sm:$0xff] }
 0x26b   :  { %v1742_v38 = vunpack.c.h.bf16 %v3544_v56  ;;  %v1741_v20 = vunpack.c.l.bf16 %v3544_v56 }
 0x26d   :  { %2496 = vmatmul.mubr.f32.gmra.mxu1 %v1861_v32  ;;  %2141 = vmatmul.mubr.f32.gmra.mxu0 %v1719_v23  ;;  %v1886_v32 = vunpack.c.h.bf16 %v4374_v44  ;;  %v3545_v23 = vld [vmem:[#allocation5 + $0x90] sm:$0xff] }
 0x26e   :  { %2500 = vmatprep.mubr.f32.mxu1 %v1864_v39  ;;  %2145 = vmatprep.mubr.f32.mxu0 %v1722_v58  ;;  %v1744_v16 = vunpack.c.h.bf16 %v3545_v23  ;;  %v1743_v39 = vunpack.c.l.bf16 %v3545_v23  ;;  %v1888_v58 = vunpack.c.h.bf16 %v3546_v36  ;;  %v3567_v36 = vld [vmem:[#allocation5 + $0xe8] sm:$0xff] }
 0x271   :  { %2501 = vmatmul.mubr.f32.gmra.mxu1 %v1863_v2  ;;  %2146 = vmatmul.mubr.f32.gmra.mxu0 %v1721_v50  ;;  %v3547_v2 = vld [vmem:[#allocation5 + $0x98] sm:$0xff] }
 0x272   :  { %2505 = vmatprep.mubr.f32.mxu1 %v1866_v4  ;;  %2150 = vmatprep.mubr.f32.mxu0 %v1724_v60  ;;  %v1746_v50 = vunpack.c.h.bf16 %v3547_v2  ;;  %v1745_v25 = vunpack.c.l.bf16 %v3547_v2  ;;  %v3548_v4 = vld [vmem:[#allocation5 + $0x2d8] sm:$0xff]  ;;  %v3549_v60 = vld [vmem:[#allocation5 + $0xa0] sm:$0xff] }
 0x273   :  { %v1890_v35 = vunpack.c.h.bf16 %v3548_v4  ;;  %v1889_v44 = vunpack.c.l.bf16 %v3548_v4  ;;  %v3569_v4 = vld [vmem:[#allocation5 + $0xf0] sm:$0xff] }
 0x275   :  { %2506 = vmatmul.mubr.f32.gmra.mxu1 %v1865_v21  ;;  %2151 = vmatmul.mubr.f32.gmra.mxu0 %v1723_v48  ;;  %v1748_v21 = vunpack.c.h.bf16 %v3549_v60  ;;  %v1747_v48 = vunpack.c.l.bf16 %v3549_v60 }
 0x276   :  { %2510 = vmatprep.mubr.f32.mxu1 %v1868_v14  ;;  %2155 = vmatprep.mubr.f32.mxu0 %v1726_v42  ;;  %v3550_v14 = vld [vmem:[#allocation5 + $0x2e0] sm:$0xff]  ;;  %v3551_v42 = vld [vmem:[#allocation5 + $0xa8] sm:$0xff] }
 0x277   :  { %v1892_v7 = vunpack.c.h.bf16 %v3550_v14 }
 0x279   :  { %2511 = vmatmul.mubr.f32.gmra.mxu1 %v1867_v13  ;;  %2156 = vmatmul.mubr.f32.gmra.mxu0 %v1725_v24  ;;  %v1750_v13 = vunpack.c.h.bf16 %v3551_v42  ;;  %v1891_v24 = vunpack.c.l.bf16 %v3550_v14  ;;  %v3571_v14 = vld [vmem:[#allocation5 + $0xf8] sm:$0xff] }
 0x27a   :  { %2515 = vmatprep.mubr.f32.mxu1 %v1870_v19  ;;  %2160 = vmatprep.mubr.f32.mxu0 %v1728_v28  ;;  %v1749_v19 = vunpack.c.l.bf16 %v3551_v42  ;;  %v1894_v28 = vunpack.c.h.bf16 %v3552_v51 }
 0x27d   :  { %2516 = vmatmul.mubr.f32.gmra.mxu1 %v1869_v53  ;;  %2161 = vmatmul.mubr.f32.gmra.mxu0 %v1727_v54  ;;  %v3553_v53 = vld [vmem:[#allocation5 + $0xb0] sm:$0xff] }
 0x27e   :  { %2520 = vmatprep.mubr.f32.mxu1 %v1872_v41  ;;  %2165 = vmatprep.mubr.f32.mxu0 %v1730_v30  ;;  %v1752_v54 = vunpack.c.h.bf16 %v3553_v53  ;;  %v1893_v41 = vunpack.c.l.bf16 %v3552_v51  ;;  %v1751_v6 = vunpack.c.l.bf16 %v3553_v53  ;;  %v3554_v30 = vld [vmem:[#allocation5 + $0x2f0] sm:$0xff]  ;;  %v3573_v51 = vld [vmem:[#allocation5 + $0x100] sm:$0xff] }
 0x27f   :  { %v1895_v11 = vunpack.c.l.bf16 %v3554_v30 }
 0x281   :  { %2521 = vmatmul.mubr.f32.gmra.mxu1 %v1871_v34  ;;  %2166 = vmatmul.mubr.f32.gmra.mxu0 %v1729_v1  ;;  %v1896_v34 = vunpack.c.h.bf16 %v3554_v30  ;;  %v3555_v1 = vld [vmem:[#allocation5 + $0xb8] sm:$0xff]  ;;  %v3575_v30 = vld [vmem:[#allocation5 + $0x108] sm:$0xff] }
 0x282   :  { %2525 = vmatprep.mubr.f32.mxu1 %v1874_v22  ;;  %2170 = vmatprep.mubr.f32.mxu0 %v1732_v47  ;;  %v1754_v22 = vunpack.c.h.bf16 %v3555_v1  ;;  %v1753_v47 = vunpack.c.l.bf16 %v3555_v1 }
 0x285   :  { %2526 = vmatmul.mubr.f32.gmra.mxu1 %v1873_v15  ;;  %2171 = vmatmul.mubr.f32.gmra.mxu0 %v1731_v37  ;;  %v3556_v15 = vld [vmem:[#allocation5 + $0x2f8] sm:$0xff] }
 0x286   :  { %2530 = vmatprep.mubr.f32.mxu1 %v1876_v63  ;;  %2175 = vmatprep.mubr.f32.mxu0 %v1734_v43  ;;  %v1898_v37 = vunpack.c.h.bf16 %v3556_v15  ;;  %v3557_v63 = vld [vmem:[#allocation5 + $0xc0] sm:$0xff]  ;;  %v1897_v43 = vunpack.c.l.bf16 %v3556_v15  ;;  %v3577_v15 = vld [vmem:[#allocation5 + $0x110] sm:$0xff] }
 0x287   :  { %v1756_v5 = vunpack.c.h.bf16 %v3557_v63 }
 0x289   :  { %2531 = vmatmul.mubr.f32.gmra.mxu1 %v1875_v3  ;;  %2176 = vmatmul.mubr.f32.gmra.mxu0 %v1733_v57  ;;  %v1755_v3 = vunpack.c.l.bf16 %v3557_v63  ;;  %v3558_v57 = vld [vmem:[#allocation5 + $0x300] sm:$0xff] }
 0x28a   :  { %2535 = vmatprep.mubr.f32.mxu1 %v1878_v18  ;;  %2180 = vmatprep.mubr.f32.mxu0 %v1736_v46  ;;  %v1900_v18 = vunpack.c.h.bf16 %v3558_v57  ;;  %v1758_v46 = vunpack.c.h.bf16 %v3559_v9 }
 0x28d   :  { %2536 = vmatmul.mubr.f32.gmra.mxu1 %v1877_v12  ;;  %2181 = vmatmul.mubr.f32.gmra.mxu0 %v1735_v59  ;;  %v1899_v12 = vunpack.c.l.bf16 %v3558_v57  ;;  %v1757_v59 = vunpack.c.l.bf16 %v3559_v9  ;;  %v3579_v57 = vld [vmem:[#allocation5 + $0x118] sm:$0xff] }
 0x28e   :  { %2540 = vmatprep.mubr.f32.mxu1 %v1880_v17  ;;  %2185 = vmatprep.mubr.f32.mxu0 %v1738_v33  ;;  %v3560_v17 = vld [vmem:[#allocation5 + $0x308] sm:$0xff]  ;;  %v3561_v33 = vld [vmem:[#allocation5 + $0xd0] sm:$0xff] }
 0x28f   :  { %v1902_v49 = vunpack.c.h.bf16 %v3560_v17 }
 0x291   :  { %2541 = vmatmul.mubr.f32.gmra.mxu1 %v1879_v52  ;;  %2186 = vmatmul.mubr.f32.gmra.mxu0 %v1737_v8  ;;  %v1760_v52 = vunpack.c.h.bf16 %v3561_v33  ;;  %v1901_v8 = vunpack.c.l.bf16 %v3560_v17  ;;  %v3581_v17 = vld [vmem:[#allocation5 + $0x120] sm:$0xff] }
 0x292   :  { %2545 = vmatprep.mubr.f32.mxu1 %v1882_v10  ;;  %2190 = vmatprep.mubr.f32.mxu0 %v1740_v40  ;;  %v1759_v10 = vunpack.c.l.bf16 %v3561_v33  ;;  %v1904_v40 = vunpack.c.h.bf16 %v3562_v29 }
 0x295   :  { %2546 = vmatmul.mubr.f32.gmra.mxu1 %v1881_v62  ;;  %2191 = vmatmul.mubr.f32.gmra.mxu0 %v1739_v27  ;;  %v3563_v62 = vld [vmem:[#allocation5 + $0xd8] sm:$0xff] }
 0x296   :  { %2550 = vmatprep.mubr.f32.mxu1 %v1884_v45  ;;  %2195 = vmatprep.mubr.f32.mxu0 %v1742_v38  ;;  %v1762_v27 = vunpack.c.h.bf16 %v3563_v62  ;;  %v1903_v45 = vunpack.c.l.bf16 %v3562_v29  ;;  %v1761_v56 = vunpack.c.l.bf16 %v3563_v62  ;;  %v3564_v38 = vld [vmem:[#allocation5 + $0x318] sm:$0xff]  ;;  %v3583_v29 = vld [vmem:[#allocation5 + $0x128] sm:$0xff] }
 0x297   :  { %v1905_v23 = vunpack.c.l.bf16 %v3564_v38 }
 0x299   :  { %2551 = vmatmul.mubr.f32.gmra.mxu1 %v1883_v26  ;;  %2196 = vmatmul.mubr.f32.gmra.mxu0 %v1741_v20  ;;  %v1906_v26 = vunpack.c.h.bf16 %v3564_v38  ;;  %v3565_v20 = vld [vmem:[#allocation5 + $0xe0] sm:$0xff]  ;;  %v3585_v38 = vld [vmem:[#allocation5 + $0x130] sm:$0xff] }
 0x29a   :  { %2555 = vmatprep.mubr.f32.mxu1 %v1886_v32  ;;  %2200 = vmatprep.mubr.f32.mxu0 %v1744_v16  ;;  %v1764_v32 = vunpack.c.h.bf16 %v3565_v20  ;;  %v1763_v16 = vunpack.c.l.bf16 %v3565_v20 }
 0x29d   :  { %2556 = vmatmul.mubr.f32.gmra.mxu1 %v1885_v31  ;;  %2201 = vmatmul.mubr.f32.gmra.mxu0 %v1743_v39  ;;  %v3566_v31 = vld [vmem:[#allocation5 + $0x320] sm:$0xff] }
 0x29e   :  { %2560 = vmatprep.mubr.f32.mxu1 %v1888_v58  ;;  %2205 = vmatprep.mubr.f32.mxu0 %v1746_v50  ;;  %v1908_v39 = vunpack.c.h.bf16 %v3566_v31  ;;  %v1766_v58 = vunpack.c.h.bf16 %v3567_v36  ;;  %v1907_v2 = vunpack.c.l.bf16 %v3566_v31  ;;  %v1765_v50 = vunpack.c.l.bf16 %v3567_v36  ;;  %v3587_v31 = vld [vmem:[#allocation5 + $0x138] sm:$0xff] }
 0x2a1   :  { %2561 = vmatmul.mubr.f32.gmra.mxu1 %v1887_v61  ;;  %2206 = vmatmul.mubr.f32.gmra.mxu0 %v1745_v25  ;;  %v3568_v61 = vld [vmem:[#allocation5 + $0x328] sm:$0xff] }
 0x2a2   :  { %2565 = vmatprep.mubr.f32.mxu1 %v1890_v35  ;;  %2210 = vmatprep.mubr.f32.mxu0 %v1748_v21  ;;  %v1910_v25 = vunpack.c.h.bf16 %v3568_v61  ;;  %v1768_v35 = vunpack.c.h.bf16 %v3569_v4  ;;  %v1909_v60 = vunpack.c.l.bf16 %v3568_v61  ;;  %v1767_v21 = vunpack.c.l.bf16 %v3569_v4  ;;  %v3589_v61 = vld [vmem:[#allocation5 + $0x140] sm:$0xff] }
 0x2a5   :  { %2566 = vmatmul.mubr.f32.gmra.mxu1 %v1889_v44  ;;  %2211 = vmatmul.mubr.f32.gmra.mxu0 %v1747_v48  ;;  %v3570_v44 = vld [vmem:[#allocation5 + $0x330] sm:$0xff] }
 0x2a6   :  { %2570 = vmatprep.mubr.f32.mxu1 %v1892_v7  ;;  %2215 = vmatprep.mubr.f32.mxu0 %v1750_v13  ;;  %v1912_v48 = vunpack.c.h.bf16 %v3570_v44  ;;  %v1770_v7 = vunpack.c.h.bf16 %v3571_v14  ;;  %v1911_v42 = vunpack.c.l.bf16 %v3570_v44  ;;  %v1769_v13 = vunpack.c.l.bf16 %v3571_v14  ;;  %v3591_v44 = vld [vmem:[#allocation5 + $0x148] sm:$0xff] }
 0x2a9   :  { %2571 = vmatmul.mubr.f32.gmra.mxu1 %v1891_v24  ;;  %2216 = vmatmul.mubr.f32.gmra.mxu0 %v1749_v19  ;;  %v3572_v24 = vld [vmem:[#allocation5 + $0x338] sm:$0xff] }
 0x2aa   :  { %2575 = vmatprep.mubr.f32.mxu1 %v1894_v28  ;;  %2220 = vmatprep.mubr.f32.mxu0 %v1752_v54  ;;  %v1914_v19 = vunpack.c.h.bf16 %v3572_v24  ;;  %v1772_v28 = vunpack.c.h.bf16 %v3573_v51  ;;  %v1913_v53 = vunpack.c.l.bf16 %v3572_v24  ;;  %v1771_v54 = vunpack.c.l.bf16 %v3573_v51  ;;  %v3593_v24 = vld [vmem:[#allocation5 + $0x150] sm:$0xff] }
 0x2ad   :  { %2576 = vmatmul.mubr.f32.gmra.mxu1 %v1893_v41  ;;  %2221 = vmatmul.mubr.f32.gmra.mxu0 %v1751_v6  ;;  %v3574_v41 = vld [vmem:[#allocation5 + $0x340] sm:$0xff] }
 0x2ae   :  { %2580 = vmatprep.mubr.f32.mxu1 %v1896_v34  ;;  %2225 = vmatprep.mubr.f32.mxu0 %v1754_v22  ;;  %v1916_v6 = vunpack.c.h.bf16 %v3574_v41  ;;  %v1774_v34 = vunpack.c.h.bf16 %v3575_v30  ;;  %v1915_v1 = vunpack.c.l.bf16 %v3574_v41  ;;  %v1773_v22 = vunpack.c.l.bf16 %v3575_v30  ;;  %v3595_v41 = vld [vmem:[#allocation5 + $0x158] sm:$0xff] }
 0x2b1   :  { %2581 = vmatmul.mubr.f32.gmra.mxu1 %v1895_v11  ;;  %2226 = vmatmul.mubr.f32.gmra.mxu0 %v1753_v47  ;;  %v3576_v11 = vld [vmem:[#allocation5 + $0x348] sm:$0xff] }
 0x2b2   :  { %2585 = vmatprep.mubr.f32.mxu1 %v1898_v37  ;;  %2230 = vmatprep.mubr.f32.mxu0 %v1756_v5  ;;  %v1918_v47 = vunpack.c.h.bf16 %v3576_v11  ;;  %v1776_v37 = vunpack.c.h.bf16 %v3577_v15  ;;  %v1917_v63 = vunpack.c.l.bf16 %v3576_v11  ;;  %v1775_v5 = vunpack.c.l.bf16 %v3577_v15  ;;  %v3597_v11 = vld [vmem:[#allocation5 + $0x160] sm:$0xff] }
 0x2b5   :  { %2586 = vmatmul.mubr.f32.gmra.mxu1 %v1897_v43  ;;  %2231 = vmatmul.mubr.f32.gmra.mxu0 %v1755_v3  ;;  %v3578_v43 = vld [vmem:[#allocation5 + $0x350] sm:$0xff] }
 0x2b6   :  { %2590 = vmatprep.mubr.f32.mxu1 %v1900_v18  ;;  %2235 = vmatprep.mubr.f32.mxu0 %v1758_v46  ;;  %v1920_v3 = vunpack.c.h.bf16 %v3578_v43  ;;  %v1778_v18 = vunpack.c.h.bf16 %v3579_v57  ;;  %v1919_v9 = vunpack.c.l.bf16 %v3578_v43  ;;  %v1777_v46 = vunpack.c.l.bf16 %v3579_v57  ;;  %v3599_v43 = vld [vmem:[#allocation5 + $0x168] sm:$0xff] }
 0x2b9   :  { %2591 = vmatmul.mubr.f32.gmra.mxu1 %v1899_v12  ;;  %2236 = vmatmul.mubr.f32.gmra.mxu0 %v1757_v59  ;;  %v3580_v12 = vld [vmem:[#allocation5 + $0x358] sm:$0xff] }
 0x2ba   :  { %2595 = vmatprep.mubr.f32.mxu1 %v1902_v49  ;;  %2240 = vmatprep.mubr.f32.mxu0 %v1760_v52  ;;  %v1922_v59 = vunpack.c.h.bf16 %v3580_v12  ;;  %v1780_v49 = vunpack.c.h.bf16 %v3581_v17  ;;  %v1921_v33 = vunpack.c.l.bf16 %v3580_v12  ;;  %v1779_v52 = vunpack.c.l.bf16 %v3581_v17  ;;  %v3601_v12 = vld [vmem:[#allocation5 + $0x170] sm:$0xff] }
 0x2bd   :  { %2596 = vmatmul.mubr.f32.gmra.mxu1 %v1901_v8  ;;  %2241 = vmatmul.mubr.f32.gmra.mxu0 %v1759_v10  ;;  %v3582_v8 = vld [vmem:[#allocation5 + $0x360] sm:$0xff] }
 0x2be   :  { %2600 = vmatprep.mubr.f32.mxu1 %v1904_v40  ;;  %2245 = vmatprep.mubr.f32.mxu0 %v1762_v27  ;;  %v1924_v10 = vunpack.c.h.bf16 %v3582_v8  ;;  %v1782_v40 = vunpack.c.h.bf16 %v3583_v29  ;;  %v1923_v62 = vunpack.c.l.bf16 %v3582_v8  ;;  %v1781_v27 = vunpack.c.l.bf16 %v3583_v29  ;;  %v3603_v8 = vld [vmem:[#allocation5 + $0x178] sm:$0xff] }
 0x2c1   :  { %2601 = vmatmul.mubr.f32.gmra.mxu1 %v1903_v45  ;;  %2246 = vmatmul.mubr.f32.gmra.mxu0 %v1761_v56  ;;  %v3584_v45 = vld [vmem:[#allocation5 + $0x368] sm:$0xff] }
 0x2c2   :  { %2605 = vmatprep.mubr.f32.mxu1 %v1906_v26  ;;  %2250 = vmatprep.mubr.f32.mxu0 %v1764_v32  ;;  %v1926_v56 = vunpack.c.h.bf16 %v3584_v45  ;;  %v1784_v26 = vunpack.c.h.bf16 %v3585_v38  ;;  %v1925_v20 = vunpack.c.l.bf16 %v3584_v45  ;;  %v1783_v32 = vunpack.c.l.bf16 %v3585_v38  ;;  %v3605_v45 = vld [vmem:[#allocation5 + $0x180] sm:$0xff] }
 0x2c5   :  { %2606 = vmatmul.mubr.f32.gmra.mxu1 %v1905_v23  ;;  %2251 = vmatmul.mubr.f32.gmra.mxu0 %v1763_v16  ;;  %v3586_v23 = vld [vmem:[#allocation5 + $0x370] sm:$0xff] }
 0x2c6   :  { %2610 = vmatprep.mubr.f32.mxu1 %v1908_v39  ;;  %2255 = vmatprep.mubr.f32.mxu0 %v1766_v58  ;;  %v1928_v16 = vunpack.c.h.bf16 %v3586_v23  ;;  %v1786_v39 = vunpack.c.h.bf16 %v3587_v31  ;;  %v1927_v36 = vunpack.c.l.bf16 %v3586_v23  ;;  %v1785_v58 = vunpack.c.l.bf16 %v3587_v31  ;;  %v3607_v23 = vld [vmem:[#allocation5 + $0x188] sm:$0xff] }
 0x2c9   :  { %2611 = vmatmul.mubr.f32.gmra.mxu1 %v1907_v2  ;;  %2256 = vmatmul.mubr.f32.gmra.mxu0 %v1765_v50  ;;  %v3588_v2 = vld [vmem:[#allocation5 + $0x378] sm:$0xff] }
 0x2ca   :  { %2615 = vmatprep.mubr.f32.mxu1 %v1910_v25  ;;  %2260 = vmatprep.mubr.f32.mxu0 %v1768_v35  ;;  %v1930_v50 = vunpack.c.h.bf16 %v3588_v2  ;;  %v1788_v25 = vunpack.c.h.bf16 %v3589_v61  ;;  %v1929_v4 = vunpack.c.l.bf16 %v3588_v2  ;;  %v1787_v35 = vunpack.c.l.bf16 %v3589_v61  ;;  %v3608_v2 = vld [vmem:[#allocation5 + $0x3c8] sm:$0xff]  ;;  %v3609_v61 = vld [vmem:[#allocation5 + $0x190] sm:$0xff] }
 0x2cd   :  { %2616 = vmatmul.mubr.f32.gmra.mxu1 %v1909_v60  ;;  %2261 = vmatmul.mubr.f32.gmra.mxu0 %v1767_v21  ;;  %v3590_v60 = vld [vmem:[#allocation5 + $0x380] sm:$0xff] }
 0x2ce   :  { %2620 = vmatprep.mubr.f32.mxu1 %v1912_v48  ;;  %2265 = vmatprep.mubr.f32.mxu0 %v1770_v7  ;;  %v1932_v21 = vunpack.c.h.bf16 %v3590_v60  ;;  %v1790_v48 = vunpack.c.h.bf16 %v3591_v44  ;;  %v1931_v14 = vunpack.c.l.bf16 %v3590_v60  ;;  %v1789_v7 = vunpack.c.l.bf16 %v3591_v44 }
 0x2d1   :  { %2621 = vmatmul.mubr.f32.gmra.mxu1 %v1911_v42  ;;  %2266 = vmatmul.mubr.f32.gmra.mxu0 %v1769_v13  ;;  %v3592_v42 = vld [vmem:[#allocation5 + $0x388] sm:$0xff] }
 0x2d2   :  { %2625 = vmatprep.mubr.f32.mxu1 %v1914_v19  ;;  %2270 = vmatprep.mubr.f32.mxu0 %v1772_v28  ;;  %v1934_v13 = vunpack.c.h.bf16 %v3592_v42  ;;  %v1792_v19 = vunpack.c.h.bf16 %v3593_v24  ;;  %v1933_v51 = vunpack.c.l.bf16 %v3592_v42  ;;  %v1791_v28 = vunpack.c.l.bf16 %v3593_v24  ;;  %v3611_v42 = vld [vmem:[#allocation5 + $0x198] sm:$0xff] }
 0x2d5   :  { %2626 = vmatmul.mubr.f32.gmra.mxu1 %v1913_v53  ;;  %2271 = vmatmul.mubr.f32.gmra.mxu0 %v1771_v54  ;;  %v3594_v53 = vld [vmem:[#allocation5 + $0x390] sm:$0xff] }
 0x2d6   :  { %2630 = vmatprep.mubr.f32.mxu1 %v1916_v6  ;;  %2275 = vmatprep.mubr.f32.mxu0 %v1774_v34  ;;  %v1936_v54 = vunpack.c.h.bf16 %v3594_v53  ;;  %v1794_v6 = vunpack.c.h.bf16 %v3595_v41  ;;  %v1935_v30 = vunpack.c.l.bf16 %v3594_v53  ;;  %v1793_v34 = vunpack.c.l.bf16 %v3595_v41  ;;  %v3612_v41 = vld [vmem:[#allocation5 + $0x3d8] sm:$0xff] }
 0x2d9   :  { %2631 = vmatmul.mubr.f32.gmra.mxu1 %v1915_v1  ;;  %2276 = vmatmul.mubr.f32.gmra.mxu0 %v1773_v22  ;;  %v3596_v1 = vld [vmem:[#allocation5 + $0x398] sm:$0xff] }
 0x2da   :  { %2635 = vmatprep.mubr.f32.mxu1 %v1918_v47  ;;  %2280 = vmatprep.mubr.f32.mxu0 %v1776_v37  ;;  %v1938_v22 = vunpack.c.h.bf16 %v3596_v1  ;;  %v1796_v47 = vunpack.c.h.bf16 %v3597_v11  ;;  %v1937_v15 = vunpack.c.l.bf16 %v3596_v1  ;;  %v1795_v37 = vunpack.c.l.bf16 %v3597_v11 }
 0x2dd   :  { %2636 = vmatmul.mubr.f32.gmra.mxu1 %v1917_v63  ;;  %2281 = vmatmul.mubr.f32.gmra.mxu0 %v1775_v5  ;;  %v3598_v63 = vld [vmem:[#allocation5 + $0x3a0] sm:$0xff] }
 0x2de   :  { %2640 = vmatprep.mubr.f32.mxu1 %v1920_v3  ;;  %2285 = vmatprep.mubr.f32.mxu0 %v1778_v18  ;;  %v1940_v5 = vunpack.c.h.bf16 %v3598_v63  ;;  %v1798_v3 = vunpack.c.h.bf16 %v3599_v43  ;;  %v1939_v57 = vunpack.c.l.bf16 %v3598_v63  ;;  %v1797_v18 = vunpack.c.l.bf16 %v3599_v43  ;;  %v3614_v63 = vld [vmem:[#allocation5 + $0x3e0] sm:$0xff]  ;;  %v3615_v43 = vld [vmem:[#allocation5 + $0x1a8] sm:$0xff] }
 0x2e1   :  { %2641 = vmatmul.mubr.f32.gmra.mxu1 %v1919_v9  ;;  %2286 = vmatmul.mubr.f32.gmra.mxu0 %v1777_v46  ;;  %v3600_v9 = vld [vmem:[#allocation5 + $0x3a8] sm:$0xff] }
 0x2e2   :  { %2645 = vmatprep.mubr.f32.mxu1 %v1922_v59  ;;  %2290 = vmatprep.mubr.f32.mxu0 %v1780_v49  ;;  %v1942_v46 = vunpack.c.h.bf16 %v3600_v9  ;;  %v1800_v59 = vunpack.c.h.bf16 %v3601_v12  ;;  %v1941_v17 = vunpack.c.l.bf16 %v3600_v9  ;;  %v1799_v49 = vunpack.c.l.bf16 %v3601_v12 }
 0x2e5   :  { %2646 = vmatmul.mubr.f32.gmra.mxu1 %v1921_v33  ;;  %2291 = vmatmul.mubr.f32.gmra.mxu0 %v1779_v52  ;;  %v3602_v33 = vld [vmem:[#allocation5 + $0x3b0] sm:$0xff] }
 0x2e6   :  { %2650 = vmatprep.mubr.f32.mxu1 %v1924_v10  ;;  %2295 = vmatprep.mubr.f32.mxu0 %v1782_v40  ;;  %v1944_v52 = vunpack.c.h.bf16 %v3602_v33  ;;  %v1802_v10 = vunpack.c.h.bf16 %v3603_v8  ;;  %v1943_v29 = vunpack.c.l.bf16 %v3602_v33  ;;  %v1801_v40 = vunpack.c.l.bf16 %v3603_v8  ;;  %v3617_v33 = vld [vmem:[#allocation5 + $0x1b0] sm:$0xff] }
 0x2e9   :  { %2651 = vmatmul.mubr.f32.gmra.mxu1 %v1923_v62  ;;  %2296 = vmatmul.mubr.f32.gmra.mxu0 %v1781_v27  ;;  %v3604_v62 = vld [vmem:[#allocation5 + $0x3b8] sm:$0xff] }
 0x2ea   :  { %2655 = vmatprep.mubr.f32.mxu1 %v1926_v56  ;;  %2300 = vmatprep.mubr.f32.mxu0 %v1784_v26  ;;  %v1946_v27 = vunpack.c.h.bf16 %v3604_v62  ;;  %v1804_v56 = vunpack.c.h.bf16 %v3605_v45  ;;  %v1945_v38 = vunpack.c.l.bf16 %v3604_v62  ;;  %v1803_v26 = vunpack.c.l.bf16 %v3605_v45  ;;  %v3618_v45 = vld [vmem:[#allocation5 + $0x3f0] sm:$0xff] }
 0x2ed   :  { %2656 = vmatmul.mubr.f32.gmra.mxu1 %v1925_v20  ;;  %2301 = vmatmul.mubr.f32.gmra.mxu0 %v1783_v32  ;;  %v3606_v20 = vld [vmem:[#allocation5 + $0x3c0] sm:$0xff] }
 0x2ee   :  { %2660 = vmatprep.mubr.f32.mxu1 %v1928_v16  ;;  %2305 = vmatprep.mubr.f32.mxu0 %v1786_v39  ;;  %v1948_v32 = vunpack.c.h.bf16 %v3606_v20  ;;  %v1806_v16 = vunpack.c.h.bf16 %v3607_v23  ;;  %v1947_v39 = vunpack.c.l.bf16 %v3606_v20 }
 0x2f1   :  { %2661 = vmatmul.mubr.f32.gmra.mxu1 %v1927_v36  ;;  %2306 = vmatmul.mubr.f32.gmra.mxu0 %v1785_v58  ;;  %v1805_v58 = vunpack.c.l.bf16 %v3607_v23 }
 0x2f2   :  { %2665 = vmatprep.mubr.f32.mxu1 %v1930_v50  ;;  %2310 = vmatprep.mubr.f32.mxu0 %v1788_v25  ;;  %v1950_v50 = vunpack.c.h.bf16 %v3608_v2  ;;  %v1808_v25 = vunpack.c.h.bf16 %v3609_v61 }
 0x2f5   :  { %2666 = vmatmul.mubr.f32.gmra.mxu1 %v1929_v4  ;;  %2311 = vmatmul.mubr.f32.gmra.mxu0 %v1787_v35 }
 0x2f6   :  { %2670 = vmatprep.mubr.f32.mxu1 %v1932_v21  ;;  %2315 = vmatprep.mubr.f32.mxu0 %v1790_v48  ;;  %v1949_v21 = vunpack.c.l.bf16 %v3608_v2  ;;  %v1807_v48 = vunpack.c.l.bf16 %v3609_v61  ;;  %v3621_v2 = vld [vmem:[#allocation5 + $0x1c0] sm:$0xff] }
 0x2f9   :  { %2671 = vmatmul.mubr.f32.gmra.mxu1 %v1931_v14  ;;  %2316 = vmatmul.mubr.f32.gmra.mxu0 %v1789_v7  ;;  %v3610_v14 = vld [vmem:[#allocation5 + $0x3d0] sm:$0xff] }
 0x2fa   :  { %2675 = vmatprep.mubr.f32.mxu1 %v1934_v13  ;;  %2320 = vmatprep.mubr.f32.mxu0 %v1792_v19  ;;  %v1952_v7 = vunpack.c.h.bf16 %v3610_v14  ;;  %v1810_v13 = vunpack.c.h.bf16 %v3611_v42 }
 0x2fd   :  { %2676 = vmatmul.mubr.f32.gmra.mxu1 %v1933_v51  ;;  %2321 = vmatmul.mubr.f32.gmra.mxu0 %v1791_v28  ;;  %v1951_v28 = vunpack.c.l.bf16 %v3610_v14  ;;  %v3623_v14 = vld [vmem:[#allocation5 + $0x1c8] sm:$0xff] }
 0x2fe   :  { %2680 = vmatprep.mubr.f32.mxu1 %v1936_v54  ;;  %2325 = vmatprep.mubr.f32.mxu0 %v1794_v6  ;;  %v1809_v54 = vunpack.c.l.bf16 %v3611_v42  ;;  %v1954_v6 = vunpack.c.h.bf16 %v3612_v41 }
 0x301   :  { %2681 = vmatmul.mubr.f32.gmra.mxu1 %v1935_v30  ;;  %2326 = vmatmul.mubr.f32.gmra.mxu0 %v1793_v34  ;;  %v3613_v30 = vld [vmem:[#allocation5 + $0x1a0] sm:$0xff] }
 0x302   :  { %2685 = vmatprep.mubr.f32.mxu1 %v1938_v22  ;;  %2330 = vmatprep.mubr.f32.mxu0 %v1796_v47  ;;  %v1812_v34 = vunpack.c.h.bf16 %v3613_v30  ;;  %v1953_v47 = vunpack.c.l.bf16 %v3612_v41  ;;  %v3625_v41 = vld [vmem:[#allocation5 + $0x1d0] sm:$0xff] }
 0x305   :  { %2686 = vmatmul.mubr.f32.gmra.mxu1 %v1937_v15  ;;  %2331 = vmatmul.mubr.f32.gmra.mxu0 %v1795_v37  ;;  %v1811_v37 = vunpack.c.l.bf16 %v3613_v30 }
 0x306   :  { %2690 = vmatprep.mubr.f32.mxu1 %v1940_v5  ;;  %2335 = vmatprep.mubr.f32.mxu0 %v1798_v3  ;;  %v1956_v5 = vunpack.c.h.bf16 %v3614_v63  ;;  %v1814_v3 = vunpack.c.h.bf16 %v3615_v43 }
 0x309   :  { %2691 = vmatmul.mubr.f32.gmra.mxu1 %v1939_v57  ;;  %2336 = vmatmul.mubr.f32.gmra.mxu0 %v1797_v18 }
 0x30a   :  { %2695 = vmatprep.mubr.f32.mxu1 %v1942_v46  ;;  %2340 = vmatprep.mubr.f32.mxu0 %v1800_v59  ;;  %v1955_v46 = vunpack.c.l.bf16 %v3614_v63  ;;  %v1813_v59 = vunpack.c.l.bf16 %v3615_v43  ;;  %v3627_v63 = vld [vmem:[#allocation5 + $0x1d8] sm:$0xff] }
 0x30d   :  { %2696 = vmatmul.mubr.f32.gmra.mxu1 %v1941_v17  ;;  %2341 = vmatmul.mubr.f32.gmra.mxu0 %v1799_v49  ;;  %v3616_v17 = vld [vmem:[#allocation5 + $0x3e8] sm:$0xff] }
 0x30e   :  { %2700 = vmatprep.mubr.f32.mxu1 %v1944_v52  ;;  %2345 = vmatprep.mubr.f32.mxu0 %v1802_v10  ;;  %v1958_v49 = vunpack.c.h.bf16 %v3616_v17  ;;  %v1816_v52 = vunpack.c.h.bf16 %v3617_v33 }
 0x311   :  { %2701 = vmatmul.mubr.f32.gmra.mxu1 %v1943_v29  ;;  %2346 = vmatmul.mubr.f32.gmra.mxu0 %v1801_v40  ;;  %v1957_v40 = vunpack.c.l.bf16 %v3616_v17  ;;  %v3629_v17 = vld [vmem:[#allocation5 + $0x1e0] sm:$0xff] }
 0x312   :  { %2705 = vmatprep.mubr.f32.mxu1 %v1946_v27  ;;  %2350 = vmatprep.mubr.f32.mxu0 %v1804_v56  ;;  %v1815_v27 = vunpack.c.l.bf16 %v3617_v33  ;;  %v1960_v56 = vunpack.c.h.bf16 %v3618_v45 }
 0x315   :  { %v2467_v31 = vpop.f32.mrf.mxu1  ;;  %2706 = vmatmul.mubr.f32.gmra.mxu1 %v1945_v38  ;;  %v2112_v36 = vpop.f32.mrf.mxu0  ;;  %2351 = vmatmul.mubr.f32.gmra.mxu0 %v1803_v26  ;;  %v3619_v38 = vld [vmem:[#allocation5 + $0x1b8] sm:$0xff] }
 0x316   :  { %2983 = vst.msk [vmem:[%s5125_s4 + $0x238] sm:$0xff] %vm2911_vm4, %v2467_v31  ;;  %2710 = vmatprep.mubr.f32.mxu1 %v1948_v32  ;;  %2912 = vst.msk [vmem:[%s5125_s4] sm:$0xff] %vm2911_vm4, %v2112_v36  ;;  %2355 = vmatprep.mubr.f32.mxu0 %v1806_v16  ;;  %v1818_v26 = vunpack.c.h.bf16 %v3619_v38  ;;  %v1959_v16 = vunpack.c.l.bf16 %v3618_v45  ;;  %v3620_v36 = vld [vmem:[#allocation5 + $0x3f8] sm:$0xff]  ;;  %v3631_v45 = vld [vmem:[#allocation5 + $0x1e8] sm:$0xff] }
 0x317   :  { %v2469_v4 = vpop.f32.mrf.mxu1  ;;  %v2114_v35 = vpop.f32.mrf.mxu0 }
 0x318   :  { %v1961_v35 = vunpack.c.l.bf16 %v3620_v36 }
 0x319   :  { %v2472_v60 = vpop.f32.mrf.mxu1  ;;  %2711 = vmatmul.mubr.f32.gmra.mxu1 %v1947_v39  ;;  %v2117_v44 = vpop.f32.mrf.mxu0  ;;  %2356 = vmatmul.mubr.f32.gmra.mxu0 %v1805_v58  ;;  %v1817_v39 = vunpack.c.l.bf16 %v3619_v38  ;;  %v1962_v58 = vunpack.c.h.bf16 %v3620_v36  ;;  %v3633_v36 = vld [vmem:[#allocation5 + $0x1f0] sm:$0xff] }
 0x31a   :  { %2984 = vst.msk [vmem:[%s5125_s4 + $0x240] sm:$0xff] %vm2911_vm4, %v2472_v60  ;;  %2715 = vmatprep.mubr.f32.mxu1 %v1950_v50  ;;  %2913 = vst.msk [vmem:[%s5125_s4 + $0x8] sm:$0xff] %vm2911_vm4, %v2117_v44  ;;  %2360 = vmatprep.mubr.f32.mxu0 %v1808_v25  ;;  %v1820_v50 = vunpack.c.h.bf16 %v3621_v2  ;;  %v3622_v44 = vld [vmem:[#allocation5 + $0x400] sm:$0xff] }
 0x31b   :  { %v2474_v24 = vpop.f32.mrf.mxu1  ;;  %v2119_v19 = vpop.f32.mrf.mxu0 }
 0x31c   :  { %v1963_v19 = vunpack.c.l.bf16 %v3622_v44 }
 0x31d   :  { %v2477_v51 = vpop.f32.mrf.mxu1  ;;  %2716 = vmatmul.mubr.f32.gmra.mxu1 %v1949_v21  ;;  %v2122_v53 = vpop.f32.mrf.mxu0  ;;  %2361 = vmatmul.mubr.f32.gmra.mxu0 %v1807_v48  ;;  %v1819_v21 = vunpack.c.l.bf16 %v3621_v2  ;;  %v1964_v48 = vunpack.c.h.bf16 %v3622_v44  ;;  %v3635_v44 = vld [vmem:[#allocation5 + $0x1f8] sm:$0xff] }
 0x31e   :  { %2985 = vst.msk [vmem:[%s5125_s4 + $0x248] sm:$0xff] %vm2911_vm4, %v2477_v51  ;;  %2720 = vmatprep.mubr.f32.mxu1 %v1952_v7  ;;  %2914 = vst.msk [vmem:[%s5125_s4 + $0x10] sm:$0xff] %vm2911_vm4, %v2122_v53  ;;  %2365 = vmatprep.mubr.f32.mxu0 %v1810_v13  ;;  %v1822_v7 = vunpack.c.h.bf16 %v3623_v14  ;;  %v3624_v53 = vld [vmem:[#allocation5 + $0x408] sm:$0xff] }
 0x31f   :  { %v2479_v1 = vpop.f32.mrf.mxu1  ;;  %v2124_v22 = vpop.f32.mrf.mxu0 }
 0x320   :  { %v1965_v22 = vunpack.c.l.bf16 %v3624_v53 }
 0x321   :  { %v2482_v11 = vpop.f32.mrf.mxu1  ;;  %2721 = vmatmul.mubr.f32.gmra.mxu1 %v1951_v28  ;;  %v2127_v15 = vpop.f32.mrf.mxu0  ;;  %2366 = vmatmul.mubr.f32.gmra.mxu0 %v1809_v54  ;;  %v1821_v28 = vunpack.c.l.bf16 %v3623_v14  ;;  %v1966_v54 = vunpack.c.h.bf16 %v3624_v53  ;;  %v3637_v53 = vld [vmem:[#allocation5 + $0x200] sm:$0xff] }
 0x322   :  { %2986 = vst.msk [vmem:[%s5125_s4 + $0x250] sm:$0xff] %vm2911_vm4, %v2482_v11  ;;  %2725 = vmatprep.mubr.f32.mxu1 %v1954_v6  ;;  %2915 = vst.msk [vmem:[%s5125_s4 + $0x18] sm:$0xff] %vm2911_vm4, %v2127_v15  ;;  %2370 = vmatprep.mubr.f32.mxu0 %v1812_v34  ;;  %v1824_v6 = vunpack.c.h.bf16 %v3625_v41  ;;  %v3626_v15 = vld [vmem:[#allocation5 + $0x410] sm:$0xff] }
 0x323   :  { %v2484_v57 = vpop.f32.mrf.mxu1  ;;  %v2129_v18 = vpop.f32.mrf.mxu0 }
 0x324   :  { %v1967_v18 = vunpack.c.l.bf16 %v3626_v15 }
 0x325   :  { %v2487_v9 = vpop.f32.mrf.mxu1  ;;  %2726 = vmatmul.mubr.f32.gmra.mxu1 %v1953_v47  ;;  %v2132_v12 = vpop.f32.mrf.mxu0  ;;  %2371 = vmatmul.mubr.f32.gmra.mxu0 %v1811_v37  ;;  %v1823_v47 = vunpack.c.l.bf16 %v3625_v41  ;;  %v1968_v37 = vunpack.c.h.bf16 %v3626_v15  ;;  %v3639_v15 = vld [vmem:[#allocation5 + $0x208] sm:$0xff] }
 0x326   :  { %2987 = vst.msk [vmem:[%s5125_s4 + $0x258] sm:$0xff] %vm2911_vm4, %v2487_v9  ;;  %2730 = vmatprep.mubr.f32.mxu1 %v1956_v5  ;;  %2916 = vst.msk [vmem:[%s5125_s4 + $0x20] sm:$0xff] %vm2911_vm4, %v2132_v12  ;;  %2375 = vmatprep.mubr.f32.mxu0 %v1814_v3  ;;  %v1826_v5 = vunpack.c.h.bf16 %v3627_v63  ;;  %v3628_v12 = vld [vmem:[#allocation5 + $0x418] sm:$0xff] }
 0x327   :  { %v2489_v8 = vpop.f32.mrf.mxu1  ;;  %v2134_v10 = vpop.f32.mrf.mxu0 }
 0x328   :  { %v1969_v10 = vunpack.c.l.bf16 %v3628_v12 }
 0x329   :  { %v2492_v29 = vpop.f32.mrf.mxu1  ;;  %2731 = vmatmul.mubr.f32.gmra.mxu1 %v1955_v46  ;;  %v2137_v62 = vpop.f32.mrf.mxu0  ;;  %2376 = vmatmul.mubr.f32.gmra.mxu0 %v1813_v59  ;;  %v1825_v46 = vunpack.c.l.bf16 %v3627_v63  ;;  %v1970_v59 = vunpack.c.h.bf16 %v3628_v12  ;;  %v3641_v12 = vld [vmem:[#allocation5 + $0x210] sm:$0xff] }
 0x32a   :  { %2988 = vst.msk [vmem:[%s5125_s4 + $0x260] sm:$0xff] %vm2911_vm4, %v2492_v29  ;;  %2735 = vmatprep.mubr.f32.mxu1 %v1958_v49  ;;  %2917 = vst.msk [vmem:[%s5125_s4 + $0x28] sm:$0xff] %vm2911_vm4, %v2137_v62  ;;  %2380 = vmatprep.mubr.f32.mxu0 %v1816_v52  ;;  %v1828_v49 = vunpack.c.h.bf16 %v3629_v17  ;;  %v3630_v62 = vld [vmem:[#allocation5 + $0x420] sm:$0xff] }
 0x32b   :  { %v2494_v20 = vpop.f32.mrf.mxu1  ;;  %v2139_v32 = vpop.f32.mrf.mxu0 }
 0x32c   :  { %v1971_v32 = vunpack.c.l.bf16 %v3630_v62 }
 0x32d   :  { %v2497_v23 = vpop.f32.mrf.mxu1  ;;  %2736 = vmatmul.mubr.f32.gmra.mxu1 %v1957_v40  ;;  %v2142_v31 = vpop.f32.mrf.mxu0  ;;  %2381 = vmatmul.mubr.f32.gmra.mxu0 %v1815_v27  ;;  %v1827_v40 = vunpack.c.l.bf16 %v3629_v17  ;;  %v1972_v27 = vunpack.c.h.bf16 %v3630_v62  ;;  %v3643_v62 = vld [vmem:[#allocation5 + $0x218] sm:$0xff] }
 0x32e   :  { %2989 = vst.msk [vmem:[%s5125_s4 + $0x268] sm:$0xff] %vm2911_vm4, %v2497_v23  ;;  %2740 = vmatprep.mubr.f32.mxu1 %v1960_v56  ;;  %2918 = vst.msk [vmem:[%s5125_s4 + $0x30] sm:$0xff] %vm2911_vm4, %v2142_v31  ;;  %2385 = vmatprep.mubr.f32.mxu0 %v1818_v26  ;;  %v1830_v56 = vunpack.c.h.bf16 %v3631_v45  ;;  %v3632_v31 = vld [vmem:[#allocation5 + $0x428] sm:$0xff] }
 0x32f   :  { %v2499_v61 = vpop.f32.mrf.mxu1  ;;  %v2144_v25 = vpop.f32.mrf.mxu0 }
 0x330   :  { %v1973_v25 = vunpack.c.l.bf16 %v3632_v31 }
 0x331   :  { %v2502_v4 = vpop.f32.mrf.mxu1  ;;  %2741 = vmatmul.mubr.f32.gmra.mxu1 %v1959_v16  ;;  %v2147_v60 = vpop.f32.mrf.mxu0  ;;  %2386 = vmatmul.mubr.f32.gmra.mxu0 %v1817_v39  ;;  %v1829_v16 = vunpack.c.l.bf16 %v3631_v45  ;;  %v1974_v39 = vunpack.c.h.bf16 %v3632_v31  ;;  %v3645_v31 = vld [vmem:[#allocation5 + $0x220] sm:$0xff] }
 0x332   :  { %2990 = vst.msk [vmem:[%s5125_s4 + $0x270] sm:$0xff] %vm2911_vm4, %v2502_v4  ;;  %2745 = vmatprep.mubr.f32.mxu1 %v1962_v58  ;;  %2919 = vst.msk [vmem:[%s5125_s4 + $0x38] sm:$0xff] %vm2911_vm4, %v2147_v60  ;;  %2390 = vmatprep.mubr.f32.mxu0 %v1820_v50  ;;  %v1832_v58 = vunpack.c.h.bf16 %v3633_v36  ;;  %v3634_v60 = vld [vmem:[#allocation5 + $0x430] sm:$0xff] }
 0x333   :  { %v2504_v42 = vpop.f32.mrf.mxu1  ;;  %v2149_v13 = vpop.f32.mrf.mxu0 }
 0x334   :  { %v1975_v13 = vunpack.c.l.bf16 %v3634_v60 }
 0x335   :  { %v2507_v24 = vpop.f32.mrf.mxu1  ;;  %2746 = vmatmul.mubr.f32.gmra.mxu1 %v1961_v35  ;;  %v2152_v51 = vpop.f32.mrf.mxu0  ;;  %2391 = vmatmul.mubr.f32.gmra.mxu0 %v1819_v21  ;;  %v1831_v35 = vunpack.c.l.bf16 %v3633_v36  ;;  %v1976_v21 = vunpack.c.h.bf16 %v3634_v60  ;;  %v3647_v60 = vld [vmem:[#allocation5 + $0x228] sm:$0xff] }
 0x336   :  { %2991 = vst.msk [vmem:[%s5125_s4 + $0x278] sm:$0xff] %vm2911_vm4, %v2507_v24  ;;  %2750 = vmatprep.mubr.f32.mxu1 %v1964_v48  ;;  %2920 = vst.msk [vmem:[%s5125_s4 + $0x40] sm:$0xff] %vm2911_vm4, %v2152_v51  ;;  %2395 = vmatprep.mubr.f32.mxu0 %v1822_v7  ;;  %v1834_v48 = vunpack.c.h.bf16 %v3635_v44  ;;  %v3636_v51 = vld [vmem:[#allocation5 + $0x438] sm:$0xff] }
 0x337   :  { %v2509_v30 = vpop.f32.mrf.mxu1  ;;  %v2154_v34 = vpop.f32.mrf.mxu0 }
 0x338   :  { %v1977_v34 = vunpack.c.l.bf16 %v3636_v51 }
 0x339   :  { %v2512_v1 = vpop.f32.mrf.mxu1  ;;  %2751 = vmatmul.mubr.f32.gmra.mxu1 %v1963_v19  ;;  %v2157_v11 = vpop.f32.mrf.mxu0  ;;  %2396 = vmatmul.mubr.f32.gmra.mxu0 %v1821_v28  ;;  %v1833_v19 = vunpack.c.l.bf16 %v3635_v44  ;;  %v1978_v28 = vunpack.c.h.bf16 %v3636_v51  ;;  %v3649_v51 = vld [vmem:[#allocation5 + $0x230] sm:$0xff] }
 0x33a   :  { %2992 = vst.msk [vmem:[%s5125_s4 + $0x280] sm:$0xff] %vm2911_vm4, %v2512_v1  ;;  %2755 = vmatprep.mubr.f32.mxu1 %v1966_v54  ;;  %2921 = vst.msk [vmem:[%s5125_s4 + $0x48] sm:$0xff] %vm2911_vm4, %v2157_v11  ;;  %2400 = vmatprep.mubr.f32.mxu0 %v1824_v6  ;;  %v1836_v54 = vunpack.c.h.bf16 %v3637_v53  ;;  %v3638_v11 = vld [vmem:[#allocation5 + $0x440] sm:$0xff] }
 0x33b   :  { %v2514_v43 = vpop.f32.mrf.mxu1  ;;  %v2159_v3 = vpop.f32.mrf.mxu0 }
 0x33c   :  { %v1979_v3 = vunpack.c.l.bf16 %v3638_v11 }
 0x33d   :  { %v2517_v57 = vpop.f32.mrf.mxu1  ;;  %2756 = vmatmul.mubr.f32.gmra.mxu1 %v1965_v22  ;;  %v2162_v9 = vpop.f32.mrf.mxu0  ;;  %2401 = vmatmul.mubr.f32.gmra.mxu0 %v1823_v47  ;;  %v1835_v22 = vunpack.c.l.bf16 %v3637_v53  ;;  %v1980_v47 = vunpack.c.h.bf16 %v3638_v11 }
 0x33e   :  { %2993 = vst.msk [vmem:[%s5125_s4 + $0x288] sm:$0xff] %vm2911_vm4, %v2517_v57  ;;  %2760 = vmatprep.mubr.f32.mxu1 %v1968_v37  ;;  %2922 = vst.msk [vmem:[%s5125_s4 + $0x50] sm:$0xff] %vm2911_vm4, %v2162_v9  ;;  %2405 = vmatprep.mubr.f32.mxu0 %v1826_v5  ;;  %v1838_v37 = vunpack.c.h.bf16 %v3639_v15  ;;  %v3640_v9 = vld [vmem:[#allocation5 + $0x448] sm:$0xff] }
 0x33f   :  { %v2519_v33 = vpop.f32.mrf.mxu1  ;;  %v2164_v52 = vpop.f32.mrf.mxu0 }
 0x340   :  { %v1981_v52 = vunpack.c.l.bf16 %v3640_v9 }
 0x341   :  { %v2522_v8 = vpop.f32.mrf.mxu1  ;;  %2761 = vmatmul.mubr.f32.gmra.mxu1 %v1967_v18  ;;  %v2167_v29 = vpop.f32.mrf.mxu0  ;;  %2406 = vmatmul.mubr.f32.gmra.mxu0 %v1825_v46  ;;  %v1837_v18 = vunpack.c.l.bf16 %v3639_v15  ;;  %v1982_v46 = vunpack.c.h.bf16 %v3640_v9 }
 0x342   :  { %2994 = vst.msk [vmem:[%s5125_s4 + $0x290] sm:$0xff] %vm2911_vm4, %v2522_v8  ;;  %2765 = vmatprep.mubr.f32.mxu1 %v1970_v59  ;;  %2923 = vst.msk [vmem:[%s5125_s4 + $0x58] sm:$0xff] %vm2911_vm4, %v2167_v29  ;;  %2410 = vmatprep.mubr.f32.mxu0 %v1828_v49  ;;  %v1840_v59 = vunpack.c.h.bf16 %v3641_v12  ;;  %v3642_v29 = vld [vmem:[#allocation5 + $0x450] sm:$0xff] }
 0x343   :  { %v2524_v38 = vpop.f32.mrf.mxu1  ;;  %v2169_v26 = vpop.f32.mrf.mxu0 }
 0x344   :  { %v1983_v26 = vunpack.c.l.bf16 %v3642_v29 }
 0x345   :  { %v2527_v20 = vpop.f32.mrf.mxu1  ;;  %2766 = vmatmul.mubr.f32.gmra.mxu1 %v1969_v10  ;;  %v2172_v23 = vpop.f32.mrf.mxu0  ;;  %2411 = vmatmul.mubr.f32.gmra.mxu0 %v1827_v40  ;;  %v1839_v10 = vunpack.c.l.bf16 %v3641_v12  ;;  %v1984_v40 = vunpack.c.h.bf16 %v3642_v29  ;;  %v3653_v29 = vld [vmem:[#allocation5 + $0x488] sm:$0xff] }
 0x346   :  { %2995 = vst.msk [vmem:[%s5125_s4 + $0x298] sm:$0xff] %vm2911_vm4, %v2527_v20  ;;  %2770 = vmatprep.mubr.f32.mxu1 %v1972_v27  ;;  %2924 = vst.msk [vmem:[%s5125_s4 + $0x60] sm:$0xff] %vm2911_vm4, %v2172_v23  ;;  %2415 = vmatprep.mubr.f32.mxu0 %v1830_v56  ;;  %v1842_v27 = vunpack.c.h.bf16 %v3643_v62  ;;  %v3644_v23 = vld [vmem:[#allocation5 + $0x458] sm:$0xff] }
 0x347   :  { %v2529_v2 = vpop.f32.mrf.mxu1  ;;  %v2174_v50 = vpop.f32.mrf.mxu0 }
 0x348   :  { %v1985_v50 = vunpack.c.l.bf16 %v3644_v23 }
 0x349   :  { %v2532_v61 = vpop.f32.mrf.mxu1  ;;  %2771 = vmatmul.mubr.f32.gmra.mxu1 %v1971_v32  ;;  %v2177_v4 = vpop.f32.mrf.mxu0  ;;  %2416 = vmatmul.mubr.f32.gmra.mxu0 %v1829_v16  ;;  %v1841_v32 = vunpack.c.l.bf16 %v3643_v62  ;;  %v1986_v16 = vunpack.c.h.bf16 %v3644_v23 }
 0x34a   :  { %2996 = vst.msk [vmem:[%s5125_s4 + $0x2a0] sm:$0xff] %vm2911_vm4, %v2532_v61  ;;  %2775 = vmatprep.mubr.f32.mxu1 %v1974_v39  ;;  %2925 = vst.msk [vmem:[%s5125_s4 + $0x68] sm:$0xff] %vm2911_vm4, %v2177_v4  ;;  %2420 = vmatprep.mubr.f32.mxu0 %v1832_v58  ;;  %v1844_v39 = vunpack.c.h.bf16 %v3645_v31  ;;  %v3646_v4 = vld [vmem:[#allocation5 + $0x460] sm:$0xff] }
 0x34b   :  { %v2534_v14 = vpop.f32.mrf.mxu1  ;;  %v2179_v7 = vpop.f32.mrf.mxu0 }
 0x34c   :  { %v1987_v7 = vunpack.c.l.bf16 %v3646_v4 }
 0x34d   :  { %v2537_v42 = vpop.f32.mrf.mxu1  ;;  %2776 = vmatmul.mubr.f32.gmra.mxu1 %v1973_v25  ;;  %v2182_v24 = vpop.f32.mrf.mxu0  ;;  %2421 = vmatmul.mubr.f32.gmra.mxu0 %v1831_v35  ;;  %v1843_v25 = vunpack.c.l.bf16 %v3645_v31  ;;  %v1988_v35 = vunpack.c.h.bf16 %v3646_v4 }
 0x34e   :  { %2997 = vst.msk [vmem:[%s5125_s4 + $0x2a8] sm:$0xff] %vm2911_vm4, %v2537_v42  ;;  %2780 = vmatprep.mubr.f32.mxu1 %v1976_v21  ;;  %2926 = vst.msk [vmem:[%s5125_s4 + $0x70] sm:$0xff] %vm2911_vm4, %v2182_v24  ;;  %2425 = vmatprep.mubr.f32.mxu0 %v1834_v48  ;;  %v1846_v21 = vunpack.c.h.bf16 %v3647_v60  ;;  %v3648_v24 = vld [vmem:[#allocation5 + $0x468] sm:$0xff] }
 0x34f   :  { %v2539_v41 = vpop.f32.mrf.mxu1  ;;  %v2184_v6 = vpop.f32.mrf.mxu0 }
 0x350   :  { %v3072_v41 = vld [vmem:[#allocation7] sm:$0x3] }
 0x351   :  { %v2542_v30 = vpop.f32.mrf.mxu1  ;;  %2781 = vmatmul.mubr.f32.gmra.mxu1 %v1975_v13  ;;  %v2187_v1 = vpop.f32.mrf.mxu0  ;;  %2426 = vmatmul.mubr.f32.gmra.mxu0 %v1833_v19  ;;  %v1845_v13 = vunpack.c.l.bf16 %v3647_v60  ;;  %v1990_v19 = vunpack.c.h.bf16 %v3648_v24 }
 0x352   :  { %2998 = vst.msk [vmem:[%s5125_s4 + $0x2b0] sm:$0xff] %vm2911_vm4, %v2542_v30  ;;  %2785 = vmatprep.mubr.f32.mxu1 %v1978_v28  ;;  %2927 = vst.msk [vmem:[%s5125_s4 + $0x78] sm:$0xff] %vm2911_vm4, %v2187_v1  ;;  %2430 = vmatprep.mubr.f32.mxu0 %v1836_v54  ;;  %v1848_v28 = vunpack.c.h.bf16 %v3649_v51  ;;  %v1989_v30 = vunpack.c.l.bf16 %v3648_v24  ;;  %v1847_v1 = vunpack.c.l.bf16 %v3649_v51 }
 0x353   :  { %v2544_v63 = vpop.f32.mrf.mxu1  ;;  %v2189_v5 = vpop.f32.mrf.mxu0 }
 0x355   :  { %v2547_v43 = vpop.f32.mrf.mxu1  ;;  %2786 = vmatmul.mubr.f32.gmra.mxu1 %v1977_v34  ;;  %v2192_v57 = vpop.f32.mrf.mxu0  ;;  %2431 = vmatmul.mubr.f32.gmra.mxu0 %v1835_v22  ;;  %v3650_v22 = vld [vmem:[#allocation5 + $0x470] sm:$0xff] }
 0x356   :  { %2999 = vst.msk [vmem:[%s5125_s4 + $0x2b8] sm:$0xff] %vm2911_vm4, %v2547_v43  ;;  %2790 = vmatprep.mubr.f32.mxu1 %v1980_v47  ;;  %2928 = vst.msk [vmem:[%s5125_s4 + $0x80] sm:$0xff] %vm2911_vm4, %v2192_v57  ;;  %2435 = vmatprep.mubr.f32.mxu0 %v1838_v37  ;;  %v1992_v11 = vunpack.c.h.bf16 %v3650_v22  ;;  %v3081_v47 = vrot.slane %v3072_v41, %v4442_v0  ;;  %v1991_v5 = vunpack.c.l.bf16 %v3650_v22  ;;  %v3651_v57 = vld [vmem:[#allocation5 + $0x478] sm:$0xff] }
 0x357   :  { %v2549_v17 = vpop.f32.mrf.mxu1  ;;  %v2194_v49 = vpop.f32.mrf.mxu0  ;;  %v1993_v12 = vunpack.c.l.bf16 %v3651_v57 }
 0x359   :  { %v2552_v33 = vpop.f32.mrf.mxu1  ;;  %2791 = vmatmul.mubr.f32.gmra.mxu1 %v1979_v3  ;;  %v2197_v8 = vpop.f32.mrf.mxu0  ;;  %2436 = vmatmul.mubr.f32.gmra.mxu0 %v1837_v18  ;;  %v3077_v3 = vrot.slane %v3072_v41, %v4445_v55  ;;  %v1994_v18 = vunpack.c.h.bf16 %v3651_v57 }
 0x35a   :  { %3000 = vst.msk [vmem:[%s5125_s4 + $0x2c0] sm:$0xff] %vm2911_vm4, %v2552_v33  ;;  %2795 = vmatprep.mubr.f32.mxu1 %v1982_v46  ;;  %2929 = vst.msk [vmem:[%s5125_s4 + $0x88] sm:$0xff] %vm2911_vm4, %v2197_v8  ;;  %2440 = vmatprep.mubr.f32.mxu0 %v1840_v59  ;;  %v3652_v59 = vld [vmem:[#allocation5 + $0x480] sm:$0xff] }
 0x35b   :  { %v2554_v45 = vpop.f32.mrf.mxu1  ;;  %v2199_v56 = vpop.f32.mrf.mxu0  ;;  %v1996_v17 = vunpack.c.h.bf16 %v3652_v59  ;;  %v1995_v8 = vunpack.c.l.bf16 %v3652_v59 }
 0x35c   :  { %v1997_v56 = vunpack.c.l.bf16 %v3653_v29 }
 0x35d   :  { %v2557_v38 = vpop.f32.mrf.mxu1  ;;  %2796 = vmatmul.mubr.f32.gmra.mxu1 %v1981_v52  ;;  %v2202_v20 = vpop.f32.mrf.mxu0  ;;  %2441 = vmatmul.mubr.f32.gmra.mxu0 %v1839_v10 }
 0x35e   :  { %3001 = vst.msk [vmem:[%s5125_s4 + $0x2c8] sm:$0xff] %vm2911_vm4, %v2557_v38  ;;  %2800 = vmatprep.mubr.f32.mxu1 %v1984_v40  ;;  %2930 = vst.msk [vmem:[%s5125_s4 + $0x90] sm:$0xff] %vm2911_vm4, %v2202_v20  ;;  %2445 = vmatprep.mubr.f32.mxu0 %v1842_v27  ;;  %v1998_v40 = vunpack.c.h.bf16 %v3653_v29 }
 0x35f   :  { %v2559_v36 = vpop.f32.mrf.mxu1  ;;  %v2204_v58 = vpop.f32.mrf.mxu0 }
 0x360   :  { %v3655_v36 = vld [vmem:[#allocation5 + $0x498] sm:$0xff] }
 0x361   :  { %v2562_v2 = vpop.f32.mrf.mxu1  ;;  %2801 = vmatmul.mubr.f32.gmra.mxu1 %v1983_v26  ;;  %v2207_v61 = vpop.f32.mrf.mxu0  ;;  %2446 = vmatmul.mubr.f32.gmra.mxu0 %v1841_v32  ;;  %v3654_v26 = vld [vmem:[#allocation5 + $0x490] sm:$0xff]  ;;  %v2002_v58 = vunpack.c.h.bf16 %v3655_v36 }
 0x362   :  { %3002 = vst.msk [vmem:[%s5125_s4 + $0x2d0] sm:$0xff] %vm2911_vm4, %v2562_v2  ;;  %2805 = vmatprep.mubr.f32.mxu1 %v1986_v16  ;;  %2931 = vst.msk [vmem:[%s5125_s4 + $0x98] sm:$0xff] %vm2911_vm4, %v2207_v61  ;;  %2450 = vmatprep.mubr.f32.mxu0 %v1844_v39  ;;  %v2000_v20 = vunpack.c.h.bf16 %v3654_v26  ;;  %v1999_v31 = vunpack.c.l.bf16 %v3654_v26 }
 0x363   :  { %v2564_v44 = vpop.f32.mrf.mxu1  ;;  %v2209_v48 = vpop.f32.mrf.mxu0 }
 0x365   :  { %v2567_v14 = vpop.f32.mrf.mxu1  ;;  %2806 = vmatmul.mubr.f32.gmra.mxu1 %v1985_v50  ;;  %v2212_v42 = vpop.f32.mrf.mxu0  ;;  %2451 = vmatmul.mubr.f32.gmra.mxu0 %v1843_v25  ;;  %v2001_v25 = vunpack.c.l.bf16 %v3655_v36 }
 0x366   :  { %3003 = vst.msk [vmem:[%s5125_s4 + $0x2d8] sm:$0xff] %vm2911_vm4, %v2567_v14  ;;  %2810 = vmatprep.mubr.f32.mxu1 %v1988_v35  ;;  %2932 = vst.msk [vmem:[%s5125_s4 + $0xa0] sm:$0xff] %vm2911_vm4, %v2212_v42  ;;  %2455 = vmatprep.mubr.f32.mxu0 %v1846_v21  ;;  %v3656_v35 = vld [vmem:[#allocation5 + $0x4a0] sm:$0xff]  ;;  %v3657_v42 = vld [vmem:[#allocation5 + $0x4a8] sm:$0xff] }
 0x367   :  { %v2569_v53 = vpop.f32.mrf.mxu1  ;;  %v2214_v54 = vpop.f32.mrf.mxu0  ;;  %v2004_v60 = vunpack.c.h.bf16 %v3656_v35  ;;  %v2003_v14 = vunpack.c.l.bf16 %v3656_v35 }
 0x368   :  { %v3658_v54 = vld [vmem:[#allocation5 + $0x4b0] sm:$0xff] }
 0x369   :  { %v2572_v6 = vpop.f32.mrf.mxu1  ;;  %2811 = vmatmul.mubr.f32.gmra.mxu1 %v1987_v7  ;;  %v2217_v34 = vpop.f32.mrf.mxu0  ;;  %2456 = vmatmul.mubr.f32.gmra.mxu0 %v1845_v13  ;;  %v2006_v13 = vunpack.c.h.bf16 %v3657_v42  ;;  %v2008_v41 = vunpack.c.h.bf16 %v3658_v54 }
 0x36a   :  { %3004 = vst.msk [vmem:[%s5125_s4 + $0x2e0] sm:$0xff] %vm2911_vm4, %v2572_v6  ;;  %2815 = vmatprep.mubr.f32.mxu1 %v1990_v19  ;;  %2933 = vst.msk [vmem:[%s5125_s4 + $0xa8] sm:$0xff] %vm2911_vm4, %v2217_v34  ;;  %2460 = vmatprep.mubr.f32.mxu0 %v1848_v28  ;;  %v2005_v28 = vunpack.c.l.bf16 %v3657_v42 }
 0x36b   :  { %v2574_v15 = vpop.f32.mrf.mxu1  ;;  %v2219_v37 = vpop.f32.mrf.mxu0 }
 0x36d   :  { %v2577_v63 = vpop.f32.mrf.mxu1  ;;  %2816 = vmatmul.mubr.f32.gmra.mxu1 %v1989_v30  ;;  %v2222_v43 = vpop.f32.mrf.mxu0  ;;  %2461 = vmatmul.mubr.f32.gmra.mxu0 %v1847_v1  ;;  %v2007_v1 = vunpack.c.l.bf16 %v3658_v54 }
 0x36e   :  { %3005 = vst.msk [vmem:[%s5125_s4 + $0x2e8] sm:$0xff] %vm2911_vm4, %v2577_v63  ;;  %2820 = vmatprep.mubr.f32.mxu1 %v1992_v11  ;;  %2934 = vst.msk [vmem:[%s5125_s4 + $0xb0] sm:$0xff] %vm2911_vm4, %v2222_v43  ;;  %3148 = vmatprep.mubr.f32.mxu0 %v3081_v47  ;;  %v3659_v11 = vld [vmem:[#allocation5 + $0x4b8] sm:$0xff] }
 0x36f   :  { %v2579_v0 = vpop.f32.mrf.mxu1  ;;  %v2224_v9 = vpop.f32.mrf.mxu0  ;;  %v2010_v47 = vunpack.c.h.bf16 %v3659_v11 }
 0x371   :  { %v2582_v46 = vpop.f32.mrf.mxu1  ;;  %2821 = vmatmul.mubr.f32.gmra.mxu1 %v1991_v5  ;;  %v2227_v55 = vpop.f32.mrf.mxu0  ;;  %3149 = vmatmul.mubr.f32.vlgmr.msra.gmra.mxu0 %v3077_v3  ;;  %v2009_v5 = vunpack.c.l.bf16 %v3659_v11  ;;  %v3660_v3 = vld [vmem:[#allocation5 + $0x4c0] sm:$0xff] }
 0x372   :  { %3006 = vst.msk [vmem:[%s5125_s4 + $0x2f0] sm:$0xff] %vm2911_vm4, %v2582_v46  ;;  %2825 = vmatprep.mubr.f32.mxu1 %v1994_v18  ;;  %2935 = vst.msk [vmem:[%s5125_s4 + $0xb8] sm:$0xff] %vm2911_vm4, %v2227_v55  ;;  %v2012_v57 = vunpack.c.h.bf16 %v3660_v3  ;;  %v2011_v46 = vunpack.c.l.bf16 %v3660_v3  ;;  %v3661_v55 = vld [vmem:[#allocation5 + $0x4c8] sm:$0xff] }
 0x373   :  { %v2584_v49 = vpop.f32.mrf.mxu1  ;;  %v2229_v33 = vpop.f32.mrf.mxu0  ;;  %v2014_v59 = vunpack.c.h.bf16 %v3661_v55 }
 0x375   :  { %v2587_v52 = vpop.f32.mrf.mxu1  ;;  %2826 = vmatmul.mubr.f32.gmra.mxu1 %v1993_v12  ;;  %v2232_v10 = vpop.f32.mrf.mxu0 }
 0x376   :  { %3007 = vst.msk [vmem:[%s5125_s4 + $0x2f8] sm:$0xff] %vm2911_vm4, %v2587_v52  ;;  %2830 = vmatprep.mubr.f32.mxu1 %v1996_v17  ;;  %2936 = vst.msk [vmem:[%s5125_s4 + $0xc0] sm:$0xff] %vm2911_vm4, %v2232_v10  ;;  %v2013_v52 = vunpack.c.l.bf16 %v3661_v55  ;;  %v3662_v10 = vld [vmem:[#allocation5 + $0x4d0] sm:$0xff] }
 0x377   :  { %v2589_v62 = vpop.f32.mrf.mxu1  ;;  %v2234_v27 = vpop.f32.mrf.mxu0  ;;  %v2016_v29 = vunpack.c.h.bf16 %v3662_v10 }
 0x379   :  { %v2592_v45 = vpop.f32.mrf.mxu1  ;;  %2831 = vmatmul.mubr.f32.gmra.mxu1 %v1995_v8  ;;  %v2237_v38 = vpop.f32.mrf.mxu0 }
 0x37a   :  { %3008 = vst.msk [vmem:[%s5125_s4 + $0x300] sm:$0xff] %vm2911_vm4, %v2592_v45  ;;  %2835 = vmatprep.mubr.f32.mxu1 %v1998_v40  ;;  %2937 = vst.msk [vmem:[%s5125_s4 + $0xc8] sm:$0xff] %vm2911_vm4, %v2237_v38  ;;  %v2015_v45 = vunpack.c.l.bf16 %v3662_v10  ;;  %v3663_v38 = vld [vmem:[#allocation5 + $0x4d8] sm:$0xff] }
 0x37b   :  { %v2594_v32 = vpop.f32.mrf.mxu1  ;;  %v2239_v23 = vpop.f32.mrf.mxu0  ;;  %v2018_v26 = vunpack.c.h.bf16 %v3663_v38 }
 0x37d   :  { %v2597_v16 = vpop.f32.mrf.mxu1  ;;  %2836 = vmatmul.mubr.f32.gmra.mxu1 %v1997_v56  ;;  %v2242_v39 = vpop.f32.mrf.mxu0 }
 0x37e   :  { %3009 = vst.msk [vmem:[%s5125_s4 + $0x308] sm:$0xff] %vm2911_vm4, %v2597_v16  ;;  %2840 = vmatprep.mubr.f32.mxu1 %v2000_v20  ;;  %2938 = vst.msk [vmem:[%s5125_s4 + $0xd0] sm:$0xff] %vm2911_vm4, %v2242_v39  ;;  %v2017_v16 = vunpack.c.l.bf16 %v3663_v38  ;;  %v3664_v39 = vld [vmem:[#allocation5 + $0x4e0] sm:$0xff] }
 0x37f   :  { %v2599_v2 = vpop.f32.mrf.mxu1  ;;  %v2244_v50 = vpop.f32.mrf.mxu0  ;;  %v2020_v36 = vunpack.c.h.bf16 %v3664_v39 }
 0x381   :  { %v2602_v61 = vpop.f32.mrf.mxu1  ;;  %2841 = vmatmul.mubr.f32.gmra.mxu1 %v1999_v31  ;;  %v2247_v4 = vpop.f32.mrf.mxu0 }
 0x382   :  { %3010 = vst.msk [vmem:[%s5125_s4 + $0x310] sm:$0xff] %vm2911_vm4, %v2602_v61  ;;  %2845 = vmatprep.mubr.f32.mxu1 %v2002_v58  ;;  %2939 = vst.msk [vmem:[%s5125_s4 + $0xd8] sm:$0xff] %vm2911_vm4, %v2247_v4  ;;  %v2019_v61 = vunpack.c.l.bf16 %v3664_v39  ;;  %v3665_v4 = vld [vmem:[#allocation5 + $0x4e8] sm:$0xff] }
 0x383   :  { %v2604_v21 = vpop.f32.mrf.mxu1  ;;  %v2249_v44 = vpop.f32.mrf.mxu0  ;;  %v2022_v35 = vunpack.c.h.bf16 %v3665_v4 }
 0x385   :  { %v2607_v48 = vpop.f32.mrf.mxu1  ;;  %2846 = vmatmul.mubr.f32.gmra.mxu1 %v2001_v25  ;;  %v2252_v7 = vpop.f32.mrf.mxu0 }
 0x386   :  { %3011 = vst.msk [vmem:[%s5125_s4 + $0x318] sm:$0xff] %vm2911_vm4, %v2607_v48  ;;  %2850 = vmatprep.mubr.f32.mxu1 %v2004_v60  ;;  %2940 = vst.msk [vmem:[%s5125_s4 + $0xe0] sm:$0xff] %vm2911_vm4, %v2252_v7  ;;  %v2021_v48 = vunpack.c.l.bf16 %v3665_v4  ;;  %v3666_v7 = vld [vmem:[#allocation5 + $0x4f0] sm:$0xff] }
 0x387   :  { %v2609_v24 = vpop.f32.mrf.mxu1  ;;  %v2254_v19 = vpop.f32.mrf.mxu0  ;;  %v2024_v42 = vunpack.c.h.bf16 %v3666_v7 }
 0x389   :  { %v2612_v51 = vpop.f32.mrf.mxu1  ;;  %2851 = vmatmul.mubr.f32.gmra.mxu1 %v2003_v14  ;;  %v2257_v53 = vpop.f32.mrf.mxu0 }
 0x38a   :  { %3012 = vst.msk [vmem:[%s5125_s4 + $0x320] sm:$0xff] %vm2911_vm4, %v2612_v51  ;;  %2855 = vmatprep.mubr.f32.mxu1 %v2006_v13  ;;  %2941 = vst.msk [vmem:[%s5125_s4 + $0xe8] sm:$0xff] %vm2911_vm4, %v2257_v53  ;;  %v2023_v51 = vunpack.c.l.bf16 %v3666_v7  ;;  %v3667_v53 = vld [vmem:[#allocation5 + $0x4f8] sm:$0xff] }
 0x38b   :  { %v2614_v6 = vpop.f32.mrf.mxu1  ;;  %v2259_v30 = vpop.f32.mrf.mxu0  ;;  %v2026_v54 = vunpack.c.h.bf16 %v3667_v53 }
 0x38d   :  { %v2617_v34 = vpop.f32.mrf.mxu1  ;;  %2856 = vmatmul.mubr.f32.gmra.mxu1 %v2005_v28  ;;  %v2262_v22 = vpop.f32.mrf.mxu0 }
 0x38e   :  { %3013 = vst.msk [vmem:[%s5125_s4 + $0x328] sm:$0xff] %vm2911_vm4, %v2617_v34  ;;  %2860 = vmatprep.mubr.f32.mxu1 %v2008_v41  ;;  %2942 = vst.msk [vmem:[%s5125_s4 + $0xf0] sm:$0xff] %vm2911_vm4, %v2262_v22  ;;  %v2025_v34 = vunpack.c.l.bf16 %v3667_v53 }
 0x38f   :  { %v2619_v15 = vpop.f32.mrf.mxu1  ;;  %v2264_v37 = vpop.f32.mrf.mxu0 }
 0x391   :  { %v2622_v63 = vpop.f32.mrf.mxu1  ;;  %2861 = vmatmul.mubr.f32.gmra.mxu1 %v2007_v1  ;;  %v2267_v43 = vpop.f32.mrf.mxu0 }
 0x392   :  { %3014 = vst.msk [vmem:[%s5125_s4 + $0x330] sm:$0xff] %vm2911_vm4, %v2622_v63  ;;  %2865 = vmatprep.mubr.f32.mxu1 %v2010_v47  ;;  %2943 = vst.msk [vmem:[%s5125_s4 + $0xf8] sm:$0xff] %vm2911_vm4, %v2267_v43 }
 0x393   :  { %v2624_v18 = vpop.f32.mrf.mxu1  ;;  %v2269_v0 = vpop.f32.mrf.mxu0 }
 0x395   :  { %v2627_v9 = vpop.f32.mrf.mxu1  ;;  %2866 = vmatmul.mubr.f32.gmra.mxu1 %v2009_v5  ;;  %v2272_v12 = vpop.f32.mrf.mxu0 }
 0x396   :  { %3015 = vst.msk [vmem:[%s5125_s4 + $0x338] sm:$0xff] %vm2911_vm4, %v2627_v9  ;;  %2870 = vmatprep.mubr.f32.mxu1 %v2012_v57  ;;  %2944 = vst.msk [vmem:[%s5125_s4 + $0x100] sm:$0xff] %vm2911_vm4, %v2272_v12 }
 0x397   :  { %v2629_v17 = vpop.f32.mrf.mxu1  ;;  %v2274_v49 = vpop.f32.mrf.mxu0 }
 0x399   :  { %v2632_v33 = vpop.f32.mrf.mxu1  ;;  %2871 = vmatmul.mubr.f32.gmra.mxu1 %v2011_v46  ;;  %v2277_v8 = vpop.f32.mrf.mxu0 }
 0x39a   :  { %3016 = vst.msk [vmem:[%s5125_s4 + $0x340] sm:$0xff] %vm2911_vm4, %v2632_v33  ;;  %2875 = vmatprep.mubr.f32.mxu1 %v2014_v59  ;;  %2945 = vst.msk [vmem:[%s5125_s4 + $0x108] sm:$0xff] %vm2911_vm4, %v2277_v8 }
 0x39b   :  { %v2634_v40 = vpop.f32.mrf.mxu1  ;;  %v2279_v62 = vpop.f32.mrf.mxu0 }
 0x39d   :  { %v2637_v27 = vpop.f32.mrf.mxu1  ;;  %2876 = vmatmul.mubr.f32.gmra.mxu1 %v2013_v52  ;;  %v2282_v56 = vpop.f32.mrf.mxu0 }
 0x39e   :  { %3017 = vst.msk [vmem:[%s5125_s4 + $0x348] sm:$0xff] %vm2911_vm4, %v2637_v27  ;;  %2880 = vmatprep.mubr.f32.mxu1 %v2016_v29  ;;  %2946 = vst.msk [vmem:[%s5125_s4 + $0x110] sm:$0xff] %vm2911_vm4, %v2282_v56 }
 0x39f   :  { %v2639_v20 = vpop.f32.mrf.mxu1  ;;  %v2284_v32 = vpop.f32.mrf.mxu0 }
 0x3a1   :  { %v2642_v23 = vpop.f32.mrf.mxu1  ;;  %2881 = vmatmul.mubr.f32.gmra.mxu1 %v2015_v45  ;;  %v2287_v31 = vpop.f32.mrf.mxu0 }
 0x3a2   :  { %3018 = vst.msk [vmem:[%s5125_s4 + $0x350] sm:$0xff] %vm2911_vm4, %v2642_v23  ;;  %2885 = vmatprep.mubr.f32.mxu1 %v2018_v26  ;;  %2947 = vst.msk [vmem:[%s5125_s4 + $0x118] sm:$0xff] %vm2911_vm4, %v2287_v31 }
 0x3a3   :  { %v2644_v58 = vpop.f32.mrf.mxu1  ;;  %v2289_v2 = vpop.f32.mrf.mxu0 }
 0x3a5   :  { %v2647_v50 = vpop.f32.mrf.mxu1  ;;  %2886 = vmatmul.mubr.f32.gmra.mxu1 %v2017_v16  ;;  %v2292_v25 = vpop.f32.mrf.mxu0 }
 0x3a6   :  { %3019 = vst.msk [vmem:[%s5125_s4 + $0x358] sm:$0xff] %vm2911_vm4, %v2647_v50  ;;  %2890 = vmatprep.mubr.f32.mxu1 %v2020_v36  ;;  %2948 = vst.msk [vmem:[%s5125_s4 + $0x120] sm:$0xff] %vm2911_vm4, %v2292_v25 }
 0x3a7   :  { %v2649_v60 = vpop.f32.mrf.mxu1  ;;  %v2294_v21 = vpop.f32.mrf.mxu0 }
 0x3a9   :  { %v2652_v44 = vpop.f32.mrf.mxu1  ;;  %2891 = vmatmul.mubr.f32.gmra.mxu1 %v2019_v61  ;;  %v2297_v14 = vpop.f32.mrf.mxu0 }
 0x3aa   :  { %3020 = vst.msk [vmem:[%s5125_s4 + $0x360] sm:$0xff] %vm2911_vm4, %v2652_v44  ;;  %2895 = vmatprep.mubr.f32.mxu1 %v2022_v35  ;;  %2949 = vst.msk [vmem:[%s5125_s4 + $0x128] sm:$0xff] %vm2911_vm4, %v2297_v14 }
 0x3ab   :  { %v2654_v13 = vpop.f32.mrf.mxu1  ;;  %v2299_v24 = vpop.f32.mrf.mxu0 }
 0x3ad   :  { %v2657_v19 = vpop.f32.mrf.mxu1  ;;  %2896 = vmatmul.mubr.f32.gmra.mxu1 %v2021_v48  ;;  %v2302_v28 = vpop.f32.mrf.mxu0 }
 0x3ae   :  { %3021 = vst.msk [vmem:[%s5125_s4 + $0x368] sm:$0xff] %vm2911_vm4, %v2657_v19  ;;  %2900 = vmatprep.mubr.f32.mxu1 %v2024_v42  ;;  %2950 = vst.msk [vmem:[%s5125_s4 + $0x130] sm:$0xff] %vm2911_vm4, %v2302_v28 }
 0x3af   :  { %v2659_v41 = vpop.f32.mrf.mxu1  ;;  %v2304_v6 = vpop.f32.mrf.mxu0 }
 0x3b1   :  { %v2662_v30 = vpop.f32.mrf.mxu1  ;;  %2901 = vmatmul.mubr.f32.gmra.mxu1 %v2023_v51  ;;  %v2307_v1 = vpop.f32.mrf.mxu0 }
 0x3b2   :  { %3022 = vst.msk [vmem:[%s5125_s4 + $0x370] sm:$0xff] %vm2911_vm4, %v2662_v30  ;;  %2905 = vmatprep.mubr.f32.mxu1 %v2026_v54  ;;  %2951 = vst.msk [vmem:[%s5125_s4 + $0x138] sm:$0xff] %vm2911_vm4, %v2307_v1 }
 0x3b3   :  { %v2664_v22 = vpop.f32.mrf.mxu1  ;;  %v2309_v11 = vpop.f32.mrf.mxu0 }
 0x3b5   :  { %v2667_v47 = vpop.f32.mrf.mxu1  ;;  %2906 = vmatmul.mubr.f32.gmra.mxu1 %v2025_v34  ;;  %v2312_v15 = vpop.f32.mrf.mxu0 }
 0x3b6   :  { %3023 = vst.msk [vmem:[%s5125_s4 + $0x378] sm:$0xff] %vm2911_vm4, %v2667_v47  ;;  %2952 = vst.msk [vmem:[%s5125_s4 + $0x140] sm:$0xff] %vm2911_vm4, %v2312_v15 }
 0x3b7   :  { %v2669_v37 = vpop.f32.mrf.mxu1  ;;  %v2314_v63 = vpop.f32.mrf.mxu0 }
 0x3b9   :  { %v2672_v5 = vpop.f32.mrf.mxu1  ;;  %v2317_v43 = vpop.f32.mrf.mxu0 }
 0x3ba   :  { %3024 = vst.msk [vmem:[%s5125_s4 + $0x380] sm:$0xff] %vm2911_vm4, %v2672_v5  ;;  %2953 = vst.msk [vmem:[%s5125_s4 + $0x148] sm:$0xff] %vm2911_vm4, %v2317_v43 }
 0x3bb   :  { %v2674_v3 = vpop.f32.mrf.mxu1  ;;  %v2319_v57 = vpop.f32.mrf.mxu0 }
 0x3bd   :  { %v2677_v18 = vpop.f32.mrf.mxu1  ;;  %v2322_v0 = vpop.f32.mrf.mxu0 }
 0x3be   :  { %3025 = vst.msk [vmem:[%s5125_s4 + $0x388] sm:$0xff] %vm2911_vm4, %v2677_v18  ;;  %2954 = vst.msk [vmem:[%s5125_s4 + $0x150] sm:$0xff] %vm2911_vm4, %v2322_v0 }
 0x3bf   :  { %v2679_v9 = vpop.f32.mrf.mxu1  ;;  %v2324_v46 = vpop.f32.mrf.mxu0 }
 0x3c1   :  { %v2682_v12 = vpop.f32.mrf.mxu1  ;;  %v2327_v55 = vpop.f32.mrf.mxu0 }
 0x3c2   :  { %3026 = vst.msk [vmem:[%s5125_s4 + $0x390] sm:$0xff] %vm2911_vm4, %v2682_v12  ;;  %2955 = vst.msk [vmem:[%s5125_s4 + $0x158] sm:$0xff] %vm2911_vm4, %v2327_v55 }
 0x3c3   :  { %v2684_v59 = vpop.f32.mrf.mxu1  ;;  %v2329_v17 = vpop.f32.mrf.mxu0 }
 0x3c5   :  { %v2687_v49 = vpop.f32.mrf.mxu1  ;;  %v2332_v33 = vpop.f32.mrf.mxu0 }
 0x3c6   :  { %3027 = vst.msk [vmem:[%s5125_s4 + $0x398] sm:$0xff] %vm2911_vm4, %v2687_v49  ;;  %2956 = vst.msk [vmem:[%s5125_s4 + $0x160] sm:$0xff] %vm2911_vm4, %v2332_v33 }
 0x3c7   :  { %v2689_v52 = vpop.f32.mrf.mxu1  ;;  %v2334_v8 = vpop.f32.mrf.mxu0 }
 0x3c9   :  { %v2692_v10 = vpop.f32.mrf.mxu1  ;;  %v2337_v29 = vpop.f32.mrf.mxu0 }
 0x3ca   :  { %3028 = vst.msk [vmem:[%s5125_s4 + $0x3a0] sm:$0xff] %vm2911_vm4, %v2692_v10  ;;  %2957 = vst.msk [vmem:[%s5125_s4 + $0x168] sm:$0xff] %vm2911_vm4, %v2337_v29 }
 0x3cb   :  { %v2694_v40 = vpop.f32.mrf.mxu1  ;;  %v2339_v62 = vpop.f32.mrf.mxu0 }
 0x3cd   :  { %v2697_v27 = vpop.f32.mrf.mxu1  ;;  %v2342_v45 = vpop.f32.mrf.mxu0 }
 0x3ce   :  { %3029 = vst.msk [vmem:[%s5125_s4 + $0x3a8] sm:$0xff] %vm2911_vm4, %v2697_v27  ;;  %2958 = vst.msk [vmem:[%s5125_s4 + $0x170] sm:$0xff] %vm2911_vm4, %v2342_v45 }
 0x3cf   :  { %v2699_v56 = vpop.f32.mrf.mxu1  ;;  %v2344_v38 = vpop.f32.mrf.mxu0 }
 0x3d1   :  { %v2702_v26 = vpop.f32.mrf.mxu1  ;;  %v2347_v20 = vpop.f32.mrf.mxu0 }
 0x3d2   :  { %3030 = vst.msk [vmem:[%s5125_s4 + $0x3b0] sm:$0xff] %vm2911_vm4, %v2702_v26  ;;  %2959 = vst.msk [vmem:[%s5125_s4 + $0x178] sm:$0xff] %vm2911_vm4, %v2347_v20 }
 0x3d3   :  { %v2704_v32 = vpop.f32.mrf.mxu1  ;;  %v2349_v23 = vpop.f32.mrf.mxu0 }
 0x3d5   :  { %v2707_v16 = vpop.f32.mrf.mxu1  ;;  %v2352_v31 = vpop.f32.mrf.mxu0 }
 0x3d6   :  { %3031 = vst.msk [vmem:[%s5125_s4 + $0x3b8] sm:$0xff] %vm2911_vm4, %v2707_v16  ;;  %2960 = vst.msk [vmem:[%s5125_s4 + $0x180] sm:$0xff] %vm2911_vm4, %v2352_v31 }
 0x3d7   :  { %v2709_v39 = vpop.f32.mrf.mxu1  ;;  %v2354_v36 = vpop.f32.mrf.mxu0 }
 0x3d9   :  { %v2712_v58 = vpop.f32.mrf.mxu1  ;;  %v2357_v2 = vpop.f32.mrf.mxu0 }
 0x3da   :  { %3032 = vst.msk [vmem:[%s5125_s4 + $0x3c0] sm:$0xff] %vm2911_vm4, %v2712_v58  ;;  %2961 = vst.msk [vmem:[%s5125_s4 + $0x188] sm:$0xff] %vm2911_vm4, %v2357_v2 }
 0x3db   :  { %v2714_v50 = vpop.f32.mrf.mxu1  ;;  %v2359_v61 = vpop.f32.mrf.mxu0 }
 0x3dd   :  { %v2717_v25 = vpop.f32.mrf.mxu1  ;;  %v2362_v4 = vpop.f32.mrf.mxu0 }
 0x3de   :  { %3033 = vst.msk [vmem:[%s5125_s4 + $0x3c8] sm:$0xff] %vm2911_vm4, %v2717_v25  ;;  %2962 = vst.msk [vmem:[%s5125_s4 + $0x190] sm:$0xff] %vm2911_vm4, %v2362_v4 }
 0x3df   :  { %v2719_v35 = vpop.f32.mrf.mxu1  ;;  %v2364_v60 = vpop.f32.mrf.mxu0 }
 0x3e1   :  { %v2722_v21 = vpop.f32.mrf.mxu1  ;;  %v2367_v44 = vpop.f32.mrf.mxu0 }
 0x3e2   :  { %3034 = vst.msk [vmem:[%s5125_s4 + $0x3d0] sm:$0xff] %vm2911_vm4, %v2722_v21  ;;  %2963 = vst.msk [vmem:[%s5125_s4 + $0x198] sm:$0xff] %vm2911_vm4, %v2367_v44 }
 0x3e3   :  { %v2724_v48 = vpop.f32.mrf.mxu1  ;;  %v2369_v14 = vpop.f32.mrf.mxu0 }
 0x3e5   :  { %v2727_v7 = vpop.f32.mrf.mxu1  ;;  %v2372_v42 = vpop.f32.mrf.mxu0 }
 0x3e6   :  { %3035 = vst.msk [vmem:[%s5125_s4 + $0x3d8] sm:$0xff] %vm2911_vm4, %v2727_v7  ;;  %2964 = vst.msk [vmem:[%s5125_s4 + $0x1a0] sm:$0xff] %vm2911_vm4, %v2372_v42 }
 0x3e7   :  { %v2729_v13 = vpop.f32.mrf.mxu1  ;;  %v2374_v24 = vpop.f32.mrf.mxu0 }
 0x3e9   :  { %v2732_v19 = vpop.f32.mrf.mxu1  ;;  %v2377_v51 = vpop.f32.mrf.mxu0 }
 0x3ea   :  { %3036 = vst.msk [vmem:[%s5125_s4 + $0x3e0] sm:$0xff] %vm2911_vm4, %v2732_v19  ;;  %2965 = vst.msk [vmem:[%s5125_s4 + $0x1a8] sm:$0xff] %vm2911_vm4, %v2377_v51 }
 0x3eb   :  { %v2734_v28 = vpop.f32.mrf.mxu1  ;;  %v2379_v53 = vpop.f32.mrf.mxu0 }
 0x3ed   :  { %v2737_v54 = vpop.f32.mrf.mxu1  ;;  %v2382_v41 = vpop.f32.mrf.mxu0 }
 0x3ee   :  { %3037 = vst.msk [vmem:[%s5125_s4 + $0x3e8] sm:$0xff] %vm2911_vm4, %v2737_v54  ;;  %2966 = vst.msk [vmem:[%s5125_s4 + $0x1b0] sm:$0xff] %vm2911_vm4, %v2382_v41 }
 0x3ef   :  { %v2739_v6 = vpop.f32.mrf.mxu1  ;;  %v2384_v30 = vpop.f32.mrf.mxu0 }
 0x3f1   :  { %v2742_v34 = vpop.f32.mrf.mxu1  ;;  %v2387_v1 = vpop.f32.mrf.mxu0 }
 0x3f2   :  { %3038 = vst.msk [vmem:[%s5125_s4 + $0x3f0] sm:$0xff] %vm2911_vm4, %v2742_v34  ;;  %2967 = vst.msk [vmem:[%s5125_s4 + $0x1b8] sm:$0xff] %vm2911_vm4, %v2387_v1 }
 0x3f3   :  { %v2744_v22 = vpop.f32.mrf.mxu1  ;;  %v2389_v11 = vpop.f32.mrf.mxu0 }
 0x3f5   :  { %v2747_v47 = vpop.f32.mrf.mxu1  ;;  %v2392_v15 = vpop.f32.mrf.mxu0 }
 0x3f6   :  { %3039 = vst.msk [vmem:[%s5125_s4 + $0x3f8] sm:$0xff] %vm2911_vm4, %v2747_v47  ;;  %2968 = vst.msk [vmem:[%s5125_s4 + $0x1c0] sm:$0xff] %vm2911_vm4, %v2392_v15 }
 0x3f7   :  { %v2749_v37 = vpop.f32.mrf.mxu1  ;;  %v2394_v63 = vpop.f32.mrf.mxu0 }
 0x3f9   :  { %v2752_v5 = vpop.f32.mrf.mxu1  ;;  %v2397_v43 = vpop.f32.mrf.mxu0 }
 0x3fa   :  { %3040 = vst.msk [vmem:[%s5125_s4 + $0x400] sm:$0xff] %vm2911_vm4, %v2752_v5  ;;  %2969 = vst.msk [vmem:[%s5125_s4 + $0x1c8] sm:$0xff] %vm2911_vm4, %v2397_v43 }
 0x3fb   :  { %v2754_v3 = vpop.f32.mrf.mxu1  ;;  %v2399_v57 = vpop.f32.mrf.mxu0 }
 0x3fd   :  { %v2757_v18 = vpop.f32.mrf.mxu1  ;;  %v2402_v0 = vpop.f32.mrf.mxu0 }
 0x3fe   :  { %3041 = vst.msk [vmem:[%s5125_s4 + $0x408] sm:$0xff] %vm2911_vm4, %v2757_v18  ;;  %2970 = vst.msk [vmem:[%s5125_s4 + $0x1d0] sm:$0xff] %vm2911_vm4, %v2402_v0 }
 0x3ff   :  { %v2759_v9 = vpop.f32.mrf.mxu1  ;;  %v2404_v46 = vpop.f32.mrf.mxu0 }
 0x401   :  { %v2762_v12 = vpop.f32.mrf.mxu1  ;;  %v2407_v55 = vpop.f32.mrf.mxu0 }
 0x402   :  { %3042 = vst.msk [vmem:[%s5125_s4 + $0x410] sm:$0xff] %vm2911_vm4, %v2762_v12  ;;  %2971 = vst.msk [vmem:[%s5125_s4 + $0x1d8] sm:$0xff] %vm2911_vm4, %v2407_v55 }
 0x403   :  { %v2764_v59 = vpop.f32.mrf.mxu1  ;;  %v2409_v17 = vpop.f32.mrf.mxu0 }
 0x405   :  { %v2767_v49 = vpop.f32.mrf.mxu1  ;;  %v2412_v33 = vpop.f32.mrf.mxu0 }
 0x406   :  { %3043 = vst.msk [vmem:[%s5125_s4 + $0x418] sm:$0xff] %vm2911_vm4, %v2767_v49  ;;  %2972 = vst.msk [vmem:[%s5125_s4 + $0x1e0] sm:$0xff] %vm2911_vm4, %v2412_v33 }
 0x407   :  { %v2769_v52 = vpop.f32.mrf.mxu1  ;;  %v2414_v8 = vpop.f32.mrf.mxu0 }
 0x409   :  { %v2772_v10 = vpop.f32.mrf.mxu1  ;;  %v2417_v29 = vpop.f32.mrf.mxu0 }
 0x40a   :  { %3044 = vst.msk [vmem:[%s5125_s4 + $0x420] sm:$0xff] %vm2911_vm4, %v2772_v10  ;;  %2973 = vst.msk [vmem:[%s5125_s4 + $0x1e8] sm:$0xff] %vm2911_vm4, %v2417_v29 }
 0x40b   :  { %v2774_v40 = vpop.f32.mrf.mxu1  ;;  %v2419_v62 = vpop.f32.mrf.mxu0 }
 0x40d   :  { %v2777_v27 = vpop.f32.mrf.mxu1  ;;  %v2422_v45 = vpop.f32.mrf.mxu0 }
 0x40e   :  { %3045 = vst.msk [vmem:[%s5125_s4 + $0x428] sm:$0xff] %vm2911_vm4, %v2777_v27  ;;  %2974 = vst.msk [vmem:[%s5125_s4 + $0x1f0] sm:$0xff] %vm2911_vm4, %v2422_v45 }
 0x40f   :  { %v2779_v56 = vpop.f32.mrf.mxu1  ;;  %v2424_v38 = vpop.f32.mrf.mxu0 }
 0x411   :  { %v2782_v26 = vpop.f32.mrf.mxu1  ;;  %v2427_v20 = vpop.f32.mrf.mxu0 }
 0x412   :  { %3046 = vst.msk [vmem:[%s5125_s4 + $0x430] sm:$0xff] %vm2911_vm4, %v2782_v26  ;;  %2975 = vst.msk [vmem:[%s5125_s4 + $0x1f8] sm:$0xff] %vm2911_vm4, %v2427_v20 }
 0x413   :  { %v2784_v32 = vpop.f32.mrf.mxu1  ;;  %v2429_v23 = vpop.f32.mrf.mxu0 }
 0x415   :  { %v2787_v16 = vpop.f32.mrf.mxu1  ;;  %v2432_v31 = vpop.f32.mrf.mxu0 }
 0x416   :  { %3047 = vst.msk [vmem:[%s5125_s4 + $0x438] sm:$0xff] %vm2911_vm4, %v2787_v16  ;;  %2976 = vst.msk [vmem:[%s5125_s4 + $0x200] sm:$0xff] %vm2911_vm4, %v2432_v31 }
 0x417   :  { %v2789_v39 = vpop.f32.mrf.mxu1  ;;  %v2434_v36 = vpop.f32.mrf.mxu0 }
 0x419   :  { %v2792_v58 = vpop.f32.mrf.mxu1  ;;  %v2437_v2 = vpop.f32.mrf.mxu0 }
 0x41a   :  { %3048 = vst.msk [vmem:[%s5125_s4 + $0x440] sm:$0xff] %vm2911_vm4, %v2792_v58  ;;  %2977 = vst.msk [vmem:[%s5125_s4 + $0x208] sm:$0xff] %vm2911_vm4, %v2437_v2 }
 0x41b   :  { %v2794_v50 = vpop.f32.mrf.mxu1  ;;  %v2439_v61 = vpop.f32.mrf.mxu0 }
 0x41d   :  { %v2797_v25 = vpop.f32.mrf.mxu1  ;;  %v2442_v4 = vpop.f32.mrf.mxu0 }
 0x41e   :  { %3049 = vst.msk [vmem:[%s5125_s4 + $0x448] sm:$0xff] %vm2911_vm4, %v2797_v25  ;;  %2978 = vst.msk [vmem:[%s5125_s4 + $0x210] sm:$0xff] %vm2911_vm4, %v2442_v4 }
 0x41f   :  { %v2799_v35 = vpop.f32.mrf.mxu1  ;;  %v2444_v60 = vpop.f32.mrf.mxu0 }
 0x421   :  { %v2802_v21 = vpop.f32.mrf.mxu1  ;;  %v2447_v44 = vpop.f32.mrf.mxu0 }
 0x422   :  { %3050 = vst.msk [vmem:[%s5125_s4 + $0x450] sm:$0xff] %vm2911_vm4, %v2802_v21  ;;  %2979 = vst.msk [vmem:[%s5125_s4 + $0x218] sm:$0xff] %vm2911_vm4, %v2447_v44 }
 0x423   :  { %v2804_v48 = vpop.f32.mrf.mxu1  ;;  %v2449_v14 = vpop.f32.mrf.mxu0 }
 0x425   :  { %v2807_v7 = vpop.f32.mrf.mxu1  ;;  %v2452_v42 = vpop.f32.mrf.mxu0 }
 0x426   :  { %3051 = vst.msk [vmem:[%s5125_s4 + $0x458] sm:$0xff] %vm2911_vm4, %v2807_v7  ;;  %2980 = vst.msk [vmem:[%s5125_s4 + $0x220] sm:$0xff] %vm2911_vm4, %v2452_v42 }
 0x427   :  { %v2809_v13 = vpop.f32.mrf.mxu1  ;;  %v2454_v24 = vpop.f32.mrf.mxu0 }
 0x429   :  { %v2812_v19 = vpop.f32.mrf.mxu1  ;;  %v2457_v51 = vpop.f32.mrf.mxu0 }
 0x42a   :  { %3052 = vst.msk [vmem:[%s5125_s4 + $0x460] sm:$0xff] %vm2911_vm4, %v2812_v19  ;;  %2981 = vst.msk [vmem:[%s5125_s4 + $0x228] sm:$0xff] %vm2911_vm4, %v2457_v51 }
 0x42b   :  { %v2814_v28 = vpop.f32.mrf.mxu1  ;;  %v2459_v53 = vpop.f32.mrf.mxu0 }
 0x42d   :  { %v2817_v54 = vpop.f32.mrf.mxu1  ;;  %v2462_v41 = vpop.f32.mrf.mxu0 }
 0x42e   :  { %3053 = vst.msk [vmem:[%s5125_s4 + $0x468] sm:$0xff] %vm2911_vm4, %v2817_v54  ;;  %2982 = vst.msk [vmem:[%s5125_s4 + $0x230] sm:$0xff] %vm2911_vm4, %v2462_v41 }
 0x42f   :  { %v2819_v6 = vpop.f32.mrf.mxu1  ;;  %v2464_v30 = vpop.f32.mrf.mxu0 }
 0x431   :  { %v2822_v34 = vpop.f32.mrf.mxu1  ;;  %v3150_v1 = vpop.f32.mrf.mxu0 }
 0x432   :  { %3054 = vst.msk [vmem:[%s5125_s4 + $0x470] sm:$0xff] %vm2911_vm4, %v2822_v34 }
 0x433   :  { %3155 = vst.msk [vmem:[#allocation8] sm:$0x1] %vm3154_vm5, %v3150_v1  ;;  %v2824_v22 = vpop.f32.mrf.mxu1  ;;  %v3152_v11 = vpop.f32.mrf.mxu0 }
 0x434   :  { %3739 = shalt.err (!%p3736_p5)
}
 0x435   :  { %3167 = dma.vmem_to_hbm [thread:$0]  %s3165_s30, 16, %s5126_s5, [#allocation4]   ;;  %v2827_v47 = vpop.f32.mrf.mxu1 }
 0x436   :  { %3055 = vst.msk [vmem:[%s5125_s4 + $0x478] sm:$0xff] %vm2911_vm4, %v2827_v47 }
 0x437   :  { %v2829_v15 = vpop.f32.mrf.mxu1 }
 0x439   :  { %v2832_v37 = vpop.f32.mrf.mxu1 }
 0x43a   :  { %3056 = vst.msk [vmem:[%s5125_s4 + $0x480] sm:$0xff] %vm2911_vm4, %v2832_v37 }
 0x43b   :  { %v2834_v63 = vpop.f32.mrf.mxu1 }
 0x43d   :  { %v2837_v5 = vpop.f32.mrf.mxu1 }
 0x43e   :  { %3057 = vst.msk [vmem:[%s5125_s4 + $0x488] sm:$0xff] %vm2911_vm4, %v2837_v5 }
 0x43f   :  { %v2839_v43 = vpop.f32.mrf.mxu1 }
 0x441   :  { %v2842_v3 = vpop.f32.mrf.mxu1 }
 0x442   :  { %3058 = vst.msk [vmem:[%s5125_s4 + $0x490] sm:$0xff] %vm2911_vm4, %v2842_v3 }
 0x443   :  { %v2844_v57 = vpop.f32.mrf.mxu1 }
 0x445   :  { %v2847_v18 = vpop.f32.mrf.mxu1 }
 0x446   :  { %3059 = vst.msk [vmem:[%s5125_s4 + $0x498] sm:$0xff] %vm2911_vm4, %v2847_v18 }
 0x447   :  { %v2849_v0 = vpop.f32.mrf.mxu1 }
 0x449   :  { %v2852_v9 = vpop.f32.mrf.mxu1 }
 0x44a   :  { %3060 = vst.msk [vmem:[%s5125_s4 + $0x4a0] sm:$0xff] %vm2911_vm4, %v2852_v9 }
 0x44b   :  { %v2854_v46 = vpop.f32.mrf.mxu1 }
 0x44d   :  { %v2857_v12 = vpop.f32.mrf.mxu1 }
 0x44e   :  { %3061 = vst.msk [vmem:[%s5125_s4 + $0x4a8] sm:$0xff] %vm2911_vm4, %v2857_v12 }
 0x44f   :  { %v2859_v55 = vpop.f32.mrf.mxu1 }
 0x451   :  { %v2862_v59 = vpop.f32.mrf.mxu1 }
 0x452   :  { %3062 = vst.msk [vmem:[%s5125_s4 + $0x4b0] sm:$0xff] %vm2911_vm4, %v2862_v59 }
 0x453   :  { %v2864_v17 = vpop.f32.mrf.mxu1 }
 0x455   :  { %v2867_v49 = vpop.f32.mrf.mxu1 }
 0x456   :  { %3063 = vst.msk [vmem:[%s5125_s4 + $0x4b8] sm:$0xff] %vm2911_vm4, %v2867_v49 }
 0x457   :  { %v2869_v33 = vpop.f32.mrf.mxu1 }
 0x459   :  { %v2872_v52 = vpop.f32.mrf.mxu1 }
 0x45a   :  { %3064 = vst.msk [vmem:[%s5125_s4 + $0x4c0] sm:$0xff] %vm2911_vm4, %v2872_v52 }
 0x45b   :  { %v2874_v8 = vpop.f32.mrf.mxu1 }
 0x45d   :  { %v2877_v10 = vpop.f32.mrf.mxu1 }
 0x45e   :  { %3065 = vst.msk [vmem:[%s5125_s4 + $0x4c8] sm:$0xff] %vm2911_vm4, %v2877_v10 }
 0x45f   :  { %v2879_v29 = vpop.f32.mrf.mxu1 }
 0x461   :  { %v2882_v40 = vpop.f32.mrf.mxu1 }
 0x462   :  { %3066 = vst.msk [vmem:[%s5125_s4 + $0x4d0] sm:$0xff] %vm2911_vm4, %v2882_v40 }
 0x463   :  { %v2884_v62 = vpop.f32.mrf.mxu1 }
 0x465   :  { %v2887_v27 = vpop.f32.mrf.mxu1 }
 0x466   :  { %3067 = vst.msk [vmem:[%s5125_s4 + $0x4d8] sm:$0xff] %vm2911_vm4, %v2887_v27 }
 0x467   :  { %v2889_v45 = vpop.f32.mrf.mxu1 }
 0x469   :  { %v2892_v56 = vpop.f32.mrf.mxu1 }
 0x46a   :  { %3068 = vst.msk [vmem:[%s5125_s4 + $0x4e0] sm:$0xff] %vm2911_vm4, %v2892_v56 }
 0x46b   :  { %v2894_v38 = vpop.f32.mrf.mxu1 }
 0x46d   :  { %v2897_v26 = vpop.f32.mrf.mxu1 }
 0x46e   :  { %3069 = vst.msk [vmem:[%s5125_s4 + $0x4e8] sm:$0xff] %vm2911_vm4, %v2897_v26 }
 0x46f   :  { %v2899_v20 = vpop.f32.mrf.mxu1 }
 0x471   :  { %v2902_v32 = vpop.f32.mrf.mxu1 }
 0x472   :  { %3070 = vst.msk [vmem:[%s5125_s4 + $0x4f0] sm:$0xff] %vm2911_vm4, %v2902_v32 }
 0x473   :  { %v2904_v23 = vpop.f32.mrf.mxu1 }
 0x475   :  { %v2907_v16 = vpop.f32.mrf.mxu1 }
 0x476   :  { %3071 = vst.msk [vmem:[%s5125_s4 + $0x4f8] sm:$0xff] %vm2911_vm4, %v2907_v16 }
 0x477   :  { %v2909_v31 = vpop.f32.mrf.mxu1 }
 0x478   :  { %3752 = dma.done.wait [#allocation4], 16  }
 0x479   :  { %3753 = vsyncadd [#allocation4], 4294967280 }
 0x47a   :  { %3173 = vsyncpa [#allocation3], 1 }
 0x47b   :  { %3174 = vsyncpa [#allocation6], 1 }
 0x47c   :  { %3175 = vsyncpa [#allocation4], 1 }

</bundles_post_ra>
